<compile_context>
chip_gen: v5e
topology: v5e:2x2
jax: 0.10.0
libtpu: 0.0.40
codegen_flags: <defaults>
</compile_context>

<pallas_src>
import jax
import jax.numpy as jnp
from jax.experimental import pallas as pl
from jax.experimental.pallas import tpu as pltpu


def _mul_conv1x1_kernel(x_ref, s_ref, w_ref, o_ref):
    """Fused per-channel scale + 1x1 conv as one MXU matmul.

    x_ref: (1, Cin, HW)  f32   activation tile (NCHW-native, HW flattened)
    s_ref: (1, 1,  Cin)  f32   per-channel scale, lane-dense
    w_ref: (Ct, Cin)     bf16  weight slice (Cout optionally split on grid axis 1)
    o_ref: (1, Ct, HW)   f32   output tile
    """
    # Fold the per-channel scale into the weight rows:  (W * s_row) @ x.
    # (1, Cin) -> (Ct, Cin) is a sublane broadcast (cheap, always lowers);
    # product is computed in f32 then rounded once to bf16 for the MXU.
    w_scaled = (w_ref[...] * s_ref[0]).astype(jnp.bfloat16)        # (Ct, Cin)
    x_bf16 = x_ref[0].astype(jnp.bfloat16)                          # (Cin, HW)
    o_ref[0] = jnp.dot(w_scaled, x_bf16,
                       preferred_element_type=jnp.float32).astype(o_ref.dtype)


def prepare_conv1x1_weight(weight_oi11):
    """One-time (init-time) weight prep: (Cout, Cin, 1, 1) f32 -> (Cout, Cin) bf16.

    Done once when parameters are created so the hot path never pays the
    f32->bf16 cast (which would otherwise add ~3.3 MB of HBM traffic per call).
    """
    Cout, Cin = weight_oi11.shape[0], weight_oi11.shape[1]
    return jnp.asarray(weight_oi11).reshape(Cout, Cin).astype(jnp.bfloat16)


def _tensorcores_per_chip():
    """Best-effort detection of 2-TensorCore chips (TPU v4 megacore, TPU7x)."""
    try:
        kind = jax.devices()[0].device_kind.lower()
    except Exception:
        return 1
    if "v4" in kind:
        return 2
    # TPU7x reports a device_kind like "TPU7x" (no 'v7' substring guaranteed):
    # treat any '7'-generation part that is not v5*/v6* as 2-core.
    if "7" in kind and ("v5" not in kind) and ("v6" not in kind):
        return 2
    return 1


def mul_conv1x1(x_nchw, scale_nc11, weight_oc):
    """x_nchw: (N, Cin, H, W) f32, scale_nc11: (N, Cin, 1, 1) f32,
    weight_oc: (Cout, Cin) bf16 (pre-prepared parameter).
    Returns Conv2d_1x1(x * scale): (N, Cout, H, W) f32."""
    N, Cin, H, W = x_nchw.shape
    Cout = weight_oc.shape[0]
    HW = H * W

    # NCHW-native: all reshapes below are free (no transposes, no HBM round trips).
    x2 = x_nchw.reshape(N, Cin, HW)        # f32 on the wire
    s2 = scale_nc11.reshape(N, 1, Cin)     # lane-dense scale: one contiguous DMA

    # Split Cout across TensorCores on 2-TC chips (v4 megacore, TPU7x) so the
    # dominant weight DMA is halved per core; single block on v5e/v6e.
    cores = _tensorcores_per_chip()
    cout_blocks = 2 if (cores >= 2 and Cout % 2 == 0 and (Cout // 2) % 8 == 0) else 1
    ct = Cout // cout_blocks

    flops = 2 * N * HW * Cin * Cout
    bytes_accessed = (x2.size * x2.dtype.itemsize
                      + s2.size * s2.dtype.itemsize
                      + weight_oc.size * weight_oc.dtype.itemsize
                      + N * Cout * HW * 4)

    out = pl.pallas_call(
        _mul_conv1x1_kernel,
        out_shape=jax.ShapeDtypeStruct((N, Cout, HW), x_nchw.dtype),
        grid_spec=pltpu.PrefetchScalarGridSpec(
            num_scalar_prefetch=0,
            grid=(N, cout_blocks),
            in_specs=[
                pl.BlockSpec((1, Cin, HW), lambda n, j: (n, 0, 0)),   # x (reused across j)
                pl.BlockSpec((1, 1, Cin), lambda n, j: (n, 0, 0)),    # scale (lane-dense)
                pl.BlockSpec((ct, Cin), lambda n, j: (j, 0)),         # weight slice
            ],
            out_specs=pl.BlockSpec((1, ct, HW), lambda n, j: (n, j, 0)),
        ),
        compiler_params=pltpu.CompilerParams(
            dimension_semantics=("parallel", "parallel")),
        cost_estimate=pl.CostEstimate(
            flops=int(flops), transcendentals=0, bytes_accessed=int(bytes_accessed)),
    )(x2, s2, weight_oc)

    # (N, Cout, HW) -> (N, Cout, H, W): free reshape.
    return out.reshape(N, Cout, H, W)


if __name__ == "__main__":
    # Shapes from the module: x462 (1, 1824, 7, 7), x467 (1, 1824, 1, 1),
    # Conv2d(1824, 304, kernel_size=1, bias=False) weight (304, 1824, 1, 1).
    N, Cin, H, W, Cout = 1, 1824, 7, 7, 304

    key = jax.random.PRNGKey(0)
    k1, k2, k3 = jax.random.split(key, 3)
    x462 = jax.random.normal(k1, (N, Cin, H, W), dtype=jnp.float32)
    x467 = jax.random.normal(k2, (N, Cin, 1, 1), dtype=jnp.float32)
    # Deterministic synthetic conv weight (kaiming-ish scale).
    weight = jax.random.normal(k3, (Cout, Cin, 1, 1), dtype=jnp.float32) * (1.0 / (Cin ** 0.5))

    # Init-time weight prep: reshape + bf16 cast happen ONCE, not per call.
    w_oc = jax.block_until_ready(prepare_conv1x1_weight(weight))

    fwd = jax.jit(mul_conv1x1)
    out = jax.block_until_ready(fwd(x462, x467, w_oc))
    assert out.shape == (N, Cout, H, W)
    assert out.dtype == jnp.float32

    # Reference 1: f32 math using the bf16 weight parameter (the init-time
    # rounding is a modeling choice).  Remaining error is only the in-kernel
    # bf16 rounding of (w * s) and x before the f32-accumulating MXU matmul.
    x_scaled = x462 * x467
    ref_bf16w = jnp.einsum("nchw,oc->nohw", x_scaled, w_oc.astype(jnp.float32))
    err1 = float(jnp.max(jnp.abs(out - ref_bf16w)))
    assert jnp.allclose(out, ref_bf16w, atol=5e-2, rtol=5e-2), f"max abs err = {err1}"

    # Reference 2: pure-f32 reference of the original module math (looser
    # tolerance: includes the bf16 weight storage rounding, K=1824 contraction).
    ref_f32 = jnp.einsum("nchw,oc->nohw", x_scaled, weight.reshape(Cout, Cin))
    err2 = float(jnp.max(jnp.abs(out - ref_f32)))
    assert jnp.allclose(out, ref_f32, atol=1e-1, rtol=1e-1), f"max abs err vs f32 = {err2}"

    print("KERNEL_OK")
</pallas_src>

<mosaic_0001>
module attributes {stable_mosaic.version = 11 : i64} {
  func.func @_mul_conv1x1_kernel(%arg0: i32, %arg1: i32, %arg2: memref<1x1824x49xf32, #tpu.memory_space<vmem>>, %arg3: memref<1x1x1824xf32, #tpu.memory_space<vmem>>, %arg4: memref<304x1824xbf16, #tpu.memory_space<vmem>>, %arg5: memref<1x304x49xf32, #tpu.memory_space<vmem>>) attributes {dimension_semantics = [#tpu.dimension_semantics<parallel>, #tpu.dimension_semantics<parallel>], iteration_bounds = array<i64: 1, 1>, scalar_prefetch = 0 : i64, scratch_operands = 0 : i64, tpu.core_type = #tpu.core_type<tc>, window_params = [{transform_indices = @transform_0, window_bounds = array<i64: 1, 1824, 49>}, {transform_indices = @transform_1, window_bounds = array<i64: 1, 1, 1824>}, {transform_indices = @transform_2, window_bounds = array<i64: 304, 1824>}, {transform_indices = @transform_3, window_bounds = array<i64: 1, 304, 49>}]} {
    %c0 = arith.constant 0 : index
    %c0_0 = arith.constant 0 : index
    %0 = vector.load %arg4[%c0, %c0_0] : memref<304x1824xbf16, #tpu.memory_space<vmem>>, vector<304x1824xbf16>
    %c0_1 = arith.constant 0 : index
    %c0_2 = arith.constant 0 : index
    %c0_3 = arith.constant 0 : index
    %1 = vector.load %arg3[%c0_1, %c0_2, %c0_3] : memref<1x1x1824xf32, #tpu.memory_space<vmem>>, vector<1x1x1824xf32>
    %2 = vector.shape_cast %1 : vector<1x1x1824xf32> to vector<1x1824xf32>
    %3 = arith.extf %0 : vector<304x1824xbf16> to vector<304x1824xf32>
    %4 = vector.broadcast %2 : vector<1x1824xf32> to vector<304x1824xf32>
    %5 = arith.mulf %3, %4 : vector<304x1824xf32>
    %6 = arith.truncf %5 : vector<304x1824xf32> to vector<304x1824xbf16>
    %c0_4 = arith.constant 0 : index
    %c0_5 = arith.constant 0 : index
    %c0_6 = arith.constant 0 : index
    %7 = vector.load %arg2[%c0_4, %c0_5, %c0_6] : memref<1x1824x49xf32, #tpu.memory_space<vmem>>, vector<1x1824x49xf32>
    %8 = vector.shape_cast %7 : vector<1x1824x49xf32> to vector<1824x49xf32>
    %9 = arith.truncf %8 : vector<1824x49xf32> to vector<1824x49xbf16>
    %cst = arith.constant dense<0.000000e+00> : vector<304x49xf32>
    %10 = tpu.matmul %6, %9, %cst {dimension_numbers = #tpu.dot_dimension_numbers<[1], [0], [0], [1], [0, 0, 1, 1], [], []>} : vector<304x1824xbf16>, vector<1824x49xbf16>, vector<304x49xf32> -> vector<304x49xf32>
    %c0_7 = arith.constant 0 : index
    %c0_8 = arith.constant 0 : index
    %c0_9 = arith.constant 0 : index
    %11 = vector.load %arg5[%c0_7, %c0_8, %c0_9] : memref<1x304x49xf32, #tpu.memory_space<vmem>>, vector<1x304x49xf32>
    %12 = vector.shape_cast %11 : vector<1x304x49xf32> to vector<304x49xf32>
    %13 = vector.shape_cast %10 : vector<304x49xf32> to vector<1x304x49xf32>
    tpu.vector_store %arg5[%c0_7, %c0_8, %c0_9], %13 {strides = array<i32>} : memref<1x304x49xf32, #tpu.memory_space<vmem>>, vector<1x304x49xf32>,
    return
  }
  func.func @transform_0(%arg0: i32, %arg1: i32) -> (i32, i32, i32) {
    %c0_i32 = arith.constant 0 : i32
    %c0_i32_0 = arith.constant 0 : i32
    %c0_i32_1 = arith.constant 0 : i32
    return %arg0, %c0_i32, %c0_i32_0 : i32, i32, i32
  }
  func.func @transform_1(%arg0: i32, %arg1: i32) -> (i32, i32, i32) {
    %c0_i32 = arith.constant 0 : i32
    %c0_i32_0 = arith.constant 0 : i32
    %c0_i32_1 = arith.constant 0 : i32
    return %arg0, %c0_i32, %c0_i32_0 : i32, i32, i32
  }
  func.func @transform_2(%arg0: i32, %arg1: i32) -> (i32, i32) {
    %c0_i32 = arith.constant 0 : i32
    %c0_i32_0 = arith.constant 0 : i32
    return %arg1, %c0_i32 : i32, i32
  }
  func.func @transform_3(%arg0: i32, %arg1: i32) -> (i32, i32, i32) {
    %c0_i32 = arith.constant 0 : i32
    %c0_i32_0 = arith.constant 0 : i32
    return %arg0, %arg1, %c0_i32 : i32, i32, i32
  }
}

</mosaic_0001>

<bundles_post_ra>
// kernel: mul_conv1x1.1
= control target key start
LH: loop header
LB: loop body
LE: loop exit
PB: predicated region body
PF: predicated region fallthrough
CT: control target
= control target key end

     0   :  { %vm2120_vm0 = vcmask 261120   ;;  %vm3738_vm1 = vcmask 400384   ;;  %s7637_s0 = inlined_call_operand.vmem [shape: f32[1,1824,49], index: 0, kind: input, shape index: {}]   ;;  %s7638_s2 = inlined_call_operand.vmem [shape: bf16[304,1824], index: 2, kind: input, shape index: {}]   ;;  %s7639_s1 = inlined_call_operand.vmem [shape: f32[1,1,1824], index: 1, kind: input, shape index: {}]   ;;  %s7640_s3 = inlined_call_operand.vmem [shape: f32[1,304,49], index: 3, kind: output, shape index: {}]  }
   0x1   :  { %v1792_v0 = vld [vmem:[%s7637_s0 + $0x70] sm:$0xff]  ;;  %v1793_v1 = vld [vmem:[%s7637_s0 + $0x78] sm:$0xff]  ;;  %v1790_v9 = vld [vmem:[%s7637_s0 + $0x60] sm:$0xff] }
   0x2   :  { %v1808_v2 = vld [vmem:[%s7637_s0 + $0xf0] sm:$0xff]  ;;  %v2013_v3 = vpack.c.bf16 %v1793_v1, %v1792_v0  ;;  %v1809_v4 = vld [vmem:[%s7637_s0 + $0xf8] sm:$0xff]  ;;  %v1791_v10 = vld [vmem:[%s7637_s0 + $0x68] sm:$0xff] }
   0x3   :  { %v1824_v5 = vld [vmem:[%s7637_s0 + $0x170] sm:$0xff]  ;;  %v1825_v6 = vld [vmem:[%s7637_s0 + $0x178] sm:$0xff]  ;;  %v3965_v7 = vpack.c.bf16 %v1809_v4, %v1808_v2  ;;  %v1806_v11 = vld [vmem:[%s7637_s0 + $0xe0] sm:$0xff]  ;;  %v2012_v12 = vpack.c.bf16 %v1791_v10, %v1790_v9 }
   0x4   :  { %v3967_v8 = vpack.c.bf16 %v1825_v6, %v1824_v5  ;;  %2178 = vmatpush.bf16.msra.mxu0 %v2013_v3  ;;  %3800 = vmatpush.bf16.msra.mxu3 %v2013_v3  ;;  %v1807_v13 = vld [vmem:[%s7637_s0 + $0xe8] sm:$0xff]  ;;  %v1822_v14 = vld [vmem:[%s7637_s0 + $0x160] sm:$0xff]  ;;  %v1788_v18 = vld [vmem:[%s7637_s0 + $0x50] sm:$0xff] }
   0x5   :  { %v1823_v15 = vld [vmem:[%s7637_s0 + $0x168] sm:$0xff]  ;;  %2282 = vmatpush.bf16.msra.mxu1 %v3965_v7  ;;  %v3989_v16 = vpack.c.bf16 %v1807_v13, %v1806_v11  ;;  %v1789_v19 = vld [vmem:[%s7637_s0 + $0x58] sm:$0xff]  ;;  %v1804_v20 = vld [vmem:[%s7637_s0 + $0xd0] sm:$0xff] }
   0x6   :  { %2386 = vmatpush.bf16.msra.mxu2 %v3967_v8  ;;  %v3991_v17 = vpack.c.bf16 %v1823_v15, %v1822_v14  ;;  %v1805_v21 = vld [vmem:[%s7637_s0 + $0xd8] sm:$0xff]  ;;  %v1820_v22 = vld [vmem:[%s7637_s0 + $0x150] sm:$0xff]  ;;  %v2011_v24 = vpack.c.bf16 %v1789_v19, %v1788_v18  ;;  %v1786_v27 = vld [vmem:[%s7637_s0 + $0x40] sm:$0xff] }
   0x7   :  { %v1821_v23 = vld [vmem:[%s7637_s0 + $0x158] sm:$0xff]  ;;  %v4013_v25 = vpack.c.bf16 %v1805_v21, %v1804_v20  ;;  %v1787_v28 = vld [vmem:[%s7637_s0 + $0x48] sm:$0xff]  ;;  %v1802_v29 = vld [vmem:[%s7637_s0 + $0xc0] sm:$0xff] }
   0x8   :  { %2179 = vmatpush.bf16.msra.mxu0 %v2012_v12  ;;  %3801 = vmatpush.bf16.msra.mxu3 %v2012_v12  ;;  %v4015_v26 = vpack.c.bf16 %v1821_v23, %v1820_v22  ;;  %v1803_v30 = vld [vmem:[%s7637_s0 + $0xc8] sm:$0xff]  ;;  %v1818_v31 = vld [vmem:[%s7637_s0 + $0x140] sm:$0xff]  ;;  %v2010_v33 = vpack.c.bf16 %v1787_v28, %v1786_v27  ;;  %v1784_v36 = vld [vmem:[%s7637_s0 + $0x30] sm:$0xff] }
   0x9   :  { %2283 = vmatpush.bf16.msra.mxu1 %v3989_v16  ;;  %v1819_v32 = vld [vmem:[%s7637_s0 + $0x148] sm:$0xff]  ;;  %v4037_v34 = vpack.c.bf16 %v1803_v30, %v1802_v29  ;;  %v1785_v37 = vld [vmem:[%s7637_s0 + $0x38] sm:$0xff]  ;;  %v1800_v38 = vld [vmem:[%s7637_s0 + $0xb0] sm:$0xff] }
   0xa   :  { %2387 = vmatpush.bf16.msra.mxu2 %v3991_v17  ;;  %v4039_v35 = vpack.c.bf16 %v1819_v32, %v1818_v31  ;;  %v1801_v39 = vld [vmem:[%s7637_s0 + $0xb8] sm:$0xff]  ;;  %v1816_v40 = vld [vmem:[%s7637_s0 + $0x130] sm:$0xff]  ;;  %v2009_v42 = vpack.c.bf16 %v1785_v37, %v1784_v36  ;;  %v1782_v43 = vld [vmem:[%s7637_s0 + $0x20] sm:$0xff] }
   0xb   :  { %v1817_v41 = vld [vmem:[%s7637_s0 + $0x138] sm:$0xff]  ;;  %v1783_v44 = vld [vmem:[%s7637_s0 + $0x28] sm:$0xff]  ;;  %v4067_v45 = vpack.c.bf16 %v1801_v39, %v1800_v38  ;;  %v1798_v47 = vld [vmem:[%s7637_s0 + $0xa0] sm:$0xff] }
   0xc   :  { %2180 = vmatpush.bf16.msra.mxu0 %v2011_v24  ;;  %3802 = vmatpush.bf16.msra.mxu3 %v2011_v24  ;;  %v4069_v46 = vpack.c.bf16 %v1817_v41, %v1816_v40  ;;  %v1799_v48 = vld [vmem:[%s7637_s0 + $0xa8] sm:$0xff]  ;;  %v1814_v49 = vld [vmem:[%s7637_s0 + $0x120] sm:$0xff]  ;;  %v2008_v56 = vpack.c.bf16 %v1783_v44, %v1782_v43  ;;  %v1780_v58 = vld [vmem:[%s7637_s0 + $0x10] sm:$0xff] }
   0xd   :  { %2284 = vmatpush.bf16.msra.mxu1 %v4013_v25  ;;  %v1815_v50 = vld [vmem:[%s7637_s0 + $0x128] sm:$0xff]  ;;  %v15_v51 = vld [vmem:[%s7638_s2] sm:$0xff]  ;;  %v4102_v57 = vpack.c.bf16 %v1799_v48, %v1798_v47  ;;  %v1781_v61 = vld [vmem:[%s7637_s0 + $0x18] sm:$0xff] }
   0xe   :  { %2388 = vmatpush.bf16.msra.mxu2 %v4015_v26  ;;  %v23_v52 = vld [vmem:[%s7638_s2 + $0x3c] sm:$0xff]  ;;  %v4095_v54 = vld [vmem:[%s7638_s2 + $0x708] sm:$0xff]  ;;  %v4112_v60 = vpack.c.bf16 %v1815_v50, %v1814_v49  ;;  %v1796_v62 = vld [vmem:[%s7637_s0 + $0x90] sm:$0xff]  ;;  %v321_v63 = vunpack.c.l.bf16 %v15_v51  ;;  %v322_v11 = vunpack.c.h.bf16 %v15_v51  ;;  %v2007_v20 = vpack.c.bf16 %v1781_v61, %v1780_v58 }
   0xf   :  { %v319_v53 = vld [vmem:[%s7639_s1] sm:$0xff]  ;;  %v16_v59 = vld [vmem:[%s7638_s2 + $0x8] sm:$0xff]  ;;  %v336_v0 = vunpack.c.l.bf16 %v23_v52  ;;  %v1797_v3 = vld [vmem:[%s7637_s0 + $0x98] sm:$0xff]  ;;  %v771_v9 = vunpack.c.l.bf16 %v4095_v54  ;;  %v337_v14 = vunpack.c.h.bf16 %v23_v52 }
  0x10   :  { %2181 = vmatpush.bf16.msra.mxu0 %v2010_v33  ;;  %3803 = vmatpush.bf16.msra.mxu3 %v2010_v33  ;;  %v4100_v55 = vld [vmem:[%s7638_s2 + $0x744] sm:$0xff]  ;;  %v324_v2 = vunpack.c.h.bf16 %v16_v59  ;;  %v1812_v4 = vld [vmem:[%s7637_s0 + $0x110] sm:$0xff]  ;;  %v1813_v5 = vld [vmem:[%s7637_s0 + $0x118] sm:$0xff]  ;;  %v4132_v6 = vperm.slane %v319_v53, 0  ;;  %v4142_v15 = vperm.slane %v319_v53, 1  ;;  %v4144_v19 = vperm.slane %v319_v53, 3 }
  0x11   :  { %2285 = vmatpush.bf16.msra.mxu1 %v4037_v34  ;;  %v24_v1 = vld [vmem:[%s7638_s2 + $0x44] sm:$0xff]  ;;  %v786_v10 = vunpack.c.l.bf16 %v4100_v55  ;;  %v323_v21 = vunpack.c.l.bf16 %v16_v59  ;;  %v4146_v23 = vperm.slane %v319_v53, 2  ;;  %v4150_v24 = vpack.c.bf16 %v1797_v3, %v1796_v62  ;;  %v1888_v39 = vld [vmem:[%s7637_s0 + $0x370] sm:$0xff]  ;;  %v1889_v44 = vld [vmem:[%s7637_s0 + $0x378] sm:$0xff] }
  0x12   :  { %2389 = vmatpush.bf16.msra.mxu2 %v4039_v35  ;;  %v1778_v12 = vld [vmem:[%s7637_s0] sm:$0xff]  ;;  %v1779_v13 = vld [vmem:[%s7637_s0 + $0x8] sm:$0xff]  ;;  %v339_v18 = vunpack.c.h.bf16 %v24_v1  ;;  %v338_v22 = vunpack.c.l.bf16 %v24_v1  ;;  %v4152_v27 = vpack.c.bf16 %v1813_v5, %v1812_v4  ;;  %v4161_v30 = vmul.f32 %v4144_v19, %v324_v2  ;;  %v1856_v47 = vld [vmem:[%s7637_s0 + $0x270] sm:$0xff] }
  0x13   :  { %v1794_v28 = vld [vmem:[%s7637_s0 + $0x80] sm:$0xff]  ;;  %v1795_v29 = vld [vmem:[%s7637_s0 + $0x88] sm:$0xff]  ;;  %v2006_v31 = vpack.c.bf16 %v1779_v13, %v1778_v12  ;;  %v923_v36 = vmul.f32 %v4132_v6, %v321_v63  ;;  %v938_v37 = vmul.f32 %v4132_v6, %v336_v0  ;;  %v1373_v40 = vmul.f32 %v4132_v6, %v771_v9  ;;  %v1857_v48 = vld [vmem:[%s7637_s0 + $0x278] sm:$0xff] }
  0x14   :  { %2182 = vmatpush.bf16.msra.mxu0 %v2009_v42  ;;  %3804 = vmatpush.bf16.msra.mxu3 %v2009_v42  ;;  %v1810_v32 = vld [vmem:[%s7637_s0 + $0x100] sm:$0xff]  ;;  %v1811_v33 = vld [vmem:[%s7637_s0 + $0x108] sm:$0xff]  ;;  %v4172_v38 = vmul.f32 %v4144_v19, %v339_v18  ;;  %v1388_v41 = vmul.f32 %v4132_v6, %v786_v10  ;;  %v924_v42 = vmul.f32 %v4142_v15, %v322_v11  ;;  %v1872_v59 = vld [vmem:[%s7637_s0 + $0x2f0] sm:$0xff] }
  0x15   :  { %2286 = vmatpush.bf16.msra.mxu1 %v4067_v45  ;;  %v939_v43 = vmul.f32 %v4142_v15, %v337_v14  ;;  %v925_v49 = vmul.f32 %v4146_v23, %v323_v21  ;;  %v940_v50 = vmul.f32 %v4146_v23, %v338_v22  ;;  %v4196_v52 = vpack.c.bf16 %v1795_v29, %v1794_v28  ;;  %v1873_v61 = vld [vmem:[%s7637_s0 + $0x2f8] sm:$0xff]  ;;  %v1886_v0 = vld [vmem:[%s7637_s0 + $0x360] sm:$0xff]  ;;  %v1887_v1 = vld [vmem:[%s7637_s0 + $0x368] sm:$0xff] }
  0x16   :  { %2390 = vmatpush.bf16.msra.mxu2 %v4069_v46  ;;  %v1496_v51 = vpack.c.bf16 %v4172_v38, %v4161_v30  ;;  %v4198_v53 = vpack.c.bf16 %v1811_v33, %v1810_v32  ;;  %v2045_v58 = vpack.c.bf16 %v1857_v48, %v1856_v47  ;;  %v1493_v62 = vpack.c.bf16 %v938_v37, %v923_v36  ;;  %v31_v5 = vld [vmem:[%s7638_s2 + $0x78] sm:$0xff]  ;;  %v4223_v11 = vld [vmem:[%s7638_s2 + $0x780] sm:$0xff]  ;;  %v1855_v14 = vld [vmem:[%s7637_s0 + $0x268] sm:$0xff] }
  0x17   :  { %v1718_v63 = vpack.c.bf16 %v1388_v41, %v1373_v40  ;;  %v1494_v2 = vpack.c.bf16 %v939_v43, %v924_v42  ;;  %v1495_v3 = vpack.c.bf16 %v940_v50, %v925_v49  ;;  %v2053_v4 = vpack.c.bf16 %v1873_v61, %v1872_v59  ;;  %v39_v10 = vld [vmem:[%s7638_s2 + $0xb4] sm:$0xff]  ;;  %v4228_v12 = vld [vmem:[%s7638_s2 + $0x7bc] sm:$0xff]  ;;  %v1871_v28 = vld [vmem:[%s7637_s0 + $0x2e8] sm:$0xff] }
  0x18   :  { %2183 = vmatpush.bf16.msra.mxu0 %v2008_v56  ;;  %3805 = vmatpush.bf16.msra.mxu3 %v2008_v56  ;;  %v2061_v56 = vpack.c.bf16 %v1889_v44, %v1888_v39  ;;  %v2060_v9 = vpack.c.bf16 %v1887_v1, %v1886_v0  ;;  %v1854_v13 = vld [vmem:[%s7637_s0 + $0x260] sm:$0xff]  ;;  %v366_v32 = vunpack.c.l.bf16 %v39_v10  ;;  %v801_v33 = vunpack.c.l.bf16 %v4223_v11  ;;  %v47_v61 = vld [vmem:[%s7638_s2 + $0xf0] sm:$0xff]  ;;  %v1885_v0 = vld [vmem:[%s7637_s0 + $0x358] sm:$0xff] }
  0x19   :  { %2287 = vmatpush.bf16.msra.mxu1 %v4102_v57  ;;  %v1870_v18 = vld [vmem:[%s7637_s0 + $0x2e0] sm:$0xff]  ;;  %v2044_v22 = vpack.c.bf16 %v1855_v14, %v1854_v13  ;;  %v816_v36 = vunpack.c.l.bf16 %v4228_v12  ;;  %v352_v37 = vunpack.c.h.bf16 %v31_v5  ;;  %v367_v39 = vunpack.c.h.bf16 %v39_v10  ;;  %v1852_v1 = vld [vmem:[%s7637_s0 + $0x250] sm:$0xff] }
  0x1a   :  { %2391 = vmatpush.bf16.msra.mxu2 %v4112_v60  ;;  %v4247_v21 = vld [vmem:[%s7638_s2 + $0xbc] sm:$0xff]  ;;  %v2052_v29 = vpack.c.bf16 %v1871_v28, %v1870_v18  ;;  %v968_v42 = vmul.f32 %v4132_v6, %v366_v32  ;;  %v1403_v43 = vmul.f32 %v4132_v6, %v801_v33  ;;  %v381_v10 = vunpack.c.l.bf16 %v47_v61 }
  0x1b   :  { %v368_v41 = vunpack.c.l.bf16 %v4247_v21  ;;  %v1418_v44 = vmul.f32 %v4132_v6, %v816_v36  ;;  %v954_v47 = vmul.f32 %v4142_v15, %v352_v37  ;;  %v969_v48 = vmul.f32 %v4142_v15, %v367_v39  ;;  %v232_v30 = vld [vmem:[%s7638_s2 + $0x65c] sm:$0xff] }
  0x1c   :  { %2184 = vmatpush.bf16.msra.mxu0 %v2007_v20  ;;  %3806 = vmatpush.bf16.msra.mxu3 %v2007_v20  ;;  %v4242_v20 = vld [vmem:[%s7638_s2 + $0x80] sm:$0xff]  ;;  %v787_v32 = vunpack.c.h.bf16 %v4100_v55  ;;  %v983_v33 = vmul.f32 %v4132_v6, %v381_v10 }
  0x1d   :  { %2288 = vmatpush.bf16.msra.mxu1 %v4150_v24  ;;  %v353_v40 = vunpack.c.l.bf16 %v4242_v20  ;;  %v970_v50 = vmul.f32 %v4146_v23, %v368_v41 }
  0x1e   :  { %2392 = vmatpush.bf16.msra.mxu2 %v4152_v27 }
  0x1f   :  { %v955_v49 = vmul.f32 %v4146_v23, %v353_v40 }
  0x20   :  { %2185 = vmatpush.bf16.msra.mxu0 %v2006_v31  ;;  %3807 = vmatpush.bf16.msra.mxu3 %v2006_v31  ;;  %v351_v31 = vunpack.c.l.bf16 %v31_v5  ;;  %v1853_v5 = vld [vmem:[%s7637_s0 + $0x258] sm:$0xff] }
  0x21   :  { %2289 = vmatpush.bf16.msra.mxu1 %v4196_v52  ;;  %v1510_v59 = vpack.c.bf16 %v970_v50, %v955_v49  ;;  %v71_v49 = vld [vmem:[%s7638_s2 + $0x1a4] sm:$0xff]  ;;  %v4342_v50 = vld [vmem:[%s7638_s2 + $0x870] sm:$0xff] }
  0x22   :  { %2393 = vmatpush.bf16.msra.mxu2 %v4198_v53 }
  0x23   :  { %2186 = vmatmul.bf16.vlgmr.msra.gmra.mxu0 %v1493_v62  ;;  %2261 = vmatmul.bf16.vlgmr.msra.gmra.mxu3 %v1718_v63  ;;  %v55_v62 = vld [vmem:[%s7638_s2 + $0x12c] sm:$0xff]  ;;  %v4282_v63 = vld [vmem:[%s7638_s2 + $0x834] sm:$0xff] }
  0x24   :  { %2594 = vmatpush.bf16.msrb.mxu0 %v2045_v58  ;;  %2290 = vmatmul.bf16.vlgmr.msra.gmra.mxu1 %v1494_v2  ;;  %v1509_v58 = vpack.c.bf16 %v969_v48, %v954_v47  ;;  %v4296_v2 = vld [vmem:[%s7638_s2 + $0xf8] sm:$0xff]  ;;  %v396_v13 = vunpack.c.l.bf16 %v55_v62  ;;  %v846_v18 = vunpack.c.l.bf16 %v4282_v63  ;;  %v397_v28 = vunpack.c.h.bf16 %v55_v62 }
  0x25   :  { %2394 = vmatmul.bf16.vlgmr.msra.gmra.mxu2 %v1495_v3  ;;  %2698 = vmatpush.bf16.msrb.mxu1 %v2053_v4  ;;  %v4301_v3 = vld [vmem:[%s7638_s2 + $0x134] sm:$0xff]  ;;  %v4327_v47 = vmul.f32 %v4142_v15, %v787_v32  ;;  %v426_v62 = vunpack.c.l.bf16 %v71_v49 }
  0x26   :  { %2802 = vmatpush.bf16.msrb.mxu2 %v2061_v56  ;;  %3808 = vmatpush.bf16.msrb.mxu3 %v3965_v7  ;;  %v953_v7 = vmul.f32 %v4132_v6, %v351_v31  ;;  %v398_v31 = vunpack.c.l.bf16 %v4301_v3  ;;  %v998_v36 = vmul.f32 %v4132_v6, %v396_v13  ;;  %v1448_v39 = vmul.f32 %v4132_v6, %v846_v18 }
  0x27   :  { %v999_v41 = vmul.f32 %v4142_v15, %v397_v28  ;;  %v1028_v13 = vmul.f32 %v4132_v6, %v426_v62 }
  0x28   :  { %2595 = vmatpush.bf16.msrb.mxu0 %v2044_v22  ;;  %v1508_v56 = vpack.c.bf16 %v968_v42, %v953_v7  ;;  %v382_v22 = vunpack.c.h.bf16 %v47_v61 }
  0x29   :  { %2699 = vmatpush.bf16.msrb.mxu1 %v2052_v29  ;;  %v383_v29 = vunpack.c.l.bf16 %v4296_v2 }
  0x2a   :  { %2803 = vmatpush.bf16.msrb.mxu2 %v2060_v9  ;;  %3809 = vmatpush.bf16.msrb.mxu3 %v3989_v16  ;;  %v1733_v16 = vpack.c.bf16 %v1418_v44, %v1403_v43  ;;  %v2043_v9 = vpack.c.bf16 %v1853_v5, %v1852_v1  ;;  %v984_v40 = vmul.f32 %v4142_v15, %v382_v22 }
  0x2b   :  { %v985_v7 = vmul.f32 %v4146_v23, %v383_v29 }
  0x2c   :  { %2596 = vmatpush.bf16.msrb.mxu0 %v2043_v9  ;;  %v1524_v42 = vpack.c.bf16 %v999_v41, %v984_v40  ;;  %v79_v40 = vld [vmem:[%s7638_s2 + $0x1e0] sm:$0xff] }
  0x2d   :  { %v4405_v41 = vld [vmem:[%s7638_s2 + $0x224] sm:$0xff] }
  0x2e   :  { %3810 = vmatpush.bf16.msrb.mxu3 %v4013_v25  ;;  %v4277_v25 = vld [vmem:[%s7638_s2 + $0x7f8] sm:$0xff] }
  0x2f   :  { %v831_v14 = vunpack.c.l.bf16 %v4277_v25 }
  0x31   :  { %v1433_v37 = vmul.f32 %v4132_v6, %v831_v14 }
  0x32   :  { %3811 = vmatpush.bf16.msrb.mxu3 %v4037_v34  ;;  %v1884_v34 = vld [vmem:[%s7637_s0 + $0x350] sm:$0xff] }
  0x33   :  { %2191 = vmatmul.bf16.gmra.mxu0 %v1508_v56  ;;  %2266 = vmatmul.bf16.gmra.mxu3 %v1733_v16  ;;  %v2059_v4 = vpack.c.bf16 %v1885_v0, %v1884_v34  ;;  %v1748_v55 = vpack.c.bf16 %v1448_v39, %v1433_v37  ;;  %v1869_v56 = vld [vmem:[%s7637_s0 + $0x2d8] sm:$0xff]  ;;  %v4358_v16 = vld [vmem:[%s7638_s2 + $0x170] sm:$0xff]  ;;  %v861_v34 = vunpack.c.l.bf16 %v4342_v50 }
  0x34   :  { %2295 = vmatmul.bf16.gmra.mxu1 %v1509_v58  ;;  %v4363_v58 = vld [vmem:[%s7638_s2 + $0x1ac] sm:$0xff]  ;;  %v413_v5 = vunpack.c.l.bf16 %v4358_v16 }
  0x35   :  { %2399 = vmatmul.bf16.gmra.mxu2 %v1510_v59  ;;  %v428_v9 = vunpack.c.l.bf16 %v4363_v58 }
  0x36   :  { %3812 = vmatpush.bf16.msrb.mxu3 %v4067_v45  ;;  %2804 = vmatpush.bf16.msrb.mxu2 %v2059_v4  ;;  %v772_v45 = vunpack.c.h.bf16 %v4095_v54  ;;  %v1523_v54 = vpack.c.bf16 %v998_v36, %v983_v33  ;;  %v427_v4 = vunpack.c.h.bf16 %v71_v49  ;;  %v1015_v28 = vmul.f32 %v4146_v23, %v413_v5 }
  0x37   :  { %v1030_v29 = vmul.f32 %v4146_v23, %v428_v9 }
  0x38   :  { %v4324_v44 = vmul.f32 %v4142_v15, %v772_v45  ;;  %v1029_v22 = vmul.f32 %v4142_v15, %v427_v4 }
  0x39   :  { %v1540_v36 = vpack.c.bf16 %v1030_v29, %v1015_v28 }
  0x3a   :  { %3813 = vmatpush.bf16.msrb.mxu3 %v4102_v57  ;;  %v1000_v57 = vmul.f32 %v4146_v23, %v398_v31  ;;  %v1719_v48 = vpack.c.bf16 %v4327_v47, %v4324_v44  ;;  %v802_v31 = vunpack.c.h.bf16 %v4223_v11  ;;  %v4463_v44 = vld [vmem:[%s7638_s2 + $0x29c] sm:$0xff] }
  0x3c   :  { %v1525_v43 = vpack.c.bf16 %v1000_v57, %v985_v7  ;;  %v4383_v37 = vmul.f32 %v4142_v15, %v802_v31  ;;  %v1883_v7 = vld [vmem:[%s7637_s0 + $0x348] sm:$0xff]  ;;  %v1850_v57 = vld [vmem:[%s7637_s0 + $0x240] sm:$0xff] }
  0x3e   :  { %3814 = vmatpush.bf16.msrb.mxu3 %v4150_v24  ;;  %v63_v24 = vld [vmem:[%s7638_s2 + $0x168] sm:$0xff] }
  0x3f   :  { %v411_v61 = vunpack.c.l.bf16 %v63_v24  ;;  %v412_v1 = vunpack.c.h.bf16 %v63_v24 }
  0x41   :  { %v1013_v10 = vmul.f32 %v4132_v6, %v411_v61  ;;  %v1014_v18 = vmul.f32 %v4142_v15, %v412_v1 }
  0x42   :  { %3815 = vmatpush.bf16.msrb.mxu3 %v4196_v52  ;;  %v1868_v52 = vld [vmem:[%s7637_s0 + $0x2d0] sm:$0xff] }
  0x43   :  { %2196 = vmatmul.bf16.gmra.mxu0 %v1523_v54  ;;  %2271 = vmatmul.bf16.gmra.mxu3 %v1748_v55  ;;  %v2051_v59 = vpack.c.bf16 %v1869_v56, %v1868_v52  ;;  %v1538_v45 = vpack.c.bf16 %v1028_v13, %v1013_v10  ;;  %v1539_v33 = vpack.c.bf16 %v1029_v22, %v1014_v18  ;;  %v1851_v55 = vld [vmem:[%s7637_s0 + $0x248] sm:$0xff]  ;;  %v441_v52 = vunpack.c.l.bf16 %v79_v40 }
  0x44   :  { %2300 = vmatmul.bf16.gmra.mxu1 %v1524_v42  ;;  %v1866_v42 = vld [vmem:[%s7637_s0 + $0x2c0] sm:$0xff]  ;;  %v2042_v24 = vpack.c.bf16 %v1851_v55, %v1850_v57  ;;  %v832_v10 = vunpack.c.h.bf16 %v4277_v25  ;;  %v847_v13 = vunpack.c.h.bf16 %v4282_v63  ;;  %v103_v25 = vld [vmem:[%s7638_s2 + $0x294] sm:$0xff] }
  0x45   :  { %2404 = vmatmul.bf16.gmra.mxu2 %v1525_v43  ;;  %2700 = vmatpush.bf16.msrb.mxu1 %v2051_v59  ;;  %v1867_v43 = vld [vmem:[%s7637_s0 + $0x2c8] sm:$0xff]  ;;  %v442_v59 = vunpack.c.h.bf16 %v79_v40  ;;  %v4458_v63 = vld [vmem:[%s7638_s2 + $0x260] sm:$0xff]  ;;  %v487_v31 = vunpack.c.h.bf16 %v103_v25 }
  0x46   :  { %3816 = vmatpush.bf16.msra.mxu3 %v3967_v8  ;;  %v4347_v8 = vld [vmem:[%s7638_s2 + $0x8ac] sm:$0xff]  ;;  %v2050_v49 = vpack.c.bf16 %v1867_v43, %v1866_v42  ;;  %2597 = vmatpush.bf16.msrb.mxu0 %v2042_v24  ;;  %v4439_v18 = vmul.f32 %v4142_v15, %v832_v10  ;;  %v4442_v22 = vmul.f32 %v4142_v15, %v847_v13 }
  0x47   :  { %v876_v0 = vunpack.c.l.bf16 %v4347_v8  ;;  %v1044_v4 = vmul.f32 %v4142_v15, %v442_v59  ;;  %v1089_v40 = vmul.f32 %v4142_v15, %v487_v31  ;;  %v877_v57 = vunpack.c.h.bf16 %v4347_v8  ;;  %v4489_v8 = vld [vmem:[%s7638_s2 + $0x2d8] sm:$0xff] }
  0x48   :  { %v1749_v28 = vpack.c.bf16 %v4442_v22, %v4439_v18  ;;  %v503_v10 = vunpack.c.l.bf16 %v4489_v8 }
  0x49   :  { %v1478_v14 = vmul.f32 %v4132_v6, %v876_v0  ;;  %2701 = vmatpush.bf16.msrb.mxu1 %v2050_v49  ;;  %v1043_v0 = vmul.f32 %v4132_v6, %v441_v52  ;;  %v1479_v24 = vmul.f32 %v4142_v15, %v877_v57  ;;  %v111_v49 = vld [vmem:[%s7638_s2 + $0x2d0] sm:$0xff] }
  0x4a   :  { %3817 = vmatpush.bf16.msra.mxu3 %v3991_v17  ;;  %v1463_v17 = vmul.f32 %v4132_v6, %v861_v34  ;;  %v458_v34 = vunpack.c.l.bf16 %v4405_v41 }
  0x4c   :  { %v1763_v32 = vpack.c.bf16 %v1478_v14, %v1463_v17  ;;  %v1060_v9 = vmul.f32 %v4146_v23, %v458_v34  ;;  %v1865_v34 = vld [vmem:[%s7637_s0 + $0x2b8] sm:$0xff] }
  0x4e   :  { %3818 = vmatpush.bf16.msra.mxu3 %v4015_v26  ;;  %v817_v26 = vunpack.c.h.bf16 %v4228_v12  ;;  %v4400_v12 = vld [vmem:[%s7638_s2 + $0x1e8] sm:$0xff] }
  0x4f   :  { %v443_v62 = vunpack.c.l.bf16 %v4400_v12 }
  0x50   :  { %v4386_v39 = vmul.f32 %v4142_v15, %v817_v26  ;;  %v473_v26 = vunpack.c.l.bf16 %v4458_v63 }
  0x51   :  { %v1045_v5 = vmul.f32 %v4146_v23, %v443_v62  ;;  %v1864_v62 = vld [vmem:[%s7637_s0 + $0x2b0] sm:$0xff] }
  0x52   :  { %3819 = vmatpush.bf16.msra.mxu3 %v4039_v35  ;;  %v1734_v11 = vpack.c.bf16 %v4386_v39, %v4383_v37  ;;  %v87_v35 = vld [vmem:[%s7638_s2 + $0x21c] sm:$0xff]  ;;  %v1880_v37 = vld [vmem:[%s7637_s0 + $0x330] sm:$0xff] }
  0x53   :  { %2201 = vmatmul.bf16.gmra.mxu0 %v1538_v45  ;;  %2276 = vmatmul.bf16.gmra.mxu3 %v1763_v32  ;;  %v456_v56 = vunpack.c.l.bf16 %v87_v35  ;;  %v457_v61 = vunpack.c.h.bf16 %v87_v35  ;;  %v1555_v14 = vpack.c.bf16 %v1060_v9, %v1045_v5  ;;  %v488_v45 = vunpack.c.l.bf16 %v4463_v44  ;;  %v1881_v39 = vld [vmem:[%s7637_s0 + $0x338] sm:$0xff] }
  0x54   :  { %2305 = vmatmul.bf16.gmra.mxu1 %v1539_v33  ;;  %v1075_v35 = vmul.f32 %v4146_v23, %v473_v26  ;;  %v2057_v59 = vpack.c.bf16 %v1881_v39, %v1880_v37  ;;  %v502_v5 = vunpack.c.h.bf16 %v111_v49  ;;  %v127_v26 = vld [vmem:[%s7638_s2 + $0x348] sm:$0xff]  ;;  %v151_v37 = vld [vmem:[%s7638_s2 + $0x3fc] sm:$0xff]  ;;  %v256_v39 = vld [vmem:[%s7638_s2 + $0x710] sm:$0xff] }
  0x55   :  { %2409 = vmatmul.bf16.gmra.mxu2 %v1540_v36  ;;  %v1058_v1 = vmul.f32 %v4132_v6, %v456_v56  ;;  %v4494_v56 = vld [vmem:[%s7638_s2 + $0x314] sm:$0xff]  ;;  %v531_v18 = vunpack.c.l.bf16 %v127_v26 }
  0x56   :  { %3820 = vmatpush.bf16.msra.mxu3 %v4069_v46  ;;  %v1882_v46 = vld [vmem:[%s7637_s0 + $0x340] sm:$0xff]  ;;  %v518_v13 = vunpack.c.l.bf16 %v4494_v56 }
  0x57   :  { %v2058_v54 = vpack.c.bf16 %v1883_v7, %v1882_v46  ;;  %v1553_v17 = vpack.c.bf16 %v1058_v1, %v1043_v0  ;;  %v1090_v46 = vmul.f32 %v4146_v23, %v488_v45  ;;  %v862_v7 = vunpack.c.h.bf16 %v4342_v50  ;;  %v119_v50 = vld [vmem:[%s7638_s2 + $0x30c] sm:$0xff]  ;;  %v135_v45 = vld [vmem:[%s7638_s2 + $0x384] sm:$0xff] }
  0x58   :  { %v2049_v1 = vpack.c.bf16 %v1865_v34, %v1864_v62  ;;  %v517_v9 = vunpack.c.h.bf16 %v119_v50  ;;  %v546_v22 = vunpack.c.l.bf16 %v135_v45  ;;  %v576_v62 = vunpack.c.l.bf16 %v151_v37 }
  0x59   :  { %2805 = vmatpush.bf16.msrb.mxu2 %v2058_v54  ;;  %v1570_v42 = vpack.c.bf16 %v1090_v46, %v1075_v35  ;;  %v1464_v43 = vmul.f32 %v4142_v15, %v862_v7  ;;  %v1133_v46 = vmul.f32 %v4132_v6, %v531_v18 }
  0x5a   :  { %3821 = vmatpush.bf16.msra.mxu3 %v4112_v60  ;;  %v1059_v60 = vmul.f32 %v4142_v15, %v457_v61  ;;  %v1849_v61 = vld [vmem:[%s7637_s0 + $0x238] sm:$0xff]  ;;  %2702 = vmatpush.bf16.msrb.mxu1 %v2049_v1  ;;  %v1148_v7 = vmul.f32 %v4132_v6, %v546_v22  ;;  %v773_v1 = vunpack.c.l.bf16 %v256_v39 }
  0x5b   :  { %v1764_v52 = vpack.c.bf16 %v1479_v24, %v1464_v43 }
  0x5c   :  { %v1598_v43 = vpack.c.bf16 %v1148_v7, %v1133_v46 }
  0x5d   :  { %2806 = vmatpush.bf16.msrb.mxu2 %v2057_v59  ;;  %v152_v59 = vld [vmem:[%s7638_s2 + $0x404] sm:$0xff] }
  0x5e   :  { %3822 = vmatpush.bf16.msra.mxu3 %v4152_v27  ;;  %v1554_v27 = vpack.c.bf16 %v1059_v60, %v1044_v4  ;;  %v501_v4 = vunpack.c.l.bf16 %v111_v49  ;;  %v516_v60 = vunpack.c.l.bf16 %v119_v50  ;;  %v143_v50 = vld [vmem:[%s7638_s2 + $0x3c0] sm:$0xff] }
  0x5f   :  { %v562_v34 = vunpack.c.h.bf16 %v143_v50 }
  0x62   :  { %3823 = vmatpush.bf16.msra.mxu3 %v4198_v53  ;;  %v95_v53 = vld [vmem:[%s7638_s2 + $0x258] sm:$0xff] }
  0x63   :  { %2206 = vmatmul.bf16.gmra.mxu0 %v1553_v17  ;;  %2365 = vmatmul.bf16.vlgmr.msrb.gmra.mxu3 %v1719_v48  ;;  %v471_v47 = vunpack.c.l.bf16 %v95_v53  ;;  %v486_v48 = vunpack.c.l.bf16 %v103_v25  ;;  %v472_v29 = vunpack.c.h.bf16 %v95_v53  ;;  %v1103_v17 = vmul.f32 %v4132_v6, %v501_v4 }
  0x64   :  { %2310 = vmatmul.bf16.gmra.mxu1 %v1554_v27  ;;  %v1118_v27 = vmul.f32 %v4132_v6, %v516_v60  ;;  %v1119_v53 = vmul.f32 %v4142_v15, %v517_v9  ;;  %v1105_v25 = vmul.f32 %v4146_v23, %v503_v10  ;;  %v1178_v10 = vmul.f32 %v4132_v6, %v576_v62 }
  0x65   :  { %2414 = vmatmul.bf16.gmra.mxu2 %v1555_v14  ;;  %v1073_v32 = vmul.f32 %v4132_v6, %v471_v47  ;;  %v1088_v33 = vmul.f32 %v4132_v6, %v486_v48  ;;  %v1074_v36 = vmul.f32 %v4142_v15, %v472_v29  ;;  %v1104_v14 = vmul.f32 %v4142_v15, %v502_v5 }
  0x66   :  { %v1120_v47 = vmul.f32 %v4146_v23, %v518_v13  ;;  %v1583_v48 = vpack.c.bf16 %v1118_v27, %v1103_v17  ;;  %v578_v5 = vunpack.c.l.bf16 %v152_v59  ;;  %v1164_v13 = vmul.f32 %v4142_v15, %v562_v34  ;;  %v1878_v17 = vld [vmem:[%s7637_s0 + $0x320] sm:$0xff]  ;;  %v1879_v27 = vld [vmem:[%s7637_s0 + $0x328] sm:$0xff] }
  0x67   :  { %v1568_v54 = vpack.c.bf16 %v1088_v33, %v1073_v32  ;;  %v1569_v55 = vpack.c.bf16 %v1089_v40, %v1074_v36  ;;  %v1584_v29 = vpack.c.bf16 %v1119_v53, %v1104_v14  ;;  %v128_v32 = vld [vmem:[%s7638_s2 + $0x350] sm:$0xff]  ;;  %v547_v36 = vunpack.c.h.bf16 %v135_v45  ;;  %v1846_v14 = vld [vmem:[%s7637_s0 + $0x220] sm:$0xff] }
  0x68   :  { %v1585_v31 = vpack.c.bf16 %v1120_v47, %v1105_v25  ;;  %v136_v33 = vld [vmem:[%s7638_s2 + $0x38c] sm:$0xff]  ;;  %v533_v40 = vunpack.c.l.bf16 %v128_v32  ;;  %v1375_v25 = vmul.f32 %v4146_v23, %v773_v1  ;;  %v1180_v32 = vmul.f32 %v4146_v23, %v578_v5  ;;  %v1838_v59 = vld [vmem:[%s7637_s0 + $0x1e0] sm:$0xff] }
  0x69   :  { %v548_v35 = vunpack.c.l.bf16 %v136_v33 }
  0x73   :  { %2211 = vmatmul.bf16.gmra.mxu0 %v1568_v54  ;;  %2370 = vmatmul.bf16.gmra.mxu3 %v1734_v11  ;;  %v1848_v11 = vld [vmem:[%s7637_s0 + $0x230] sm:$0xff]  ;;  %v1149_v54 = vmul.f32 %v4142_v15, %v547_v36 }
  0x74   :  { %2315 = vmatmul.bf16.gmra.mxu1 %v1569_v55  ;;  %v2041_v0 = vpack.c.bf16 %v1849_v61, %v1848_v11  ;;  %v1135_v55 = vmul.f32 %v4146_v23, %v533_v40  ;;  %v264_v11 = vld [vmem:[%s7638_s2 + $0x74c] sm:$0xff]  ;;  %v561_v61 = vunpack.c.l.bf16 %v143_v50  ;;  %v160_v50 = vld [vmem:[%s7638_s2 + $0x440] sm:$0xff] }
  0x75   :  { %2419 = vmatmul.bf16.gmra.mxu2 %v1570_v42  ;;  %v1150_v42 = vmul.f32 %v4146_v23, %v548_v35  ;;  %v788_v4 = vunpack.c.l.bf16 %v264_v11 }
  0x76   :  { %2598 = vmatpush.bf16.msrb.mxu0 %v2041_v0  ;;  %v577_v0 = vunpack.c.h.bf16 %v151_v37  ;;  %v1163_v9 = vmul.f32 %v4132_v6, %v561_v61  ;;  %v168_v37 = vld [vmem:[%s7638_s2 + $0x47c] sm:$0xff]  ;;  %v1839_v61 = vld [vmem:[%s7637_s0 + $0x1e8] sm:$0xff] }
  0x77   :  { %v1600_v49 = vpack.c.bf16 %v1150_v42, %v1135_v55  ;;  %v1390_v47 = vmul.f32 %v4146_v23, %v788_v4  ;;  %v159_v55 = vld [vmem:[%s7638_s2 + $0x438] sm:$0xff]  ;;  %v2036_v4 = vpack.c.bf16 %v1839_v61, %v1838_v59 }
  0x78   :  { %v1179_v53 = vmul.f32 %v4142_v15, %v577_v0  ;;  %v1613_v22 = vpack.c.bf16 %v1178_v10, %v1163_v9  ;;  %v167_v42 = vld [vmem:[%s7638_s2 + $0x474] sm:$0xff]  ;;  %v591_v11 = vunpack.c.l.bf16 %v159_v55  ;;  %v592_v34 = vunpack.c.h.bf16 %v159_v55 }
  0x79   :  { %v607_v9 = vunpack.c.h.bf16 %v167_v42  ;;  %v593_v10 = vunpack.c.l.bf16 %v160_v50  ;;  %v1833_v50 = vld [vmem:[%s7637_s0 + $0x1b8] sm:$0xff] }
  0x7a   :  { %v1614_v40 = vpack.c.bf16 %v1179_v53, %v1164_v13  ;;  %v608_v13 = vunpack.c.l.bf16 %v168_v37  ;;  %v1836_v53 = vld [vmem:[%s7637_s0 + $0x1d0] sm:$0xff]  ;;  %v176_v61 = vld [vmem:[%s7638_s2 + $0x4b8] sm:$0xff] }
  0x7b   :  { %v183_v37 = vld [vmem:[%s7638_s2 + $0x4ec] sm:$0xff] }
  0x83   :  { %2216 = vmatmul.bf16.gmra.mxu0 %v1583_v48  ;;  %2375 = vmatmul.bf16.gmra.mxu3 %v1749_v28  ;;  %v532_v28 = vunpack.c.h.bf16 %v127_v26  ;;  %v2056_v48 = vpack.c.bf16 %v1879_v27, %v1878_v17  ;;  %v1863_v26 = vld [vmem:[%s7637_s0 + $0x2a8] sm:$0xff] }
  0x84   :  { %2320 = vmatmul.bf16.gmra.mxu1 %v1584_v29  ;;  %v1847_v29 = vld [vmem:[%s7637_s0 + $0x228] sm:$0xff] }
  0x85   :  { %2424 = vmatmul.bf16.gmra.mxu2 %v1585_v31  ;;  %v1134_v57 = vmul.f32 %v4142_v15, %v532_v28  ;;  %v1862_v31 = vld [vmem:[%s7637_s0 + $0x2a0] sm:$0xff]  ;;  %v2040_v33 = vpack.c.bf16 %v1847_v29, %v1846_v14  ;;  %v1720_v28 = vpack.c.bf16 %v1390_v47, %v1375_v25  ;;  %v1193_v14 = vmul.f32 %v4132_v6, %v591_v11  ;;  %v1837_v25 = vld [vmem:[%s7637_s0 + $0x1d8] sm:$0xff] }
  0x86   :  { %v2048_v18 = vpack.c.bf16 %v1863_v26, %v1862_v31  ;;  %2807 = vmatpush.bf16.msrb.mxu2 %v2056_v48  ;;  %v2035_v31 = vpack.c.bf16 %v1837_v25, %v1836_v53  ;;  %v1194_v26 = vmul.f32 %v4142_v15, %v592_v34  ;;  %v288_v11 = vld [vmem:[%s7638_s2 + $0x800] sm:$0xff] }
  0x87   :  { %v1599_v24 = vpack.c.bf16 %v1149_v54, %v1134_v57  ;;  %2599 = vmatpush.bf16.msrb.mxu0 %v2040_v33  ;;  %v1840_v57 = vld [vmem:[%s7637_s0 + $0x1f0] sm:$0xff]  ;;  %v1841_v54 = vld [vmem:[%s7637_s0 + $0x1f8] sm:$0xff]  ;;  %v1210_v33 = vmul.f32 %v4146_v23, %v608_v13 }
  0x88   :  { %2703 = vmatpush.bf16.msrb.mxu1 %v2048_v18 }
  0x93   :  { %2221 = vmatmul.bf16.gmra.mxu0 %v1598_v43  ;;  %2380 = vmatmul.bf16.gmra.mxu3 %v1764_v52  ;;  %v144_v52 = vld [vmem:[%s7638_s2 + $0x3c8] sm:$0xff]  ;;  %v2037_v43 = vpack.c.bf16 %v1841_v54, %v1840_v57 }
  0x94   :  { %2325 = vmatmul.bf16.gmra.mxu1 %v1599_v24  ;;  %v563_v60 = vunpack.c.l.bf16 %v144_v52  ;;  %v272_v24 = vld [vmem:[%s7638_s2 + $0x788] sm:$0xff]  ;;  %v606_v52 = vunpack.c.l.bf16 %v167_v42 }
  0x95   :  { %2429 = vmatmul.bf16.gmra.mxu2 %v1600_v49  ;;  %v280_v49 = vld [vmem:[%s7638_s2 + $0x7c4] sm:$0xff]  ;;  %2490 = vmatpush.bf16.msrb.mxu3 %v2037_v43  ;;  %v803_v0 = vunpack.c.l.bf16 %v272_v24  ;;  %v175_v24 = vld [vmem:[%s7638_s2 + $0x4b0] sm:$0xff] }
  0x96   :  { %v1165_v45 = vmul.f32 %v4146_v23, %v563_v60  ;;  %v818_v1 = vunpack.c.l.bf16 %v280_v49  ;;  %v1208_v47 = vmul.f32 %v4132_v6, %v606_v52  ;;  %v1832_v49 = vld [vmem:[%s7637_s0 + $0x1b0] sm:$0xff]  ;;  %v296_v52 = vld [vmem:[%s7638_s2 + $0x83c] sm:$0xff]  ;;  %v621_v59 = vunpack.c.l.bf16 %v175_v24 }
  0x97   :  { %v1405_v48 = vmul.f32 %v4146_v23, %v803_v0  ;;  %v2033_v34 = vpack.c.bf16 %v1833_v50, %v1832_v49 }
  0x98   :  { %v1615_v35 = vpack.c.bf16 %v1180_v32, %v1165_v45  ;;  %v1420_v29 = vmul.f32 %v4146_v23, %v818_v1  ;;  %v1209_v45 = vmul.f32 %v4142_v15, %v607_v9  ;;  %v1195_v32 = vmul.f32 %v4146_v23, %v593_v10  ;;  %v1830_v9 = vld [vmem:[%s7637_s0 + $0x1a0] sm:$0xff]  ;;  %v1831_v10 = vld [vmem:[%s7637_s0 + $0x1a8] sm:$0xff] }
  0x99   :  { %2491 = vmatpush.bf16.msrb.mxu3 %v2036_v4  ;;  %v636_v1 = vunpack.c.l.bf16 %v183_v37  ;;  %v622_v4 = vunpack.c.h.bf16 %v175_v24  ;;  %v1829_v24 = vld [vmem:[%s7637_s0 + $0x198] sm:$0xff] }
  0x9a   :  { %v1629_v54 = vpack.c.bf16 %v1209_v45, %v1194_v26  ;;  %v1630_v55 = vpack.c.bf16 %v1210_v33, %v1195_v32  ;;  %v1223_v45 = vmul.f32 %v4132_v6, %v621_v59  ;;  %v1826_v59 = vld [vmem:[%s7637_s0 + $0x180] sm:$0xff] }
  0x9d   :  { %2492 = vmatpush.bf16.msrb.mxu3 %v2035_v31  ;;  %v1877_v31 = vld [vmem:[%s7637_s0 + $0x318] sm:$0xff] }
  0xa0   :  { %v2187_v36 = vpop.f32.mrf.mxu0 }
  0xa1   :  { %v2291_v46 = vpop.f32.mrf.mxu1 }
  0xa2   :  { %v2292_v7 = vadd.f32 %v2291_v46, %v2187_v36 }
  0xa3   :  { %2226 = vmatmul.bf16.gmra.mxu0 %v1613_v22  ;;  %2469 = vmatmul.bf16.vlgmr.msra.gmra.mxu3 %v1720_v28  ;;  %v1834_v22 = vld [vmem:[%s7637_s0 + $0x1c0] sm:$0xff]  ;;  %v1835_v28 = vld [vmem:[%s7637_s0 + $0x1c8] sm:$0xff] }
  0xa4   :  { %2330 = vmatmul.bf16.gmra.mxu1 %v1614_v40  ;;  %v1628_v40 = vpack.c.bf16 %v1208_v47, %v1193_v14  ;;  %v2034_v46 = vpack.c.bf16 %v1835_v28, %v1834_v22  ;;  %v2032_v14 = vpack.c.bf16 %v1831_v10, %v1830_v9  ;;  %v623_v47 = vunpack.c.l.bf16 %v176_v61  ;;  %v1827_v61 = vld [vmem:[%s7637_s0 + $0x188] sm:$0xff] }
  0xa5   :  { %2434 = vmatmul.bf16.gmra.mxu2 %v1615_v35  ;;  %v1735_v35 = vpack.c.bf16 %v1420_v29, %v1405_v48  ;;  %v1876_v29 = vld [vmem:[%s7637_s0 + $0x310] sm:$0xff]  ;;  %v1238_v22 = vmul.f32 %v4132_v6, %v636_v1  ;;  %v1224_v28 = vmul.f32 %v4142_v15, %v622_v4 }
  0xa6   :  { %v4611_v39 = vpop.f32.mrf.mxu3  ;;  %2493 = vmatpush.bf16.msrb.mxu3 %v2034_v46  ;;  %v2055_v32 = vpack.c.bf16 %v1877_v31, %v1876_v29  ;;  %v1860_v46 = vld [vmem:[%s7637_s0 + $0x290] sm:$0xff]  ;;  %v1225_v49 = vmul.f32 %v4146_v23, %v623_v47  ;;  %v304_v47 = vld [vmem:[%s7638_s2 + $0x878] sm:$0xff] }
  0xa7   :  { %v192_v29 = vld [vmem:[%s7638_s2 + $0x530] sm:$0xff] }
  0xa8   :  { %v2395_v62 = vpop.f32.mrf.mxu2  ;;  %v2189_v5 = vpop.f32.mrf.mxu0  ;;  %2808 = vmatpush.bf16.msrb.mxu2 %v2055_v32  ;;  %v200_v31 = vld [vmem:[%s7638_s2 + $0x56c] sm:$0xff] }
  0xa9   :  { %v4619_v60 = vadd.f32 %v2395_v62, %v2292_v7  ;;  %v2293_v17 = vpop.f32.mrf.mxu1  ;;  %v184_v62 = vld [vmem:[%s7638_s2 + $0x4f4] sm:$0xff] }
  0xaa   :  { %v2294_v27 = vadd.f32 %v2293_v17, %v2189_v5  ;;  %v637_v5 = vunpack.c.h.bf16 %v183_v37  ;;  %v833_v17 = vunpack.c.l.bf16 %v288_v11  ;;  %2494 = vmatpush.bf16.msrb.mxu3 %v2033_v34  ;;  %v638_v48 = vunpack.c.l.bf16 %v184_v62 }
  0xab   :  { %v1643_v34 = vpack.c.bf16 %v1238_v22, %v1223_v45 }
  0xac   :  { %v1240_v50 = vmul.f32 %v4146_v23, %v638_v48  ;;  %v312_v48 = vld [vmem:[%s7638_s2 + $0x8b4] sm:$0xff] }
  0xae   :  { %v4635_v18 = vpop.f32.mrf.mxu3  ;;  %2495 = vmatpush.bf16.msrb.mxu3 %v2032_v14  ;;  %v1645_v10 = vpack.c.bf16 %v1240_v50, %v1225_v49  ;;  %v191_v14 = vld [vmem:[%s7638_s2 + $0x528] sm:$0xff] }
  0xaf   :  { %v651_v45 = vunpack.c.l.bf16 %v191_v14  ;;  %v652_v22 = vunpack.c.h.bf16 %v191_v14 }
  0xb0   :  { %v2397_v36 = vpop.f32.mrf.mxu2  ;;  %v2192_v57 = vpop.f32.mrf.mxu0 }
  0xb1   :  { %v4643_v7 = vadd.f32 %v2397_v36, %v2294_v27  ;;  %v2296_v42 = vpop.f32.mrf.mxu1  ;;  %v848_v27 = vunpack.c.l.bf16 %v296_v52  ;;  %v1239_v36 = vmul.f32 %v4142_v15, %v637_v5 }
  0xb2   :  { %v2297_v43 = vadd.f32 %v2296_v42, %v2192_v57  ;;  %v1435_v57 = vmul.f32 %v4146_v23, %v833_v17  ;;  %v1861_v42 = vld [vmem:[%s7637_s0 + $0x298] sm:$0xff]  ;;  %v2030_v17 = vpack.c.bf16 %v1827_v61, %v1826_v59 }
  0xb3   :  { %2231 = vmatmul.bf16.gmra.mxu0 %v1628_v40  ;;  %2474 = vmatmul.bf16.gmra.mxu3 %v1735_v35  ;;  %v1844_v40 = vld [vmem:[%s7637_s0 + $0x210] sm:$0xff]  ;;  %v1845_v35 = vld [vmem:[%s7637_s0 + $0x218] sm:$0xff]  ;;  %v2047_v37 = vpack.c.bf16 %v1861_v42, %v1860_v46  ;;  %v1644_v9 = vpack.c.bf16 %v1239_v36, %v1224_v28  ;;  %v863_v28 = vunpack.c.l.bf16 %v304_v47  ;;  %v878_v36 = vunpack.c.l.bf16 %v312_v48 }
  0xb4   :  { %2335 = vmatmul.bf16.gmra.mxu1 %v1629_v54  ;;  %v1450_v54 = vmul.f32 %v4146_v23, %v848_v27 }
  0xb5   :  { %2439 = vmatmul.bf16.gmra.mxu2 %v1630_v55  ;;  %v2039_v55 = vpack.c.bf16 %v1845_v35, %v1844_v40  ;;  %2704 = vmatpush.bf16.msrb.mxu1 %v2047_v37  ;;  %v1465_v49 = vmul.f32 %v4146_v23, %v863_v28  ;;  %v1480_v50 = vmul.f32 %v4146_v23, %v878_v36 }
  0xb6   :  { %v4669_v0 = vpop.f32.mrf.mxu3  ;;  %v1750_v1 = vpack.c.bf16 %v1450_v54, %v1435_v57  ;;  %v653_v57 = vunpack.c.l.bf16 %v192_v29  ;;  %v668_v54 = vunpack.c.l.bf16 %v200_v31  ;;  %v1254_v37 = vmul.f32 %v4142_v15, %v652_v22  ;;  %v216_v22 = vld [vmem:[%s7638_s2 + $0x5e4] sm:$0xff] }
  0xb7   :  { %2600 = vmatpush.bf16.msrb.mxu0 %v2039_v55 }
  0xb8   :  { %v2400_v13 = vpop.f32.mrf.mxu2  ;;  %v2194_v25 = vpop.f32.mrf.mxu0  ;;  %v1255_v59 = vmul.f32 %v4146_v23, %v653_v57  ;;  %v1270_v61 = vmul.f32 %v4146_v23, %v668_v54 }
  0xb9   :  { %v4677_v53 = vadd.f32 %v2400_v13, %v2297_v43  ;;  %v2298_v26 = vpop.f32.mrf.mxu1  ;;  %v1828_v43 = vld [vmem:[%s7637_s0 + $0x190] sm:$0xff] }
  0xba   :  { %v2299_v33 = vadd.f32 %v2298_v26, %v2194_v25  ;;  %v2031_v11 = vpack.c.bf16 %v1829_v24, %v1828_v43  ;;  %v199_v25 = vld [vmem:[%s7638_s2 + $0x564] sm:$0xff]  ;;  %v1253_v43 = vmul.f32 %v4132_v6, %v651_v45  ;;  %v1660_v14 = vpack.c.bf16 %v1270_v61, %v1255_v59 }
  0xbb   :  { %v667_v46 = vunpack.c.h.bf16 %v199_v25  ;;  %v1874_v45 = vld [vmem:[%s7637_s0 + $0x300] sm:$0xff] }
  0xbc   :  { %2496 = vmatpush.bf16.msrb.mxu3 %v2031_v11 }
  0xbd   :  { %v1269_v11 = vmul.f32 %v4142_v15, %v667_v46 }
  0xbe   :  { %v4711_v52 = vpop.f32.mrf.mxu3 }
  0xc0   :  { %v2402_v62 = vpop.f32.mrf.mxu2  ;;  %v2197_v5 = vpop.f32.mrf.mxu0  ;;  %2497 = vmatpush.bf16.msrb.mxu3 %v2030_v17 }
  0xc1   :  { %v4719_v4 = vadd.f32 %v2402_v62, %v2299_v33  ;;  %v2301_v13 = vpop.f32.mrf.mxu1  ;;  %v666_v33 = vunpack.c.l.bf16 %v199_v25  ;;  %v354_v62 = vunpack.c.h.bf16 %v4242_v20  ;;  %v207_v20 = vld [vmem:[%s7638_s2 + $0x5a0] sm:$0xff] }
  0xc2   :  { %v2302_v27 = vadd.f32 %v2301_v13, %v2197_v5  ;;  %v681_v46 = vunpack.c.l.bf16 %v207_v20  ;;  %v682_v54 = vunpack.c.h.bf16 %v207_v20  ;;  %v399_v20 = vunpack.c.h.bf16 %v4301_v3  ;;  %v231_v3 = vld [vmem:[%s7638_s2 + $0x654] sm:$0xff] }
  0xc3   :  { %2236 = vmatmul.bf16.gmra.mxu0 %v1643_v34  ;;  %2479 = vmatmul.bf16.gmra.mxu3 %v1750_v1  ;;  %v1268_v24 = vmul.f32 %v4132_v6, %v666_v33  ;;  %v369_v34 = vunpack.c.h.bf16 %v4247_v21  ;;  %v4758_v47 = vmul.f32 %v4144_v19, %v354_v62  ;;  %v215_v21 = vld [vmem:[%s7638_s2 + $0x5dc] sm:$0xff]  ;;  %v208_v33 = vld [vmem:[%s7638_s2 + $0x5a8] sm:$0xff] }
  0xc4   :  { %2340 = vmatmul.bf16.gmra.mxu1 %v1644_v9  ;;  %v696_v57 = vunpack.c.l.bf16 %v215_v21  ;;  %v1858_v62 = vld [vmem:[%s7637_s0 + $0x280] sm:$0xff] }
  0xc5   :  { %2444 = vmatmul.bf16.gmra.mxu2 %v1645_v10  ;;  %v1658_v9 = vpack.c.bf16 %v1268_v24, %v1253_v43  ;;  %v1765_v10 = vpack.c.bf16 %v1480_v50, %v1465_v49  ;;  %v4761_v29 = vmul.f32 %v4144_v19, %v369_v34  ;;  %v697_v43 = vunpack.c.h.bf16 %v215_v21  ;;  %v1842_v50 = vld [vmem:[%s7637_s0 + $0x200] sm:$0xff]  ;;  %v1859_v34 = vld [vmem:[%s7637_s0 + $0x288] sm:$0xff] }
  0xc6   :  { %v4739_v26 = vpop.f32.mrf.mxu3  ;;  %v683_v24 = vunpack.c.l.bf16 %v208_v33  ;;  %v698_v49 = vunpack.c.l.bf16 %v216_v22 }
  0xc7   :  { %v1511_v31 = vpack.c.bf16 %v4761_v29, %v4758_v47  ;;  %v1920_v47 = vld [vmem:[%s7637_s0 + $0x470] sm:$0xff]  ;;  %v240_v29 = vld [vmem:[%s7638_s2 + $0x698] sm:$0xff] }
  0xc8   :  { %v2405_v32 = vpop.f32.mrf.mxu2  ;;  %v2199_v35 = vpop.f32.mrf.mxu0 }
  0xc9   :  { %v4741_v40 = vadd.f32 %v2405_v32, %v2302_v27  ;;  %v2303_v55 = vpop.f32.mrf.mxu1  ;;  %v1659_v27 = vpack.c.bf16 %v1269_v11, %v1254_v37  ;;  %v1875_v32 = vld [vmem:[%s7637_s0 + $0x308] sm:$0xff] }
  0xca   :  { %v2304_v42 = vadd.f32 %v2303_v55, %v2199_v35  ;;  %v2054_v28 = vpack.c.bf16 %v1875_v32, %v1874_v45  ;;  %v1843_v37 = vld [vmem:[%s7637_s0 + $0x208] sm:$0xff] }
  0xcb   :  { %v2038_v59 = vpack.c.bf16 %v1843_v37, %v1842_v50  ;;  %v726_v37 = vunpack.c.l.bf16 %v231_v3 }
  0xcc   :  { %2809 = vmatpush.bf16.msrb.mxu2 %v2054_v28 }
  0xcd   :  { %2601 = vmatpush.bf16.msrb.mxu0 %v2038_v59  ;;  %v727_v59 = vunpack.c.h.bf16 %v231_v3 }
  0xce   :  { %v4753_v1 = vpop.f32.mrf.mxu3 }
  0xd0   :  { %v2407_v5 = vpop.f32.mrf.mxu2  ;;  %v2202_v17 = vpop.f32.mrf.mxu0 }
  0xd1   :  { %v4755_v13 = vadd.f32 %v2407_v5, %v2304_v42  ;;  %v2306_v25 = vpop.f32.mrf.mxu1  ;;  %v1283_v5 = vmul.f32 %v4132_v6, %v681_v46 }
  0xd2   :  { %v2307_v48 = vadd.f32 %v2306_v25, %v2202_v17  ;;  %v1284_v17 = vmul.f32 %v4142_v15, %v682_v54  ;;  %v1300_v25 = vmul.f32 %v4146_v23, %v698_v49 }
  0xd3   :  { %2241 = vmatmul.bf16.gmra.mxu0 %v1658_v9  ;;  %2484 = vmatmul.bf16.gmra.mxu3 %v1765_v10  ;;  %v1298_v9 = vmul.f32 %v4132_v6, %v696_v57  ;;  %v2046_v10 = vpack.c.bf16 %v1859_v34, %v1858_v62 }
  0xd4   :  { %2345 = vmatmul.bf16.gmra.mxu1 %v1659_v27  ;;  %v1299_v27 = vmul.f32 %v4142_v15, %v697_v43 }
  0xd5   :  { %2449 = vmatmul.bf16.gmra.mxu2 %v1660_v14  ;;  %v1285_v14 = vmul.f32 %v4146_v23, %v683_v24  ;;  %2705 = vmatpush.bf16.msrb.mxu1 %v2046_v10  ;;  %v1673_v32 = vpack.c.bf16 %v1298_v9, %v1283_v5  ;;  %v224_v24 = vld [vmem:[%s7638_s2 + $0x620] sm:$0xff]  ;;  %v728_v5 = vunpack.c.l.bf16 %v232_v30 }
  0xd6   :  { %v4783_v36 = vpop.f32.mrf.mxu3  ;;  %v1674_v28 = vpack.c.bf16 %v1299_v27, %v1284_v17  ;;  %v713_v34 = vunpack.c.l.bf16 %v224_v24  ;;  %v1904_v27 = vld [vmem:[%s7637_s0 + $0x3f0] sm:$0xff] }
  0xd8   :  { %v2410_v35 = vpop.f32.mrf.mxu2  ;;  %v2204_v42 = vpop.f32.mrf.mxu0 }
  0xd9   :  { %v4785_v55 = vadd.f32 %v2410_v35, %v2307_v48  ;;  %v2308_v11 = vpop.f32.mrf.mxu1  ;;  %v384_v48 = vunpack.c.h.bf16 %v4296_v2  ;;  %v1675_v35 = vpack.c.bf16 %v1300_v25, %v1285_v14  ;;  %v223_v2 = vld [vmem:[%s7638_s2 + $0x618] sm:$0xff]  ;;  %v1328_v14 = vmul.f32 %v4132_v6, %v726_v37 }
  0xda   :  { %v2309_v61 = vadd.f32 %v2308_v11, %v2204_v42  ;;  %v4815_v42 = vmul.f32 %v4144_v19, %v399_v20  ;;  %v712_v11 = vunpack.c.h.bf16 %v223_v2 }
  0xdb   :  { %v4812_v57 = vmul.f32 %v4144_v19, %v384_v48  ;;  %v1329_v48 = vmul.f32 %v4142_v15, %v727_v59  ;;  %v1952_v59 = vld [vmem:[%s7637_s0 + $0x570] sm:$0xff] }
  0xdc   :  { %v1314_v25 = vmul.f32 %v4142_v15, %v712_v11  ;;  %v247_v11 = vld [vmem:[%s7638_s2 + $0x6cc] sm:$0xff] }
  0xdd   :  { %v1526_v43 = vpack.c.bf16 %v4815_v42, %v4812_v57 }
  0xde   :  { %v4807_v21 = vpop.f32.mrf.mxu3  ;;  %v1689_v3 = vpack.c.bf16 %v1329_v48, %v1314_v25  ;;  %v757_v48 = vunpack.c.h.bf16 %v247_v11 }
  0xe0   :  { %v2412_v45 = vpop.f32.mrf.mxu2  ;;  %v2207_v22 = vpop.f32.mrf.mxu0 }
  0xe1   :  { %v4809_v33 = vadd.f32 %v2412_v45, %v2309_v61  ;;  %v2311_v46 = vpop.f32.mrf.mxu1  ;;  %v414_v45 = vunpack.c.h.bf16 %v4358_v16 }
  0xe2   :  { %v2312_v54 = vadd.f32 %v2311_v46, %v2207_v22  ;;  %v1315_v22 = vmul.f32 %v4146_v23, %v713_v34 }
  0xe3   :  { %2246 = vmatmul.bf16.gmra.mxu0 %v1673_v32  ;;  %2498 = vmatmul.bf16.vlgmr.msrb.gmra.mxu3 %v1496_v51  ;;  %v711_v51 = vunpack.c.l.bf16 %v223_v2  ;;  %v429_v32 = vunpack.c.h.bf16 %v4363_v58  ;;  %v4859_v16 = vmul.f32 %v4144_v19, %v414_v45 }
  0xe4   :  { %2350 = vmatmul.bf16.gmra.mxu1 %v1674_v28  ;;  %v1330_v28 = vmul.f32 %v4146_v23, %v728_v5  ;;  %v1921_v5 = vld [vmem:[%s7637_s0 + $0x478] sm:$0xff] }
  0xe5   :  { %2454 = vmatmul.bf16.gmra.mxu2 %v1675_v35  ;;  %v1313_v17 = vmul.f32 %v4132_v6, %v711_v51  ;;  %v4862_v58 = vmul.f32 %v4144_v19, %v429_v32  ;;  %v743_v32 = vunpack.c.l.bf16 %v240_v29 }
  0xe6   :  { %v2366_v38 = vpop.f32.mrf.mxu3 }
  0xe7   :  { %v4835_v49 = vadd.f32 %v2366_v38, %v4611_v39  ;;  %v1905_v39 = vld [vmem:[%s7637_s0 + $0x3f8] sm:$0xff]  ;;  %v1688_v2 = vpack.c.bf16 %v1328_v14, %v1313_v17  ;;  %v1690_v38 = vpack.c.bf16 %v1330_v28, %v1315_v22  ;;  %v1541_v37 = vpack.c.bf16 %v4862_v58, %v4859_v16  ;;  %v1936_v28 = vld [vmem:[%s7637_s0 + $0x4f0] sm:$0xff]  ;;  %v1903_v16 = vld [vmem:[%s7637_s0 + $0x3e8] sm:$0xff] }
  0xe8   :  { %v2415_v50 = vpop.f32.mrf.mxu2  ;;  %v2209_v62 = vpop.f32.mrf.mxu0  ;;  %v2069_v20 = vpack.c.bf16 %v1905_v39, %v1904_v27  ;;  %v2077_v17 = vpack.c.bf16 %v1921_v5, %v1920_v47  ;;  %v756_v14 = vunpack.c.l.bf16 %v247_v11  ;;  %v1345_v11 = vmul.f32 %v4146_v23, %v743_v32  ;;  %v34_v58 = vld [vmem:[%s7638_s2 + $0x90] sm:$0xff] }
  0xe9   :  { %v4837_v61 = vadd.f32 %v2415_v50, %v2312_v54  ;;  %v2313_v9 = vpop.f32.mrf.mxu1 }
  0xea   :  { %v2314_v10 = vadd.f32 %v2313_v9, %v2209_v62  ;;  %2906 = vmatpush.bf16.msra.mxu3 %v2069_v20  ;;  %v1953_v62 = vld [vmem:[%s7637_s0 + $0x578] sm:$0xff]  ;;  %3010 = vmatpush.bf16.msra.mxu0 %v2077_v17  ;;  %v25_v17 = vld [vmem:[%s7638_s2 + $0x4c] sm:$0xff] }
  0xeb   :  { %v2093_v34 = vpack.c.bf16 %v1953_v62, %v1952_v59 }
  0xed   :  { %3218 = vmatpush.bf16.msra.mxu2 %v2093_v34 }
  0xee   :  { %v2368_v35 = vpop.f32.mrf.mxu3 }
  0xef   :  { %v4854_v46 = vadd.f32 %v2368_v35, %v4635_v18  ;;  %v239_v18 = vld [vmem:[%s7638_s2 + $0x690] sm:$0xff] }
  0xf0   :  { %v2417_v54 = vpop.f32.mrf.mxu2  ;;  %v2212_v30 = vpop.f32.mrf.mxu0  ;;  %v742_v25 = vunpack.c.h.bf16 %v239_v18 }
  0xf1   :  { %v4856_v24 = vadd.f32 %v2417_v54, %v2314_v10  ;;  %v2316_v51 = vpop.f32.mrf.mxu1  ;;  %v741_v10 = vunpack.c.l.bf16 %v239_v18  ;;  %v459_v18 = vunpack.c.h.bf16 %v4405_v41 }
  0xf2   :  { %v2317_v50 = vadd.f32 %v2316_v51, %v2212_v30  ;;  %v1358_v30 = vmul.f32 %v4132_v6, %v756_v14  ;;  %v1359_v51 = vmul.f32 %v4142_v15, %v757_v48  ;;  %v26_v14 = vld [vmem:[%s7638_s2 + $0x54] sm:$0xff] }
  0xf3   :  { %2251 = vmatmul.bf16.gmra.mxu0 %v1688_v2  ;;  %2503 = vmatmul.bf16.gmra.mxu3 %v1511_v31  ;;  %v248_v31 = vld [vmem:[%s7638_s2 + $0x6d4] sm:$0xff] }
  0xf4   :  { %2355 = vmatmul.bf16.gmra.mxu1 %v1689_v3  ;;  %v758_v22 = vunpack.c.l.bf16 %v248_v31  ;;  %v1343_v3 = vmul.f32 %v4132_v6, %v741_v10 }
  0xf5   :  { %2459 = vmatmul.bf16.gmra.mxu2 %v1690_v38  ;;  %v1344_v38 = vmul.f32 %v4142_v15, %v742_v25  ;;  %v3824_v25 = vld [vmem:[%s7639_s1] sm:$0xff] }
  0xf6   :  { %v2371_v9 = vpop.f32.mrf.mxu3  ;;  %v1360_v59 = vmul.f32 %v4146_v23, %v758_v22  ;;  %v1703_v31 = vpack.c.bf16 %v1358_v30, %v1343_v3  ;;  %v4943_v48 = vperm.slane %v3824_v25, 4  ;;  %v342_v3 = vunpack.c.l.bf16 %v26_v14 }
  0xf7   :  { %v4894_v27 = vadd.f32 %v2371_v9, %v4669_v0  ;;  %v1937_v0 = vld [vmem:[%s7637_s0 + $0x4f8] sm:$0xff]  ;;  %v1704_v6 = vpack.c.bf16 %v1359_v51, %v1344_v38  ;;  %v4952_v30 = vperm.slane %v3824_v25, 6 }
  0xf8   :  { %v2420_v39 = vpop.f32.mrf.mxu2  ;;  %v2214_v45 = vpop.f32.mrf.mxu0  ;;  %v2085_v54 = vpack.c.bf16 %v1937_v0, %v1936_v28  ;;  %v1705_v15 = vpack.c.bf16 %v1360_v59, %v1345_v11  ;;  %v341_v28 = vunpack.c.h.bf16 %v25_v17  ;;  %v4948_v0 = vperm.slane %v3824_v25, 5  ;;  %v1902_v25 = vld [vmem:[%s7637_s0 + $0x3e0] sm:$0xff] }
  0xf9   :  { %v4896_v20 = vadd.f32 %v2420_v39, %v2317_v50  ;;  %v2318_v35 = vpop.f32.mrf.mxu1  ;;  %v444_v50 = vunpack.c.h.bf16 %v4400_v12  ;;  %v4921_v12 = vmul.f32 %v4144_v19, %v459_v18  ;;  %v18_v39 = vld [vmem:[%s7638_s2 + $0x18] sm:$0xff]  ;;  %v474_v59 = vunpack.c.h.bf16 %v4458_v63 }
  0xfa   :  { %v2319_v2 = vadd.f32 %v2318_v35, %v2214_v45  ;;  %3114 = vmatpush.bf16.msra.mxu1 %v2085_v54  ;;  %v943_v11 = vmul.f32 %v4948_v0, %v341_v28 }
  0xfb   :  { %v4918_v9 = vmul.f32 %v4144_v19, %v444_v50  ;;  %v4968_v14 = vmul.f32 %v4144_v19, %v474_v59 }
  0xfd   :  { %v1556_v23 = vpack.c.bf16 %v4921_v12, %v4918_v9  ;;  %v58_v9 = vld [vmem:[%s7638_s2 + $0x144] sm:$0xff] }
  0xfe   :  { %v2373_v62 = vpop.f32.mrf.mxu3 }
  0xff   :  { %v4913_v47 = vadd.f32 %v2373_v62, %v4711_v52  ;;  %v17_v52 = vld [vmem:[%s7638_s2 + $0x10] sm:$0xff]  ;;  %v489_v62 = vunpack.c.h.bf16 %v4463_v44 }
 0x100   :  { %v2422_v29 = vpop.f32.mrf.mxu2  ;;  %v2217_v5 = vpop.f32.mrf.mxu0  ;;  %v325_v42 = vunpack.c.l.bf16 %v17_v52  ;;  %v326_v22 = vunpack.c.h.bf16 %v17_v52 }
 0x101   :  { %v4915_v34 = vadd.f32 %v2422_v29, %v2319_v2  ;;  %v2321_v41 = vpop.f32.mrf.mxu1  ;;  %v327_v2 = vunpack.c.l.bf16 %v18_v39  ;;  %v4971_v63 = vmul.f32 %v4144_v19, %v489_v62  ;;  %v504_v62 = vunpack.c.h.bf16 %v4489_v8 }
 0x102   :  { %v2322_v10 = vadd.f32 %v2321_v41, %v2217_v5  ;;  %v927_v50 = vmul.f32 %v4943_v48, %v325_v42 }
 0x103   :  { %2256 = vmatmul.bf16.gmra.mxu0 %v1703_v31  ;;  %2508 = vmatmul.bf16.gmra.mxu3 %v1526_v43  ;;  %v340_v43 = vunpack.c.l.bf16 %v25_v17  ;;  %v929_v29 = vmul.f32 %v4952_v30, %v327_v2  ;;  %v944_v31 = vmul.f32 %v4952_v30, %v342_v3  ;;  %v1571_v42 = vpack.c.bf16 %v4971_v63, %v4968_v14  ;;  %v74_v14 = vld [vmem:[%s7638_s2 + $0x1bc] sm:$0xff] }
 0x104   :  { %2360 = vmatmul.bf16.gmra.mxu1 %v1704_v6 }
 0x105   :  { %2464 = vmatmul.bf16.gmra.mxu2 %v1705_v15  ;;  %v942_v18 = vmul.f32 %v4943_v48, %v340_v43  ;;  %v1499_v39 = vpack.c.bf16 %v944_v31, %v929_v29  ;;  %v41_v43 = vld [vmem:[%s7638_s2 + $0xc4] sm:$0xff]  ;;  %v519_v29 = vunpack.c.h.bf16 %v4494_v56 }
 0x106   :  { %v2376_v57 = vpop.f32.mrf.mxu3  ;;  %v370_v3 = vunpack.c.l.bf16 %v41_v43 }
 0x107   :  { %v4946_v45 = vadd.f32 %v2376_v57, %v4739_v26  ;;  %v928_v26 = vmul.f32 %v4948_v0, %v326_v22  ;;  %v1497_v41 = vpack.c.bf16 %v942_v18, %v927_v50 }
 0x108   :  { %v2425_v32 = vpop.f32.mrf.mxu2  ;;  %v2219_v54 = vpop.f32.mrf.mxu0 }
 0x109   :  { %v4950_v35 = vadd.f32 %v2425_v32, %v2322_v10  ;;  %v2323_v38 = vpop.f32.mrf.mxu1  ;;  %v1498_v10 = vpack.c.bf16 %v943_v11, %v928_v26  ;;  %v2068_v32 = vpack.c.bf16 %v1903_v16, %v1902_v25  ;;  %v357_v26 = vunpack.c.l.bf16 %v34_v58 }
 0x10a   :  { %v2324_v51 = vadd.f32 %v2323_v38, %v2219_v54 }
 0x10b   :  { %2907 = vmatpush.bf16.msra.mxu3 %v2068_v32 }
 0x10e   :  { %v2378_v6 = vpop.f32.mrf.mxu3 }
 0x10f   :  { %v4963_v5 = vadd.f32 %v2378_v6, %v4753_v1  ;;  %v33_v1 = vld [vmem:[%s7638_s2 + $0x88] sm:$0xff] }
 0x110   :  { %v2427_v15 = vpop.f32.mrf.mxu2  ;;  %v2222_v17 = vpop.f32.mrf.mxu0  ;;  %v355_v28 = vunpack.c.l.bf16 %v33_v1  ;;  %v356_v38 = vunpack.c.h.bf16 %v33_v1  ;;  %v959_v1 = vmul.f32 %v4952_v30, %v357_v26 }
 0x111   :  { %v4965_v52 = vadd.f32 %v2427_v15, %v2324_v51  ;;  %v2326_v44 = vpop.f32.mrf.mxu1  ;;  %v371_v51 = vunpack.c.h.bf16 %v41_v43  ;;  %v1951_v15 = vld [vmem:[%s7637_s0 + $0x568] sm:$0xff] }
 0x112   :  { %v2327_v57 = vadd.f32 %v2326_v44, %v2222_v17  ;;  %v957_v6 = vmul.f32 %v4943_v48, %v355_v28  ;;  %v958_v8 = vmul.f32 %v4948_v0, %v356_v38  ;;  %v1934_v44 = vld [vmem:[%s7637_s0 + $0x4e0] sm:$0xff] }
 0x113   :  { %2513 = vmatmul.bf16.gmra.mxu3 %v1541_v37  ;;  %2602 = vmatmul.bf16.vlgmr.msrb.gmra.mxu0 %v1497_v41  ;;  %v42_v37 = vld [vmem:[%s7638_s2 + $0xcc] sm:$0xff]  ;;  %v1918_v41 = vld [vmem:[%s7637_s0 + $0x460] sm:$0xff]  ;;  %v973_v56 = vmul.f32 %v4948_v0, %v371_v51  ;;  %v5033_v51 = vmul.f32 %v4144_v19, %v504_v62 }
 0x114   :  { %2706 = vmatmul.bf16.vlgmr.msrb.gmra.mxu1 %v1498_v10  ;;  %v372_v11 = vunpack.c.l.bf16 %v42_v37  ;;  %v972_v10 = vmul.f32 %v4943_v48, %v370_v3  ;;  %v57_v62 = vld [vmem:[%s7638_s2 + $0x13c] sm:$0xff] }
 0x115   :  { %2810 = vmatmul.bf16.vlgmr.msrb.gmra.mxu2 %v1499_v39  ;;  %v1919_v39 = vld [vmem:[%s7637_s0 + $0x468] sm:$0xff]  ;;  %v1513_v28 = vpack.c.bf16 %v973_v56, %v958_v8 }
 0x116   :  { %v2381_v22 = vpop.f32.mrf.mxu3  ;;  %v974_v43 = vmul.f32 %v4952_v30, %v372_v11  ;;  %v2076_v25 = vpack.c.bf16 %v1919_v39, %v1918_v41  ;;  %v401_v41 = vunpack.c.h.bf16 %v57_v62 }
 0x117   :  { %v4997_v54 = vadd.f32 %v2381_v22, %v4783_v36  ;;  %v1950_v36 = vld [vmem:[%s7637_s0 + $0x560] sm:$0xff]  ;;  %v1512_v22 = vpack.c.bf16 %v972_v10, %v957_v6 }
 0x118   :  { %v2430_v2 = vpop.f32.mrf.mxu2  ;;  %v2224_v18 = vpop.f32.mrf.mxu0  ;;  %v2092_v17 = vpack.c.bf16 %v1951_v15, %v1950_v36  ;;  %3011 = vmatpush.bf16.msra.mxu0 %v2076_v25  ;;  %v1514_v38 = vpack.c.bf16 %v974_v43, %v959_v1  ;;  %v400_v36 = vunpack.c.l.bf16 %v57_v62  ;;  %v1003_v25 = vmul.f32 %v4948_v0, %v401_v41  ;;  %v73_v41 = vld [vmem:[%s7638_s2 + $0x1b4] sm:$0xff] }
 0x119   :  { %v4999_v50 = vadd.f32 %v2430_v2, %v2327_v57  ;;  %v2328_v59 = vpop.f32.mrf.mxu1  ;;  %v1935_v57 = vld [vmem:[%s7637_s0 + $0x4e8] sm:$0xff] }
 0x11a   :  { %v2329_v31 = vadd.f32 %v2328_v59, %v2224_v18  ;;  %v2084_v16 = vpack.c.bf16 %v1935_v57, %v1934_v44  ;;  %3219 = vmatpush.bf16.msra.mxu2 %v2092_v17  ;;  %v5036_v18 = vmul.f32 %v4144_v19, %v519_v29  ;;  %v50_v29 = vld [vmem:[%s7638_s2 + $0x108] sm:$0xff]  ;;  %v402_v17 = vunpack.c.l.bf16 %v58_v9 }
 0x11b   :  { %v387_v56 = vunpack.c.l.bf16 %v50_v29  ;;  %v1002_v1 = vmul.f32 %v4943_v48, %v400_v36 }
 0x11c   :  { %3115 = vmatpush.bf16.msra.mxu1 %v2084_v16  ;;  %v1586_v59 = vpack.c.bf16 %v5036_v18, %v5033_v51  ;;  %v1933_v51 = vld [vmem:[%s7637_s0 + $0x4d8] sm:$0xff] }
 0x11d   :  { %v82_v18 = vld [vmem:[%s7638_s2 + $0x1f8] sm:$0xff] }
 0x11e   :  { %v2383_v58 = vpop.f32.mrf.mxu3 }
 0x11f   :  { %v5028_v37 = vadd.f32 %v2383_v58, %v4807_v21  ;;  %v49_v21 = vld [vmem:[%s7638_s2 + $0x100] sm:$0xff]  ;;  %v3826_v58 = vld [vmem:[%s7638_s2 + $0x38c] sm:$0xff] }
 0x120   :  { %v2432_v32 = vpop.f32.mrf.mxu2  ;;  %v2227_v3 = vpop.f32.mrf.mxu0  ;;  %v386_v15 = vunpack.c.h.bf16 %v49_v21 }
 0x121   :  { %v5030_v2 = vadd.f32 %v2432_v32, %v2329_v31  ;;  %v2331_v26 = vpop.f32.mrf.mxu1  ;;  %v549_v32 = vunpack.c.h.bf16 %v3826_v58 }
 0x122   :  { %v2332_v11 = vadd.f32 %v2331_v26, %v2227_v3  ;;  %v988_v43 = vmul.f32 %v4948_v0, %v386_v15 }
 0x123   :  { %2518 = vmatmul.bf16.gmra.mxu3 %v1556_v23  ;;  %2607 = vmatmul.bf16.gmra.mxu0 %v1512_v22  ;;  %v385_v23 = vunpack.c.l.bf16 %v49_v21  ;;  %v989_v22 = vmul.f32 %v4952_v30, %v387_v56 }
 0x124   :  { %2711 = vmatmul.bf16.gmra.mxu1 %v1513_v28  ;;  %v1004_v28 = vmul.f32 %v4952_v30, %v402_v17  ;;  %v1528_v21 = vpack.c.bf16 %v1003_v25, %v988_v43 }
 0x125   :  { %2815 = vmatmul.bf16.gmra.mxu2 %v1514_v38  ;;  %v987_v57 = vmul.f32 %v4943_v48, %v385_v23  ;;  %v5081_v23 = vmul.f32 %v4144_v19, %v549_v32 }
 0x126   :  { %v2470_v12 = vpop.f32.mrf.mxu3  ;;  %v1529_v9 = vpack.c.bf16 %v1004_v28, %v989_v22  ;;  %v1900_v22 = vld [vmem:[%s7637_s0 + $0x3d0] sm:$0xff] }
 0x127   :  { %v5056_v6 = vadd.f32 %v2470_v12, %v4835_v49  ;;  %v3825_v49 = vld [vmem:[%s7638_s2 + $0x350] sm:$0xff] }
 0x128   :  { %v2435_v31 = vpop.f32.mrf.mxu2  ;;  %v2229_v8 = vpop.f32.mrf.mxu0  ;;  %v534_v16 = vunpack.c.h.bf16 %v3825_v49  ;;  %v432_v49 = vunpack.c.l.bf16 %v74_v14 }
 0x129   :  { %v5058_v10 = vadd.f32 %v2435_v31, %v2332_v11  ;;  %v2333_v39 = vpop.f32.mrf.mxu1  ;;  %v1527_v11 = vpack.c.bf16 %v1002_v1, %v987_v57  ;;  %v431_v57 = vunpack.c.h.bf16 %v73_v41 }
 0x12a   :  { %v2334_v44 = vadd.f32 %v2333_v39, %v2229_v8  ;;  %v5078_v12 = vmul.f32 %v4144_v19, %v534_v16  ;;  %v66_v8 = vld [vmem:[%s7638_s2 + $0x180] sm:$0xff]  ;;  %v430_v39 = vunpack.c.l.bf16 %v73_v41 }
 0x12b   :  { %v417_v25 = vunpack.c.l.bf16 %v66_v8 }
 0x12c   :  { %v1601_v15 = vpack.c.bf16 %v5081_v23, %v5078_v12  ;;  %v1032_v28 = vmul.f32 %v4943_v48, %v430_v39  ;;  %v106_v12 = vld [vmem:[%s7638_s2 + $0x2ac] sm:$0xff] }
 0x12e   :  { %v2472_v3 = vpop.f32.mrf.mxu3 }
 0x12f   :  { %v5073_v26 = vadd.f32 %v2472_v3, %v4854_v46  ;;  %v65_v46 = vld [vmem:[%s7638_s2 + $0x178] sm:$0xff] }
 0x130   :  { %v2437_v38 = vpop.f32.mrf.mxu2  ;;  %v2232_v29 = vpop.f32.mrf.mxu0 }
 0x131   :  { %v5075_v62 = vadd.f32 %v2437_v38, %v2334_v44  ;;  %v2336_v31 = vpop.f32.mrf.mxu1  ;;  %v416_v44 = vunpack.c.h.bf16 %v65_v46  ;;  %v1033_v38 = vmul.f32 %v4948_v0, %v431_v57  ;;  %v1948_v57 = vld [vmem:[%s7637_s0 + $0x550] sm:$0xff] }
 0x132   :  { %v2337_v36 = vadd.f32 %v2336_v31, %v2232_v29 }
 0x133   :  { %2523 = vmatmul.bf16.gmra.mxu3 %v1571_v42  ;;  %2612 = vmatmul.bf16.gmra.mxu0 %v1527_v11  ;;  %v415_v42 = vunpack.c.l.bf16 %v65_v46  ;;  %v1018_v3 = vmul.f32 %v4948_v0, %v416_v44  ;;  %v1034_v46 = vmul.f32 %v4952_v30, %v432_v49 }
 0x134   :  { %2716 = vmatmul.bf16.gmra.mxu1 %v1528_v21  ;;  %v3827_v21 = vld [vmem:[%s7638_s2 + $0x3c8] sm:$0xff] }
 0x135   :  { %2820 = vmatmul.bf16.gmra.mxu2 %v1529_v9  ;;  %v1017_v32 = vmul.f32 %v4943_v48, %v415_v42  ;;  %v564_v29 = vunpack.c.h.bf16 %v3827_v21  ;;  %v3828_v9 = vld [vmem:[%s7638_s2 + $0x404] sm:$0xff]  ;;  %v1543_v42 = vpack.c.bf16 %v1033_v38, %v1018_v3  ;;  %v89_v38 = vld [vmem:[%s7638_s2 + $0x22c] sm:$0xff] }
 0x136   :  { %v2475_v63 = vpop.f32.mrf.mxu3  ;;  %v579_v31 = vunpack.c.h.bf16 %v3828_v9 }
 0x137   :  { %v5101_v17 = vadd.f32 %v2475_v63, %v4894_v27  ;;  %v1901_v27 = vld [vmem:[%s7637_s0 + $0x3d8] sm:$0xff]  ;;  %v1542_v63 = vpack.c.bf16 %v1032_v28, %v1017_v32  ;;  %v1916_v32 = vld [vmem:[%s7637_s0 + $0x450] sm:$0xff] }
 0x138   :  { %v2440_v56 = vpop.f32.mrf.mxu2  ;;  %v2234_v43 = vpop.f32.mrf.mxu0  ;;  %v2067_v11 = vpack.c.bf16 %v1901_v27, %v1900_v22  ;;  %v1917_v22 = vld [vmem:[%s7637_s0 + $0x458] sm:$0xff]  ;;  %v81_v28 = vld [vmem:[%s7638_s2 + $0x1f0] sm:$0xff] }
 0x139   :  { %v5103_v1 = vadd.f32 %v2440_v56, %v2337_v36  ;;  %v2338_v16 = vpop.f32.mrf.mxu1  ;;  %v1019_v36 = vmul.f32 %v4952_v30, %v417_v25  ;;  %v5135_v25 = vmul.f32 %v4144_v19, %v564_v29  ;;  %v2075_v3 = vpack.c.bf16 %v1917_v22, %v1916_v32  ;;  %v3829_v22 = vld [vmem:[%s7638_s2 + $0x440] sm:$0xff] }
 0x13a   :  { %v2339_v58 = vadd.f32 %v2338_v16, %v2234_v43  ;;  %2908 = vmatpush.bf16.msra.mxu3 %v2067_v11  ;;  %v1949_v43 = vld [vmem:[%s7637_s0 + $0x558] sm:$0xff]  ;;  %v1932_v11 = vld [vmem:[%s7637_s0 + $0x4d0] sm:$0xff]  ;;  %v445_v9 = vunpack.c.l.bf16 %v81_v28 }
 0x13b   :  { %v1544_v44 = vpack.c.bf16 %v1034_v46, %v1019_v36  ;;  %v2091_v16 = vpack.c.bf16 %v1949_v43, %v1948_v57  ;;  %3012 = vmatpush.bf16.msra.mxu0 %v2075_v3  ;;  %v2083_v21 = vpack.c.bf16 %v1933_v51, %v1932_v11  ;;  %v460_v46 = vunpack.c.l.bf16 %v89_v38 }
 0x13d   :  { %3220 = vmatpush.bf16.msra.mxu2 %v2091_v16  ;;  %3116 = vmatpush.bf16.msra.mxu1 %v2083_v21  ;;  %v1062_v16 = vmul.f32 %v4943_v48, %v460_v46 }
 0x13e   :  { %v2477_v41 = vpop.f32.mrf.mxu3 }
 0x13f   :  { %v5124_v14 = vadd.f32 %v2477_v41, %v4913_v47  ;;  %v5138_v47 = vmul.f32 %v4144_v19, %v579_v31  ;;  %v446_v41 = vunpack.c.h.bf16 %v81_v28  ;;  %v594_v28 = vunpack.c.h.bf16 %v3829_v22 }
 0x140   :  { %v2442_v8 = vpop.f32.mrf.mxu2  ;;  %v2237_v39 = vpop.f32.mrf.mxu0 }
 0x141   :  { %v5126_v56 = vadd.f32 %v2442_v8, %v2339_v58  ;;  %v2341_v49 = vpop.f32.mrf.mxu1  ;;  %v1616_v27 = vpack.c.bf16 %v5138_v47, %v5135_v25  ;;  %v461_v8 = vunpack.c.h.bf16 %v89_v38  ;;  %v1048_v32 = vmul.f32 %v4948_v0, %v446_v41  ;;  %v1947_v25 = vld [vmem:[%s7637_s0 + $0x548] sm:$0xff] }
 0x142   :  { %v2342_v58 = vadd.f32 %v2341_v49, %v2237_v39  ;;  %v447_v39 = vunpack.c.l.bf16 %v82_v18  ;;  %v1047_v49 = vmul.f32 %v4943_v48, %v445_v9  ;;  %v5192_v41 = vmul.f32 %v4144_v19, %v594_v28  ;;  %v114_v47 = vld [vmem:[%s7638_s2 + $0x2e8] sm:$0xff] }
 0x143   :  { %2528 = vmatmul.bf16.gmra.mxu3 %v1586_v59  ;;  %2617 = vmatmul.bf16.gmra.mxu0 %v1542_v63  ;;  %v90_v59 = vld [vmem:[%s7638_s2 + $0x234] sm:$0xff] }
 0x144   :  { %2721 = vmatmul.bf16.gmra.mxu1 %v1543_v42  ;;  %v1049_v38 = vmul.f32 %v4952_v30, %v447_v39  ;;  %v1557_v21 = vpack.c.bf16 %v1062_v16, %v1047_v49 }
 0x145   :  { %2825 = vmatmul.bf16.gmra.mxu2 %v1544_v44  ;;  %v462_v44 = vunpack.c.l.bf16 %v90_v59 }
 0x146   :  { %v2480_v29 = vpop.f32.mrf.mxu3 }
 0x147   :  { %v5170_v36 = vadd.f32 %v2480_v29, %v4946_v45  ;;  %v1063_v45 = vmul.f32 %v4948_v0, %v461_v8  ;;  %v1064_v11 = vmul.f32 %v4952_v30, %v462_v44 }
 0x148   :  { %v2445_v31 = vpop.f32.mrf.mxu2  ;;  %v2239_v42 = vpop.f32.mrf.mxu0 }
 0x149   :  { %v5172_v63 = vadd.f32 %v2445_v31, %v2342_v58  ;;  %v2343_v57 = vpop.f32.mrf.mxu1  ;;  %v3830_v58 = vld [vmem:[%s7638_s2 + $0x47c] sm:$0xff]  ;;  %v1558_v29 = vpack.c.bf16 %v1063_v45, %v1048_v32  ;;  %v1559_v46 = vpack.c.bf16 %v1064_v11, %v1049_v38  ;;  %v492_v38 = vunpack.c.l.bf16 %v106_v12 }
 0x14a   :  { %v2344_v43 = vadd.f32 %v2343_v57, %v2239_v42  ;;  %v609_v3 = vunpack.c.h.bf16 %v3830_v58  ;;  %v105_v57 = vld [vmem:[%s7638_s2 + $0x2a4] sm:$0xff] }
 0x14b   :  { %v490_v32 = vunpack.c.l.bf16 %v105_v57  ;;  %v491_v22 = vunpack.c.h.bf16 %v105_v57  ;;  %v1094_v57 = vmul.f32 %v4952_v30, %v492_v38 }
 0x14c   :  { %v5195_v8 = vmul.f32 %v4144_v19, %v609_v3 }
 0x14e   :  { %v2482_v51 = vpop.f32.mrf.mxu3  ;;  %v1631_v44 = vpack.c.bf16 %v5195_v8, %v5192_v41  ;;  %v138_v41 = vld [vmem:[%s7638_s2 + $0x39c] sm:$0xff] }
 0x14f   :  { %v5187_v59 = vadd.f32 %v2482_v51, %v4963_v5  ;;  %v97_v5 = vld [vmem:[%s7638_s2 + $0x268] sm:$0xff] }
 0x150   :  { %v2447_v18 = vpop.f32.mrf.mxu2  ;;  %v2242_v31 = vpop.f32.mrf.mxu0  ;;  %v476_v45 = vunpack.c.h.bf16 %v97_v5 }
 0x151   :  { %v5189_v9 = vadd.f32 %v2447_v18, %v2344_v43  ;;  %v2346_v42 = vpop.f32.mrf.mxu1  ;;  %v98_v43 = vld [vmem:[%s7638_s2 + $0x270] sm:$0xff] }
 0x152   :  { %v2347_v39 = vadd.f32 %v2346_v42, %v2242_v31  ;;  %v477_v3 = vunpack.c.l.bf16 %v98_v43  ;;  %v1093_v31 = vmul.f32 %v4948_v0, %v491_v22  ;;  %v3832_v42 = vld [vmem:[%s7638_s2 + $0x4f4] sm:$0xff] }
 0x153   :  { %2533 = vmatmul.bf16.gmra.mxu3 %v1601_v15  ;;  %2622 = vmatmul.bf16.gmra.mxu0 %v1557_v21  ;;  %v475_v15 = vunpack.c.l.bf16 %v97_v5  ;;  %v1092_v21 = vmul.f32 %v4943_v48, %v490_v32 }
 0x154   :  { %2726 = vmatmul.bf16.gmra.mxu1 %v1558_v29  ;;  %v1078_v29 = vmul.f32 %v4948_v0, %v476_v45  ;;  %v1079_v5 = vmul.f32 %v4952_v30, %v477_v3  ;;  %v1899_v3 = vld [vmem:[%s7637_s0 + $0x3c8] sm:$0xff] }
 0x155   :  { %2830 = vmatmul.bf16.gmra.mxu2 %v1559_v46  ;;  %v1077_v18 = vmul.f32 %v4943_v48, %v475_v15 }
 0x156   :  { %v2485_v23 = vpop.f32.mrf.mxu3  ;;  %v1574_v22 = vpack.c.bf16 %v1094_v57, %v1079_v5 }
 0x157   :  { %v5215_v16 = vadd.f32 %v2485_v23, %v4997_v54  ;;  %v3831_v54 = vld [vmem:[%s7638_s2 + $0x4b8] sm:$0xff]  ;;  %v1572_v15 = vpack.c.bf16 %v1092_v21, %v1077_v18 }
 0x158   :  { %v2450_v49 = vpop.f32.mrf.mxu2  ;;  %v2244_v58 = vpop.f32.mrf.mxu0  ;;  %v624_v46 = vunpack.c.h.bf16 %v3831_v54  ;;  %v1946_v54 = vld [vmem:[%s7637_s0 + $0x540] sm:$0xff] }
 0x159   :  { %v5217_v28 = vadd.f32 %v2450_v49, %v2347_v39  ;;  %v2348_v11 = vpop.f32.mrf.mxu1  ;;  %v639_v39 = vunpack.c.h.bf16 %v3832_v42  ;;  %v1573_v49 = vpack.c.bf16 %v1093_v31, %v1078_v29  ;;  %v113_v29 = vld [vmem:[%s7638_s2 + $0x2e0] sm:$0xff] }
 0x15a   :  { %v2349_v51 = vadd.f32 %v2348_v11, %v2244_v58  ;;  %v1898_v58 = vld [vmem:[%s7637_s0 + $0x3c0] sm:$0xff]  ;;  %v5243_v38 = vmul.f32 %v4144_v19, %v624_v46  ;;  %v2090_v46 = vpack.c.bf16 %v1947_v25, %v1946_v54 }
 0x15b   :  { %v2066_v18 = vpack.c.bf16 %v1899_v3, %v1898_v58  ;;  %v121_v31 = vld [vmem:[%s7638_s2 + $0x31c] sm:$0xff] }
 0x15c   :  { %3221 = vmatpush.bf16.msra.mxu2 %v2090_v46  ;;  %v1914_v3 = vld [vmem:[%s7637_s0 + $0x440] sm:$0xff] }
 0x15d   :  { %2909 = vmatpush.bf16.msra.mxu3 %v2066_v18 }
 0x15e   :  { %v2487_v43 = vpop.f32.mrf.mxu3 }
 0x15f   :  { %v5232_v23 = vadd.f32 %v2487_v43, %v5028_v37  ;;  %v5246_v37 = vmul.f32 %v4144_v19, %v639_v39  ;;  %v505_v39 = vunpack.c.l.bf16 %v113_v29  ;;  %v520_v43 = vunpack.c.l.bf16 %v121_v31 }
 0x160   :  { %v2452_v12 = vpop.f32.mrf.mxu2  ;;  %v2247_v45 = vpop.f32.mrf.mxu0 }
 0x161   :  { %7641 = vst [vmem:[#allocation2_spill] sm:$0xff] %v5232_v23  ;;  %v5234_v32 = vadd.f32 %v2452_v12, %v2349_v51  ;;  %v2351_v11 = vpop.f32.mrf.mxu1  ;;  %v506_v12 = vunpack.c.h.bf16 %v113_v29  ;;  %v1107_v29 = vmul.f32 %v4943_v48, %v505_v39  ;;  %v1122_v25 = vmul.f32 %v4943_v48, %v520_v43 }
 0x162   :  { %v2352_v51 = vadd.f32 %v2351_v11, %v2247_v45  ;;  %v1915_v11 = vld [vmem:[%s7637_s0 + $0x448] sm:$0xff] }
 0x163   :  { %2538 = vmatmul.bf16.gmra.mxu3 %v1616_v27  ;;  %2627 = vmatmul.bf16.gmra.mxu0 %v1572_v15  ;;  %v122_v27 = vld [vmem:[%s7638_s2 + $0x324] sm:$0xff]  ;;  %v521_v15 = vunpack.c.h.bf16 %v121_v31 }
 0x164   :  { %2731 = vmatmul.bf16.gmra.mxu1 %v1573_v49  ;;  %v522_v58 = vunpack.c.l.bf16 %v122_v27  ;;  %v1931_v31 = vld [vmem:[%s7637_s0 + $0x4c8] sm:$0xff] }
 0x165   :  { %2835 = vmatmul.bf16.gmra.mxu2 %v1574_v22  ;;  %v507_v22 = vunpack.c.l.bf16 %v114_v47  ;;  %v1108_v47 = vmul.f32 %v4948_v0, %v506_v12  ;;  %v1123_v27 = vmul.f32 %v4948_v0, %v521_v15 }
 0x166   :  { %v2499_v42 = vpop.f32.mrf.mxu3  ;;  %v1124_v43 = vmul.f32 %v4952_v30, %v522_v58 }
 0x167   :  { %v5272_v57 = vadd.f32 %v2499_v42, %v4619_v60  ;;  %v2074_v60 = vpack.c.bf16 %v1915_v11, %v1914_v3  ;;  %v3833_v42 = vld [vmem:[%s7638_s2 + $0x530] sm:$0xff]  ;;  %v1109_v3 = vmul.f32 %v4952_v30, %v507_v22 }
 0x168   :  { %v2455_v5 = vpop.f32.mrf.mxu2  ;;  %v2249_v45 = vpop.f32.mrf.mxu0  ;;  %v654_v39 = vunpack.c.h.bf16 %v3833_v42 }
 0x169   :  { %v5274_v49 = vadd.f32 %v2455_v5, %v2352_v51  ;;  %v2353_v18 = vpop.f32.mrf.mxu1  ;;  %v1930_v51 = vld [vmem:[%s7637_s0 + $0x4c0] sm:$0xff]  ;;  %3013 = vmatpush.bf16.msra.mxu0 %v2074_v60  ;;  %v3834_v5 = vld [vmem:[%s7638_s2 + $0x56c] sm:$0xff]  ;;  %v1588_v60 = vpack.c.bf16 %v1123_v27, %v1108_v47  ;;  %v1589_v42 = vpack.c.bf16 %v1124_v43, %v1109_v3 }
 0x16a   :  { %v2354_v54 = vadd.f32 %v2353_v18, %v2249_v45  ;;  %v2082_v46 = vpack.c.bf16 %v1931_v31, %v1930_v51  ;;  %v669_v45 = vunpack.c.h.bf16 %v3834_v5  ;;  %v1587_v18 = vpack.c.bf16 %v1122_v25, %v1107_v29  ;;  %v130_v29 = vld [vmem:[%s7638_s2 + $0x360] sm:$0xff] }
 0x16b   :  { %v5306_v21 = vmul.f32 %v4144_v19, %v654_v39 }
 0x16c   :  { %3117 = vmatpush.bf16.msra.mxu1 %v2082_v46  ;;  %v5309_v5 = vmul.f32 %v4144_v19, %v669_v45 }
 0x16e   :  { %v2501_v12 = vpop.f32.mrf.mxu3 }
 0x16f   :  { %v5301_v15 = vadd.f32 %v2501_v12, %v4643_v7  ;;  %v129_v7 = vld [vmem:[%s7638_s2 + $0x358] sm:$0xff]  ;;  %v537_v12 = vunpack.c.l.bf16 %v130_v29 }
 0x170   :  { %v2457_v11 = vpop.f32.mrf.mxu2  ;;  %v2252_v31 = vpop.f32.mrf.mxu0  ;;  %v535_v47 = vunpack.c.l.bf16 %v129_v7  ;;  %v536_v39 = vunpack.c.h.bf16 %v129_v7 }
 0x171   :  { %v5303_v51 = vadd.f32 %v2457_v11, %v2354_v54  ;;  %v2356_v22 = vpop.f32.mrf.mxu1  ;;  %v137_v54 = vld [vmem:[%s7638_s2 + $0x394] sm:$0xff]  ;;  %v552_v11 = vunpack.c.l.bf16 %v138_v41 }
 0x172   :  { %v2357_v58 = vadd.f32 %v2356_v22, %v2252_v31  ;;  %v550_v27 = vunpack.c.l.bf16 %v137_v54  ;;  %v551_v43 = vunpack.c.h.bf16 %v137_v54  ;;  %v1137_v31 = vmul.f32 %v4943_v48, %v535_v47 }
 0x173   :  { %2543 = vmatmul.bf16.gmra.mxu3 %v1631_v44  ;;  %2632 = vmatmul.bf16.gmra.mxu0 %v1587_v18  ;;  %v1138_v22 = vmul.f32 %v4948_v0, %v536_v39  ;;  %v1154_v7 = vmul.f32 %v4952_v30, %v552_v11  ;;  %v7642_v39 = vpack.c.bf16 %v5246_v37, %v5243_v38  ;;  %v1897_v38 = vld [vmem:[%s7637_s0 + $0x3b8] sm:$0xff] }
 0x174   :  { %2736 = vmatmul.bf16.gmra.mxu1 %v1588_v60  ;;  %v146_v37 = vld [vmem:[%s7638_s2 + $0x3d8] sm:$0xff] }
 0x175   :  { %2840 = vmatmul.bf16.gmra.mxu2 %v1589_v42  ;;  %v1152_v42 = vmul.f32 %v4943_v48, %v550_v27  ;;  %v154_v11 = vld [vmem:[%s7638_s2 + $0x414] sm:$0xff] }
 0x176   :  { %v2504_v8 = vpop.f32.mrf.mxu3 }
 0x177   :  { %v5329_v25 = vadd.f32 %v2504_v8, %v4677_v53  ;;  %v1153_v53 = vmul.f32 %v4948_v0, %v551_v43  ;;  %v1139_v8 = vmul.f32 %v4952_v30, %v537_v12  ;;  %v1602_v29 = vpack.c.bf16 %v1152_v42, %v1137_v31  ;;  %v145_v43 = vld [vmem:[%s7638_s2 + $0x3d0] sm:$0xff] }
 0x178   :  { %v2460_v44 = vpop.f32.mrf.mxu2  ;;  %v2254_v3 = vpop.f32.mrf.mxu0  ;;  %v1896_v12 = vld [vmem:[%s7637_s0 + $0x3b0] sm:$0xff] }
 0x179   :  { %v5331_v45 = vadd.f32 %v2460_v44, %v2357_v58  ;;  %v2358_v18 = vpop.f32.mrf.mxu1  ;;  %v1603_v47 = vpack.c.bf16 %v1153_v53, %v1138_v22  ;;  %v565_v53 = vunpack.c.l.bf16 %v145_v43 }
 0x17a   :  { %v2359_v60 = vadd.f32 %v2358_v18, %v2254_v3  ;;  %v1604_v18 = vpack.c.bf16 %v1154_v7, %v1139_v8  ;;  %v566_v7 = vunpack.c.h.bf16 %v145_v43  ;;  %v1912_v43 = vld [vmem:[%s7637_s0 + $0x430] sm:$0xff] }
 0x17e   :  { %v2506_v58 = vpop.f32.mrf.mxu3 }
 0x17f   :  { %v5340_v54 = vadd.f32 %v2506_v58, %v4719_v4  ;;  %v153_v4 = vld [vmem:[%s7638_s2 + $0x40c] sm:$0xff] }
 0x180   :  { %v2462_v44 = vpop.f32.mrf.mxu2  ;;  %v2257_v3 = vpop.f32.mrf.mxu0  ;;  %v580_v8 = vunpack.c.l.bf16 %v153_v4 }
 0x181   :  { %v5342_v41 = vadd.f32 %v2462_v44, %v2359_v60  ;;  %v2361_v27 = vpop.f32.mrf.mxu1  ;;  %v2065_v60 = vpack.c.bf16 %v1897_v38, %v1896_v12  ;;  %v1168_v38 = vmul.f32 %v4948_v0, %v566_v7 }
 0x182   :  { %v2362_v46 = vadd.f32 %v2361_v27, %v2257_v3  ;;  %v567_v3 = vunpack.c.l.bf16 %v146_v37  ;;  %v1182_v12 = vmul.f32 %v4943_v48, %v580_v8 }
 0x183   :  { %2548 = vmatmul.bf16.gmra.mxu3 %v7642_v39  ;;  %2637 = vmatmul.bf16.gmra.mxu0 %v1602_v29  ;;  %v581_v29 = vunpack.c.h.bf16 %v153_v4  ;;  %v1167_v39 = vmul.f32 %v4943_v48, %v565_v53 }
 0x184   :  { %2741 = vmatmul.bf16.gmra.mxu1 %v1603_v47  ;;  %2910 = vmatpush.bf16.msra.mxu3 %v2065_v60  ;;  %v582_v47 = vunpack.c.l.bf16 %v154_v11  ;;  %v1169_v37 = vmul.f32 %v4952_v30, %v567_v3 }
 0x185   :  { %2845 = vmatmul.bf16.gmra.mxu2 %v1604_v18  ;;  %v1183_v4 = vmul.f32 %v4948_v0, %v581_v29 }
 0x186   :  { %v2509_v31 = vpop.f32.mrf.mxu3  ;;  %v1184_v11 = vmul.f32 %v4952_v30, %v582_v47  ;;  %v1928_v47 = vld [vmem:[%s7637_s0 + $0x4b0] sm:$0xff] }
 0x187   :  { %v5366_v22 = vadd.f32 %v2509_v31, %v4741_v40  ;;  %v1944_v40 = vld [vmem:[%s7637_s0 + $0x530] sm:$0xff]  ;;  %v1913_v31 = vld [vmem:[%s7637_s0 + $0x438] sm:$0xff]  ;;  %v1618_v3 = vpack.c.bf16 %v1183_v4, %v1168_v38  ;;  %v3836_v4 = vld [vmem:[%s7638_s2 + $0x5e4] sm:$0xff] }
 0x188   :  { %v2465_v42 = vpop.f32.mrf.mxu2  ;;  %v2259_v44 = vpop.f32.mrf.mxu0  ;;  %v1619_v23 = vpack.c.bf16 %v1184_v11, %v1169_v37  ;;  %v699_v37 = vunpack.c.h.bf16 %v3836_v4 }
 0x189   :  { %v5368_v58 = vadd.f32 %v2465_v42, %v2362_v46  ;;  %v2363_v18 = vpop.f32.mrf.mxu1  ;;  %v1945_v46 = vld [vmem:[%s7637_s0 + $0x538] sm:$0xff]  ;;  %v2073_v42 = vpack.c.bf16 %v1913_v31, %v1912_v43 }
 0x18a   :  { %v2364_v27 = vadd.f32 %v2363_v18, %v2259_v44  ;;  %v2089_v60 = vpack.c.bf16 %v1945_v46, %v1944_v40  ;;  %v1617_v44 = vpack.c.bf16 %v1182_v12, %v1167_v39  ;;  %v1929_v40 = vld [vmem:[%s7637_s0 + $0x4b8] sm:$0xff]  ;;  %v161_v39 = vld [vmem:[%s7638_s2 + $0x448] sm:$0xff] }
 0x18b   :  { %3014 = vmatpush.bf16.msra.mxu0 %v2073_v42  ;;  %v169_v12 = vld [vmem:[%s7638_s2 + $0x484] sm:$0xff]  ;;  %v595_v42 = vunpack.c.l.bf16 %v161_v39 }
 0x18c   :  { %3222 = vmatpush.bf16.msra.mxu2 %v2089_v60 }
 0x18e   :  { %v2511_v53 = vpop.f32.mrf.mxu3 }
 0x18f   :  { %v5389_v7 = vadd.f32 %v2511_v53, %v4755_v13  ;;  %v2081_v13 = vpack.c.bf16 %v1929_v40, %v1928_v47  ;;  %v610_v53 = vunpack.c.l.bf16 %v169_v12 }
 0x190   :  { %v2467_v8 = vpop.f32.mrf.mxu2  ;;  %v2603_v29 = vpop.f32.mrf.mxu0 }
 0x191   :  { %v5391_v18 = vadd.f32 %v2467_v8, %v2364_v27  ;;  %v2604_v46 = vadd.f32 %v2603_v29, %v5272_v57  ;;  %v2707_v43 = vpop.f32.mrf.mxu1  ;;  %v7643_v27 = vpack.c.bf16 %v5309_v5, %v5306_v21  ;;  %v162_v57 = vld [vmem:[%s7638_s2 + $0x450] sm:$0xff]  ;;  %3118 = vmatpush.bf16.msra.mxu1 %v2081_v13  ;;  %v596_v8 = vunpack.c.h.bf16 %v161_v39 }
 0x192   :  { %v170_v21 = vld [vmem:[%s7638_s2 + $0x48c] sm:$0xff]  ;;  %v597_v47 = vunpack.c.l.bf16 %v162_v57 }
 0x193   :  { %v2708_v60 = vadd.f32 %v2707_v43, %v2604_v46  ;;  %2553 = vmatmul.bf16.gmra.mxu3 %v7643_v27  ;;  %2642 = vmatmul.bf16.gmra.mxu0 %v1617_v44  ;;  %v612_v40 = vunpack.c.l.bf16 %v170_v21  ;;  %v1198_v39 = vmul.f32 %v4948_v0, %v596_v8 }
 0x194   :  { %2746 = vmatmul.bf16.gmra.mxu1 %v1618_v3  ;;  %v611_v3 = vunpack.c.h.bf16 %v169_v12  ;;  %v1199_v12 = vmul.f32 %v4952_v30, %v597_v47  ;;  %v185_v47 = vld [vmem:[%s7638_s2 + $0x4fc] sm:$0xff] }
 0x195   :  { %2850 = vmatmul.bf16.gmra.mxu2 %v1619_v23  ;;  %v3835_v23 = vld [vmem:[%s7638_s2 + $0x5a8] sm:$0xff]  ;;  %v1214_v57 = vmul.f32 %v4952_v30, %v612_v40 }
 0x196   :  { %v2514_v5 = vpop.f32.mrf.mxu3  ;;  %v684_v38 = vunpack.c.h.bf16 %v3835_v23  ;;  %v1301_v23 = vmul.f32 %v4144_v19, %v699_v37  ;;  %v178_v40 = vld [vmem:[%s7638_s2 + $0x4c8] sm:$0xff] }
 0x197   :  { %v5422_v11 = vadd.f32 %v2514_v5, %v4785_v55  ;;  %v1197_v55 = vmul.f32 %v4943_v48, %v595_v42  ;;  %v1212_v5 = vmul.f32 %v4943_v48, %v610_v53  ;;  %v1634_v53 = vpack.c.bf16 %v1214_v57, %v1199_v12 }
 0x198   :  { %v2811_v31 = vpop.f32.mrf.mxu2  ;;  %v2605_v29 = vpop.f32.mrf.mxu0  ;;  %v1286_v13 = vmul.f32 %v4144_v19, %v684_v38  ;;  %v640_v12 = vunpack.c.l.bf16 %v185_v47 }
 0x199   :  { %v5424_v44 = vadd.f32 %v2811_v31, %v2708_v60  ;;  %v2606_v46 = vadd.f32 %v2605_v29, %v5301_v15  ;;  %v2709_v43 = vpop.f32.mrf.mxu1  ;;  %v1213_v60 = vmul.f32 %v4948_v0, %v611_v3  ;;  %v1632_v31 = vpack.c.bf16 %v1212_v5, %v1197_v55 }
 0x19a   :  { %v1676_v4 = vpack.c.bf16 %v1301_v23, %v1286_v13  ;;  %v3837_v13 = vld [vmem:[%s7638_s2 + $0x620] sm:$0xff] }
 0x19b   :  { %v2710_v27 = vadd.f32 %v2709_v43, %v2606_v46  ;;  %v1633_v29 = vpack.c.bf16 %v1213_v60, %v1198_v39  ;;  %v3838_v23 = vld [vmem:[%s7638_s2 + $0x65c] sm:$0xff] }
 0x19c   :  { %v729_v55 = vunpack.c.h.bf16 %v3838_v23 }
 0x19e   :  { %v2516_v21 = vpop.f32.mrf.mxu3 }
 0x19f   :  { %v5436_v15 = vadd.f32 %v2516_v21, %v4809_v33  ;;  %v177_v33 = vld [vmem:[%s7638_s2 + $0x4c0] sm:$0xff] }
 0x1a0   :  { %v2813_v38 = vpop.f32.mrf.mxu2  ;;  %v2608_v42 = vpop.f32.mrf.mxu0  ;;  %v625_v60 = vunpack.c.l.bf16 %v177_v33  ;;  %v626_v57 = vunpack.c.h.bf16 %v177_v33 }
 0x1a1   :  { %v5438_v37 = vadd.f32 %v2813_v38, %v2710_v27  ;;  %v2609_v8 = vadd.f32 %v2608_v42, %v5329_v25  ;;  %v2712_v46 = vpop.f32.mrf.mxu1  ;;  %v186_v25 = vld [vmem:[%s7638_s2 + $0x504] sm:$0xff]  ;;  %v714_v27 = vunpack.c.h.bf16 %v3837_v13 }
 0x1a2   :  { %v642_v42 = vunpack.c.l.bf16 %v186_v25  ;;  %v1228_v33 = vmul.f32 %v4948_v0, %v626_v57 }
 0x1a3   :  { %v2713_v3 = vadd.f32 %v2712_v46, %v2609_v8  ;;  %2558 = vmatmul.bf16.gmra.mxu3 %v1676_v4  ;;  %2647 = vmatmul.bf16.gmra.mxu0 %v1632_v31  ;;  %v641_v4 = vunpack.c.h.bf16 %v185_v47  ;;  %v627_v31 = vunpack.c.l.bf16 %v178_v40  ;;  %v1316_v8 = vmul.f32 %v4144_v19, %v714_v27 }
 0x1a4   :  { %2751 = vmatmul.bf16.gmra.mxu1 %v1633_v29  ;;  %v1331_v46 = vmul.f32 %v4144_v19, %v729_v55  ;;  %v1244_v25 = vmul.f32 %v4952_v30, %v642_v42 }
 0x1a5   :  { %2855 = vmatmul.bf16.gmra.mxu2 %v1634_v53  ;;  %v1243_v47 = vmul.f32 %v4948_v0, %v641_v4  ;;  %v1229_v40 = vmul.f32 %v4952_v30, %v627_v31  ;;  %v193_v31 = vld [vmem:[%s7638_s2 + $0x538] sm:$0xff] }
 0x1a6   :  { %v2519_v43 = vpop.f32.mrf.mxu3 }
 0x1a7   :  { %v5460_v5 = vadd.f32 %v2519_v43, %v4837_v61  ;;  %v1227_v61 = vmul.f32 %v4943_v48, %v625_v60  ;;  %v1242_v43 = vmul.f32 %v4943_v48, %v640_v12  ;;  %v1691_v60 = vpack.c.bf16 %v1331_v46, %v1316_v8  ;;  %v1942_v8 = vld [vmem:[%s7637_s0 + $0x520] sm:$0xff] }
 0x1a8   :  { %v2816_v39 = vpop.f32.mrf.mxu2  ;;  %v2610_v38 = vpop.f32.mrf.mxu0 }
 0x1a9   :  { %v5462_v21 = vadd.f32 %v2816_v39, %v2713_v3  ;;  %v2611_v29 = vadd.f32 %v2610_v38, %v5340_v54  ;;  %v2714_v53 = vpop.f32.mrf.mxu1  ;;  %v1894_v3 = vld [vmem:[%s7637_s0 + $0x3a0] sm:$0xff]  ;;  %v1895_v54 = vld [vmem:[%s7637_s0 + $0x3a8] sm:$0xff]  ;;  %v1647_v12 = vpack.c.bf16 %v1242_v43, %v1227_v61 }
 0x1aa   :  { %v2064_v27 = vpack.c.bf16 %v1895_v54, %v1894_v3  ;;  %v1926_v61 = vld [vmem:[%s7637_s0 + $0x4a0] sm:$0xff]  ;;  %v1927_v54 = vld [vmem:[%s7637_s0 + $0x4a8] sm:$0xff] }
 0x1ab   :  { %7644 = vst [vmem:[#allocation3_spill] sm:$0xff] %v5462_v21  ;;  %v2715_v13 = vadd.f32 %v2714_v53, %v2611_v29  ;;  %v1648_v29 = vpack.c.bf16 %v1243_v47, %v1228_v33  ;;  %v1649_v53 = vpack.c.bf16 %v1244_v25, %v1229_v40  ;;  %v194_v43 = vld [vmem:[%s7638_s2 + $0x540] sm:$0xff]  ;;  %v3839_v40 = vld [vmem:[%s7638_s2 + $0x698] sm:$0xff] }
 0x1ac   :  { %2911 = vmatpush.bf16.msra.mxu3 %v2064_v27  ;;  %v202_v33 = vld [vmem:[%s7638_s2 + $0x57c] sm:$0xff]  ;;  %v744_v25 = vunpack.c.h.bf16 %v3839_v40  ;;  %v3840_v27 = vld [vmem:[%s7638_s2 + $0x6d4] sm:$0xff] }
 0x1ae   :  { %v2521_v23 = vpop.f32.mrf.mxu3 }
 0x1af   :  { %v5480_v55 = vadd.f32 %v2521_v23, %v4856_v24  ;;  %v201_v24 = vld [vmem:[%s7638_s2 + $0x574] sm:$0xff]  ;;  %v759_v23 = vunpack.c.h.bf16 %v3840_v27 }
 0x1b0   :  { %v2818_v39 = vpop.f32.mrf.mxu2  ;;  %v2613_v38 = vpop.f32.mrf.mxu0 }
 0x1b1   :  { %v5482_v57 = vadd.f32 %v2818_v39, %v2715_v13  ;;  %v2614_v4 = vadd.f32 %v2613_v38, %v5366_v22  ;;  %v2717_v21 = vpop.f32.mrf.mxu1  ;;  %v1943_v22 = vld [vmem:[%s7637_s0 + $0x528] sm:$0xff]  ;;  %v655_v39 = vunpack.c.l.bf16 %v193_v31 }
 0x1b2   :  { %v2088_v46 = vpack.c.bf16 %v1943_v22, %v1942_v8  ;;  %v1911_v13 = vld [vmem:[%s7637_s0 + $0x428] sm:$0xff] }
 0x1b3   :  { %v2718_v42 = vadd.f32 %v2717_v21, %v2614_v4  ;;  %2563 = vmatmul.bf16.gmra.mxu3 %v1691_v60  ;;  %2652 = vmatmul.bf16.gmra.mxu0 %v1647_v12  ;;  %v1910_v21 = vld [vmem:[%s7637_s0 + $0x420] sm:$0xff]  ;;  %v2080_v60 = vpack.c.bf16 %v1927_v54, %v1926_v61  ;;  %v671_v4 = vunpack.c.h.bf16 %v201_v24  ;;  %v1361_v61 = vmul.f32 %v4144_v19, %v759_v23 }
 0x1b4   :  { %2756 = vmatmul.bf16.gmra.mxu1 %v1648_v29  ;;  %v2072_v3 = vpack.c.bf16 %v1911_v13, %v1910_v21  ;;  %3223 = vmatpush.bf16.msra.mxu2 %v2088_v46  ;;  %v670_v29 = vunpack.c.l.bf16 %v201_v24  ;;  %v657_v21 = vunpack.c.l.bf16 %v194_v43  ;;  %v672_v13 = vunpack.c.l.bf16 %v202_v33  ;;  %v3841_v43 = vld [vmem:[%s7638_s2 + $0x788] sm:$0xff] }
 0x1b5   :  { %2860 = vmatmul.bf16.gmra.mxu2 %v1649_v53  ;;  %v656_v53 = vunpack.c.h.bf16 %v193_v31  ;;  %3119 = vmatpush.bf16.msra.mxu1 %v2080_v60  ;;  %v1346_v46 = vmul.f32 %v4144_v19, %v744_v25  ;;  %v804_v33 = vunpack.c.h.bf16 %v3841_v43 }
 0x1b6   :  { %v2524_v47 = vpop.f32.mrf.mxu3  ;;  %3015 = vmatpush.bf16.msra.mxu0 %v2072_v3  ;;  %v1272_v31 = vmul.f32 %v4943_v48, %v670_v29  ;;  %v1274_v25 = vmul.f32 %v4952_v30, %v672_v13 }
 0x1b7   :  { %v5522_v12 = vadd.f32 %v2524_v47, %v4896_v20  ;;  %v1257_v20 = vmul.f32 %v4943_v48, %v655_v39  ;;  %v1258_v24 = vmul.f32 %v4948_v0, %v656_v53  ;;  %v1259_v47 = vmul.f32 %v4952_v30, %v657_v21 }
 0x1b8   :  { %v2821_v38 = vpop.f32.mrf.mxu2  ;;  %v2615_v22 = vpop.f32.mrf.mxu0 }
 0x1b9   :  { %v5524_v8 = vadd.f32 %v2821_v38, %v2718_v42  ;;  %v2616_v40 = vadd.f32 %v2615_v22, %v5389_v7  ;;  %v2719_v27 = vpop.f32.mrf.mxu1  ;;  %v1273_v42 = vmul.f32 %v4948_v0, %v671_v4  ;;  %v3842_v7 = vld [vmem:[%s7638_s2 + $0x7c4] sm:$0xff]  ;;  %v1706_v38 = vpack.c.bf16 %v1361_v61, %v1346_v46  ;;  %v209_v46 = vld [vmem:[%s7638_s2 + $0x5b0] sm:$0xff] }
 0x1ba   :  { %v819_v3 = vunpack.c.h.bf16 %v3842_v7  ;;  %v1662_v29 = vpack.c.bf16 %v1272_v31, %v1257_v20  ;;  %v217_v61 = vld [vmem:[%s7638_s2 + $0x5ec] sm:$0xff]  ;;  %v218_v20 = vld [vmem:[%s7638_s2 + $0x5f4] sm:$0xff] }
 0x1bb   :  { %v2720_v54 = vadd.f32 %v2719_v27, %v2616_v40  ;;  %v1663_v53 = vpack.c.bf16 %v1273_v42, %v1258_v24  ;;  %v1664_v40 = vpack.c.bf16 %v1274_v25, %v1259_v47  ;;  %v5547_v27 = vmul.f32 %v4144_v19, %v804_v33  ;;  %v3843_v31 = vld [vmem:[%s7638_s2 + $0x710] sm:$0xff] }
 0x1bc   :  { %v5550_v43 = vmul.f32 %v4144_v19, %v819_v3  ;;  %v774_v24 = vunpack.c.h.bf16 %v3843_v31  ;;  %v3844_v42 = vld [vmem:[%s7638_s2 + $0x74c] sm:$0xff]  ;;  %v685_v3 = vunpack.c.l.bf16 %v209_v46 }
 0x1bd   :  { %v789_v33 = vunpack.c.h.bf16 %v3844_v42 }
 0x1be   :  { %v2526_v23 = vpop.f32.mrf.mxu3  ;;  %v1376_v31 = vmul.f32 %v4144_v19, %v774_v24 }
 0x1bf   :  { %v5542_v39 = vadd.f32 %v2526_v23, %v4915_v34  ;;  %v700_v23 = vunpack.c.l.bf16 %v217_v61  ;;  %v1391_v42 = vmul.f32 %v4144_v19, %v789_v33  ;;  %v1287_v34 = vmul.f32 %v4943_v48, %v685_v3 }
 0x1c0   :  { %v2823_v60 = vpop.f32.mrf.mxu2  ;;  %v2618_v22 = vpop.f32.mrf.mxu0 }
 0x1c1   :  { %v5544_v4 = vadd.f32 %v2823_v60, %v2720_v54  ;;  %v2619_v21 = vadd.f32 %v2618_v22, %v5422_v11  ;;  %v2722_v13 = vpop.f32.mrf.mxu1  ;;  %v210_v11 = vld [vmem:[%s7638_s2 + $0x5b8] sm:$0xff]  ;;  %v686_v60 = vunpack.c.h.bf16 %v209_v46 }
 0x1c2   :  { %v687_v22 = vunpack.c.l.bf16 %v210_v11 }
 0x1c3   :  { %v2723_v7 = vadd.f32 %v2722_v13, %v2619_v21  ;;  %2568 = vmatmul.bf16.gmra.mxu3 %v1706_v38  ;;  %2657 = vmatmul.bf16.gmra.mxu0 %v1662_v29  ;;  %v701_v38 = vunpack.c.h.bf16 %v217_v61  ;;  %v1288_v46 = vmul.f32 %v4948_v0, %v686_v60  ;;  %v3845_v61 = vld [vmem:[%s7638_s2 + $0x800] sm:$0xff]  ;;  %v1721_v60 = vpack.c.bf16 %v1391_v42, %v1376_v31  ;;  %v1892_v31 = vld [vmem:[%s7637_s0 + $0x390] sm:$0xff]  ;;  %v1893_v42 = vld [vmem:[%s7637_s0 + $0x398] sm:$0xff] }
 0x1c4   :  { %2761 = vmatmul.bf16.gmra.mxu1 %v1663_v53  ;;  %v834_v11 = vunpack.c.h.bf16 %v3845_v61  ;;  %v1289_v24 = vmul.f32 %v4952_v30, %v687_v22 }
 0x1c5   :  { %2865 = vmatmul.bf16.gmra.mxu2 %v1664_v40  ;;  %v702_v40 = vunpack.c.l.bf16 %v218_v20 }
 0x1c6   :  { %v2529_v54 = vpop.f32.mrf.mxu3 }
 0x1c7   :  { %v5574_v47 = vadd.f32 %v2529_v54, %v4950_v35  ;;  %v1302_v54 = vmul.f32 %v4943_v48, %v700_v23  ;;  %v1304_v33 = vmul.f32 %v4952_v30, %v702_v40 }
 0x1c8   :  { %v2826_v25 = vpop.f32.mrf.mxu2  ;;  %v2620_v53 = vpop.f32.mrf.mxu0 }
 0x1c9   :  { %v5576_v29 = vadd.f32 %v2826_v25, %v2723_v7  ;;  %v2621_v21 = vadd.f32 %v2620_v53, %v5436_v15  ;;  %v2724_v13 = vpop.f32.mrf.mxu1  ;;  %v1303_v7 = vmul.f32 %v4948_v0, %v701_v38  ;;  %v3846_v15 = vld [vmem:[%s7638_s2 + $0x83c] sm:$0xff]  ;;  %v1677_v38 = vpack.c.bf16 %v1302_v54, %v1287_v34  ;;  %v225_v34 = vld [vmem:[%s7638_s2 + $0x628] sm:$0xff]  ;;  %v226_v54 = vld [vmem:[%s7638_s2 + $0x630] sm:$0xff] }
 0x1ca   :  { %v849_v20 = vunpack.c.h.bf16 %v3846_v15  ;;  %v1679_v61 = vpack.c.bf16 %v1304_v33, %v1289_v24 }
 0x1cb   :  { %7645 = vst [vmem:[#allocation4_spill] sm:$0xff] %v5576_v29  ;;  %v2725_v35 = vadd.f32 %v2724_v13, %v2621_v21  ;;  %v1678_v53 = vpack.c.bf16 %v1303_v7, %v1288_v46  ;;  %v5599_v29 = vmul.f32 %v4144_v19, %v834_v11  ;;  %v234_v46 = vld [vmem:[%s7638_s2 + $0x66c] sm:$0xff]  ;;  %v715_v11 = vunpack.c.l.bf16 %v225_v34 }
 0x1cc   :  { %v5602_v15 = vmul.f32 %v4144_v19, %v849_v20 }
 0x1ce   :  { %v2531_v3 = vpop.f32.mrf.mxu3 }
 0x1cf   :  { %v5594_v25 = vadd.f32 %v2531_v3, %v4965_v52 }
 0x1d0   :  { %v2828_v23 = vpop.f32.mrf.mxu2  ;;  %v2623_v13 = vpop.f32.mrf.mxu0 }
 0x1d1   :  { %v5596_v21 = vadd.f32 %v2828_v23, %v2725_v35  ;;  %v2624_v22 = vadd.f32 %v2623_v13, %v5460_v5  ;;  %v2727_v40 = vpop.f32.mrf.mxu1  ;;  %v233_v5 = vld [vmem:[%s7638_s2 + $0x664] sm:$0xff]  ;;  %v2063_v35 = vpack.c.bf16 %v1893_v42, %v1892_v31  ;;  %v716_v23 = vunpack.c.h.bf16 %v225_v34 }
 0x1d2   :  { %v730_v33 = vunpack.c.l.bf16 %v233_v5  ;;  %v717_v13 = vunpack.c.l.bf16 %v226_v54 }
 0x1d3   :  { %7646 = vst [vmem:[#allocation5_spill] sm:$0xff] %v5596_v21  ;;  %v2728_v3 = vadd.f32 %v2727_v40, %v2624_v22  ;;  %2573 = vmatmul.bf16.gmra.mxu3 %v1721_v60  ;;  %2662 = vmatmul.bf16.gmra.mxu0 %v1677_v38  ;;  %v731_v60 = vunpack.c.h.bf16 %v233_v5  ;;  %v1940_v22 = vld [vmem:[%s7637_s0 + $0x510] sm:$0xff]  ;;  %v1941_v40 = vld [vmem:[%s7637_s0 + $0x518] sm:$0xff]  ;;  %v1317_v5 = vmul.f32 %v4943_v48, %v715_v11 }
 0x1d4   :  { %2766 = vmatmul.bf16.gmra.mxu1 %v1678_v53  ;;  %2912 = vmatpush.bf16.msra.mxu3 %v2063_v35  ;;  %v2087_v42 = vpack.c.bf16 %v1941_v40, %v1940_v22  ;;  %v1332_v54 = vmul.f32 %v4943_v48, %v730_v33  ;;  %v1924_v11 = vld [vmem:[%s7637_s0 + $0x490] sm:$0xff]  ;;  %v1925_v40 = vld [vmem:[%s7637_s0 + $0x498] sm:$0xff] }
 0x1d5   :  { %2870 = vmatmul.bf16.gmra.mxu2 %v1679_v61  ;;  %v732_v61 = vunpack.c.l.bf16 %v234_v46  ;;  %v1318_v46 = vmul.f32 %v4948_v0, %v716_v23  ;;  %v3848_v33 = vld [vmem:[%s7638_s2 + $0x8b4] sm:$0xff] }
 0x1d6   :  { %v2534_v7 = vpop.f32.mrf.mxu3  ;;  %3224 = vmatpush.bf16.msra.mxu2 %v2087_v42  ;;  %v879_v23 = vunpack.c.h.bf16 %v3848_v33  ;;  %v1692_v52 = vpack.c.bf16 %v1332_v54, %v1317_v5  ;;  %v7648_v5 = vpack.c.bf16 %v5550_v43, %v5547_v27  ;;  %v250_v27 = vld [vmem:[%s7638_s2 + $0x6e4] sm:$0xff] }
 0x1d7   :  { %v5626_v20 = vadd.f32 %v2534_v7, %v4999_v50  ;;  %v1333_v7 = vmul.f32 %v4948_v0, %v731_v60  ;;  %v1319_v60 = vmul.f32 %v4952_v30, %v717_v13 }
 0x1d8   :  { %v2831_v24 = vpop.f32.mrf.mxu2  ;;  %v2625_v53 = vpop.f32.mrf.mxu0 }
 0x1d9   :  { %v5628_v38 = vadd.f32 %v2831_v24, %v2728_v3  ;;  %v2626_v50 = vadd.f32 %v2625_v53, %v5480_v55  ;;  %v2729_v31 = vpop.f32.mrf.mxu1  ;;  %v3847_v3 = vld [vmem:[%s7638_s2 + $0x878] sm:$0xff]  ;;  %v1908_v55 = vld [vmem:[%s7637_s0 + $0x410] sm:$0xff]  ;;  %v1334_v53 = vmul.f32 %v4952_v30, %v732_v61 }
 0x1da   :  { %v864_v34 = vunpack.c.h.bf16 %v3847_v3  ;;  %v1909_v24 = vld [vmem:[%s7637_s0 + $0x418] sm:$0xff] }
 0x1db   :  { %7647 = vst [vmem:[#allocation6_spill] sm:$0xff] %v5628_v38  ;;  %v2730_v35 = vadd.f32 %v2729_v31, %v2626_v50  ;;  %v2071_v22 = vpack.c.bf16 %v1909_v24, %v1908_v55  ;;  %v2079_v50 = vpack.c.bf16 %v1925_v40, %v1924_v11  ;;  %v1693_v38 = vpack.c.bf16 %v1333_v7, %v1318_v46 }
 0x1dc   :  { %v1694_v21 = vpack.c.bf16 %v1334_v53, %v1319_v60  ;;  %v5667_v61 = vmul.f32 %v4144_v19, %v864_v34  ;;  %v5670_v55 = vmul.f32 %v4144_v19, %v879_v23  ;;  %v241_v34 = vld [vmem:[%s7638_s2 + $0x6a0] sm:$0xff]  ;;  %v762_v53 = vunpack.c.l.bf16 %v250_v27 }
 0x1dd   :  { %3016 = vmatpush.bf16.msra.mxu0 %v2071_v22  ;;  %3120 = vmatpush.bf16.msra.mxu1 %v2079_v50  ;;  %v249_v19 = vld [vmem:[%s7638_s2 + $0x6dc] sm:$0xff]  ;;  %v746_v54 = vunpack.c.h.bf16 %v241_v34 }
 0x1de   :  { %v2536_v31 = vpop.f32.mrf.mxu3  ;;  %v761_v23 = vunpack.c.h.bf16 %v249_v19 }
 0x1df   :  { %v5662_v42 = vadd.f32 %v2536_v31, %v5030_v2  ;;  %v1766_v2 = vpack.c.bf16 %v5670_v55, %v5667_v61  ;;  %v281_v61 = vld [vmem:[%s7638_s2 + $0x7cc] sm:$0xff] }
 0x1e0   :  { %v2833_v3 = vpop.f32.mrf.mxu2  ;;  %v2628_v13 = vpop.f32.mrf.mxu0 }
 0x1e1   :  { %v5664_v33 = vadd.f32 %v2833_v3, %v2730_v35  ;;  %v2629_v24 = vadd.f32 %v2628_v13, %v5522_v12  ;;  %v2732_v11 = vpop.f32.mrf.mxu1  ;;  %v242_v12 = vld [vmem:[%s7638_s2 + $0x6a8] sm:$0xff]  ;;  %v760_v35 = vunpack.c.l.bf16 %v249_v19  ;;  %v3849_v19 = vld [vmem:[%s7638_s2 + $0x18] sm:$0xff] }
 0x1e2   :  { %v747_v60 = vunpack.c.l.bf16 %v242_v12  ;;  %v328_v12 = vunpack.c.h.bf16 %v3849_v19 }
 0x1e3   :  { %v2733_v22 = vadd.f32 %v2732_v11, %v2629_v24  ;;  %2578 = vmatmul.bf16.gmra.mxu3 %v7648_v5  ;;  %2667 = vmatmul.bf16.gmra.mxu0 %v1692_v52  ;;  %v1362_v13 = vmul.f32 %v4943_v48, %v760_v35  ;;  %v1363_v24 = vmul.f32 %v4948_v0, %v761_v23  ;;  %v3850_v35 = vld [vmem:[%s7638_s2 + $0x54] sm:$0xff] }
 0x1e4   :  { %2771 = vmatmul.bf16.gmra.mxu1 %v1693_v38  ;;  %v745_v38 = vunpack.c.l.bf16 %v241_v34  ;;  %v1349_v11 = vmul.f32 %v4952_v30, %v747_v60  ;;  %v1890_v34 = vld [vmem:[%s7637_s0 + $0x380] sm:$0xff] }
 0x1e5   :  { %2875 = vmatmul.bf16.gmra.mxu2 %v1694_v21 }
 0x1e6   :  { %v2539_v43 = vpop.f32.mrf.mxu3  ;;  %v1347_v3 = vmul.f32 %v4943_v48, %v745_v38 }
 0x1e7   :  { %v5691_v52 = vadd.f32 %v2539_v43, %v5058_v10  ;;  %v1348_v10 = vmul.f32 %v4948_v0, %v746_v54  ;;  %v343_v54 = vunpack.c.h.bf16 %v3850_v35 }
 0x1e8   :  { %v2836_v21 = vpop.f32.mrf.mxu2  ;;  %v2630_v7 = vpop.f32.mrf.mxu0 }
 0x1e9   :  { %v5693_v46 = vadd.f32 %v2836_v21, %v2733_v22  ;;  %v2631_v40 = vadd.f32 %v2630_v7, %v5542_v39  ;;  %v2734_v50 = vpop.f32.mrf.mxu1  ;;  %v1364_v22 = vmul.f32 %v4952_v30, %v762_v53  ;;  %v1891_v39 = vld [vmem:[%s7637_s0 + $0x388] sm:$0xff]  ;;  %v1707_v21 = vpack.c.bf16 %v1362_v13, %v1347_v3 }
 0x1ea   :  { %v2062_v38 = vpack.c.bf16 %v1891_v39, %v1890_v34  ;;  %v1708_v60 = vpack.c.bf16 %v1363_v24, %v1348_v10 }
 0x1eb   :  { %v2735_v31 = vadd.f32 %v2734_v50, %v2631_v40  ;;  %v1709_v53 = vpack.c.bf16 %v1364_v22, %v1349_v11 }
 0x1ec   :  { %2913 = vmatpush.bf16.msra.mxu3 %v2062_v38 }
 0x1ee   :  { %v2541_v5 = vpop.f32.mrf.mxu3 }
 0x1ef   :  { %v5712_v27 = vadd.f32 %v2541_v5, %v5075_v62  ;;  %v3851_v62 = vld [vmem:[%s7639_s1] sm:$0xff]  ;;  %v7649_v5 = vpack.c.bf16 %v5602_v15, %v5599_v29 }
 0x1f0   :  { %v2838_v43 = vpop.f32.mrf.mxu2  ;;  %v2633_v23 = vpop.f32.mrf.mxu0  ;;  %v5723_v3 = vperm.slane %v3851_v62, 7  ;;  %v258_v29 = vld [vmem:[%s7638_s2 + $0x720] sm:$0xff] }
 0x1f1   :  { %v5717_v7 = vadd.f32 %v2838_v43, %v2735_v31  ;;  %v2634_v40 = vadd.f32 %v2633_v23, %v5574_v47  ;;  %v2737_v50 = vpop.f32.mrf.mxu1  ;;  %v257_v47 = vld [vmem:[%s7638_s2 + $0x718] sm:$0xff] }
 0x1f2   :  { %v265_v31 = vld [vmem:[%s7638_s2 + $0x754] sm:$0xff]  ;;  %v5735_v10 = vmul.f32 %v5723_v3, %v328_v12  ;;  %v5738_v24 = vmul.f32 %v5723_v3, %v343_v54  ;;  %v266_v15 = vld [vmem:[%s7638_s2 + $0x75c] sm:$0xff]  ;;  %v775_v19 = vunpack.c.l.bf16 %v257_v47  ;;  %v776_v43 = vunpack.c.h.bf16 %v257_v47 }
 0x1f3   :  { %v2738_v13 = vadd.f32 %v2737_v50, %v2634_v40  ;;  %2583 = vmatmul.bf16.gmra.mxu3 %v7649_v5  ;;  %2672 = vmatmul.bf16.gmra.mxu0 %v1707_v21  ;;  %v790_v12 = vunpack.c.l.bf16 %v265_v31  ;;  %v791_v35 = vunpack.c.h.bf16 %v265_v31  ;;  %v777_v54 = vunpack.c.l.bf16 %v258_v29  ;;  %v1938_v5 = vld [vmem:[%s7637_s0 + $0x500] sm:$0xff] }
 0x1f4   :  { %2776 = vmatmul.bf16.gmra.mxu1 %v1708_v60  ;;  %v1500_v22 = vpack.c.bf16 %v5738_v24, %v5735_v10  ;;  %v792_v23 = vunpack.c.l.bf16 %v266_v15  ;;  %v1377_v50 = vmul.f32 %v4943_v48, %v775_v19 }
 0x1f5   :  { %2880 = vmatmul.bf16.gmra.mxu2 %v1709_v53  ;;  %v1392_v62 = vmul.f32 %v4943_v48, %v790_v12  ;;  %v1393_v47 = vmul.f32 %v4948_v0, %v791_v35  ;;  %v1906_v35 = vld [vmem:[%s7637_s0 + $0x400] sm:$0xff] }
 0x1f6   :  { %v2544_v11 = vpop.f32.mrf.mxu3  ;;  %v1394_v31 = vmul.f32 %v4952_v30, %v792_v23 }
 0x1f7   :  { %v5749_v34 = vadd.f32 %v2544_v11, %v5103_v1  ;;  %v1378_v1 = vmul.f32 %v4948_v0, %v776_v43  ;;  %v1722_v19 = vpack.c.bf16 %v1392_v62, %v1377_v50  ;;  %v1923_v50 = vld [vmem:[%s7637_s0 + $0x488] sm:$0xff]  ;;  %v282_v62 = vld [vmem:[%s7638_s2 + $0x7d4] sm:$0xff] }
 0x1f8   :  { %v2841_v39 = vpop.f32.mrf.mxu2  ;;  %v2635_v38 = vpop.f32.mrf.mxu0 }
 0x1f9   :  { %v5751_v21 = vadd.f32 %v2841_v39, %v2738_v13  ;;  %v2636_v60 = vadd.f32 %v2635_v38, %v5594_v25  ;;  %v2739_v53 = vpop.f32.mrf.mxu1  ;;  %v1939_v13 = vld [vmem:[%s7637_s0 + $0x508] sm:$0xff]  ;;  %v1379_v25 = vmul.f32 %v4952_v30, %v777_v54  ;;  %v1723_v38 = vpack.c.bf16 %v1393_v47, %v1378_v1 }
 0x1fa   :  { %v2086_v29 = vpack.c.bf16 %v1939_v13, %v1938_v5  ;;  %v1907_v54 = vld [vmem:[%s7637_s0 + $0x408] sm:$0xff] }
 0x1fb   :  { %v2740_v40 = vadd.f32 %v2739_v53, %v2636_v60  ;;  %v1724_v60 = vpack.c.bf16 %v1394_v31, %v1379_v25  ;;  %v820_v31 = vunpack.c.l.bf16 %v281_v61 }
 0x1fc   :  { %3225 = vmatpush.bf16.msra.mxu2 %v2086_v29 }
 0x1fe   :  { %v2546_v15 = vpop.f32.mrf.mxu3 }
 0x1ff   :  { %v5767_v11 = vadd.f32 %v2546_v15, %v5126_v56  ;;  %v2070_v56 = vpack.c.bf16 %v1907_v54, %v1906_v35 }
 0x200   :  { %v2843_v39 = vpop.f32.mrf.mxu2  ;;  %v2638_v43 = vpop.f32.mrf.mxu0 }
 0x201   :  { %v5769_v12 = vadd.f32 %v2843_v39, %v2740_v40  ;;  %v2639_v23 = vadd.f32 %v2638_v43, %v5626_v20  ;;  %v2742_v53 = vpop.f32.mrf.mxu1  ;;  %v1922_v40 = vld [vmem:[%s7637_s0 + $0x480] sm:$0xff]  ;;  %v273_v20 = vld [vmem:[%s7638_s2 + $0x790] sm:$0xff]  ;;  %3017 = vmatpush.bf16.msra.mxu0 %v2070_v56 }
 0x202   :  { %v2078_v55 = vpack.c.bf16 %v1923_v50, %v1922_v40  ;;  %v805_v25 = vunpack.c.l.bf16 %v273_v20  ;;  %v806_v29 = vunpack.c.h.bf16 %v273_v20 }
 0x203   :  { %v2743_v5 = vadd.f32 %v2742_v53, %v2639_v23  ;;  %2588 = vmatmul.bf16.gmra.mxu3 %v1766_v2  ;;  %2677 = vmatmul.bf16.gmra.mxu0 %v1722_v19  ;;  %v274_v2 = vld [vmem:[%s7638_s2 + $0x798] sm:$0xff]  ;;  %v821_v19 = vunpack.c.h.bf16 %v281_v61  ;;  %v1422_v53 = vmul.f32 %v4943_v48, %v820_v31 }
 0x204   :  { %2781 = vmatmul.bf16.gmra.mxu1 %v1723_v38  ;;  %v807_v43 = vunpack.c.l.bf16 %v274_v2  ;;  %v822_v38 = vunpack.c.l.bf16 %v282_v62  ;;  %v1407_v23 = vmul.f32 %v4943_v48, %v805_v25 }
 0x205   :  { %2885 = vmatmul.bf16.gmra.mxu2 %v1724_v60  ;;  %3121 = vmatpush.bf16.msra.mxu1 %v2078_v55  ;;  %v1423_v56 = vmul.f32 %v4948_v0, %v821_v19 }
 0x206   :  { %v2549_v1 = vpop.f32.mrf.mxu3  ;;  %v1409_v40 = vmul.f32 %v4952_v30, %v807_v43 }
 0x207   :  { %v5800_v13 = vadd.f32 %v2549_v1, %v5172_v63  ;;  %v1408_v63 = vmul.f32 %v4948_v0, %v806_v29  ;;  %v297_v29 = vld [vmem:[%s7638_s2 + $0x844] sm:$0xff] }
 0x208   :  { %v2846_v47 = vpop.f32.mrf.mxu2  ;;  %v2640_v39 = vpop.f32.mrf.mxu0 }
 0x209   :  { %v5802_v15 = vadd.f32 %v2846_v47, %v2743_v5  ;;  %v2641_v60 = vadd.f32 %v2640_v39, %v5662_v42  ;;  %v2744_v35 = vpop.f32.mrf.mxu1  ;;  %v1424_v5 = vmul.f32 %v4952_v30, %v822_v38  ;;  %v1737_v42 = vpack.c.bf16 %v1422_v53, %v1407_v23  ;;  %v298_v39 = vld [vmem:[%s7638_s2 + $0x84c] sm:$0xff] }
 0x20a   :  { %v1738_v62 = vpack.c.bf16 %v1423_v56, %v1408_v63  ;;  %v851_v56 = vunpack.c.h.bf16 %v297_v29 }
 0x20b   :  { %v2745_v54 = vadd.f32 %v2744_v35, %v2641_v60  ;;  %v1739_v1 = vpack.c.bf16 %v1424_v5, %v1409_v40  ;;  %v3852_v60 = vld [vmem:[%s7638_s2 + $0x90] sm:$0xff]  ;;  %v852_v5 = vunpack.c.l.bf16 %v298_v39 }
 0x20c   :  { %v358_v35 = vunpack.c.h.bf16 %v3852_v60 }
 0x20e   :  { %v2551_v50 = vpop.f32.mrf.mxu3 }
 0x20f   :  { %v5812_v20 = vadd.f32 %v2551_v50, %v5189_v9  ;;  %v289_v9 = vld [vmem:[%s7638_s2 + $0x808] sm:$0xff] }
 0x210   :  { %v2848_v61 = vpop.f32.mrf.mxu2  ;;  %v2643_v2 = vpop.f32.mrf.mxu0  ;;  %v835_v24 = vunpack.c.l.bf16 %v289_v9  ;;  %v836_v38 = vunpack.c.h.bf16 %v289_v9 }
 0x211   :  { %v5814_v55 = vadd.f32 %v2848_v61, %v2745_v54  ;;  %v2644_v47 = vadd.f32 %v2643_v2, %v5691_v52  ;;  %v2747_v25 = vpop.f32.mrf.mxu1  ;;  %v290_v52 = vld [vmem:[%s7638_s2 + $0x810] sm:$0xff] }
 0x212   :  { %v3853_v54 = vld [vmem:[%s7638_s2 + $0xcc] sm:$0xff]  ;;  %v837_v40 = vunpack.c.l.bf16 %v290_v52  ;;  %v1437_v61 = vmul.f32 %v4943_v48, %v835_v24 }
 0x213   :  { %v2748_v31 = vadd.f32 %v2747_v25, %v2644_v47  ;;  %2682 = vmatmul.bf16.gmra.mxu0 %v1737_v42  ;;  %2914 = vmatmul.bf16.vlgmr.msra.gmra.mxu3 %v1500_v22  ;;  %v850_v22 = vunpack.c.l.bf16 %v297_v29  ;;  %v373_v23 = vunpack.c.h.bf16 %v3853_v54  ;;  %v1968_v25 = vld [vmem:[%s7637_s0 + $0x5f0] sm:$0xff]  ;;  %v1454_v29 = vmul.f32 %v4952_v30, %v852_v5 }
 0x214   :  { %2786 = vmatmul.bf16.gmra.mxu1 %v1738_v62  ;;  %v1438_v62 = vmul.f32 %v4948_v0, %v836_v38  ;;  %v1439_v9 = vmul.f32 %v4952_v30, %v837_v40  ;;  %v305_v40 = vld [vmem:[%s7638_s2 + $0x880] sm:$0xff]  ;;  %v2004_v5 = vld [vmem:[%s7637_s0 + $0x710] sm:$0xff] }
 0x215   :  { %2890 = vmatmul.bf16.gmra.mxu2 %v1739_v1  ;;  %v1452_v42 = vmul.f32 %v4943_v48, %v850_v22  ;;  %v960_v1 = vmul.f32 %v5723_v3, %v358_v35  ;;  %v975_v47 = vmul.f32 %v5723_v3, %v373_v23 }
 0x216   :  { %v2554_v10 = vpop.f32.mrf.mxu3  ;;  %v1754_v54 = vpack.c.bf16 %v1454_v29, %v1439_v9  ;;  %v866_v9 = vunpack.c.h.bf16 %v305_v40  ;;  %v3854_v29 = vld [vmem:[%s7638_s2 + $0x108] sm:$0xff] }
 0x217   :  { %v5833_v19 = vadd.f32 %v2554_v10, %v5217_v28  ;;  %v1752_v22 = vpack.c.bf16 %v1452_v42, %v1437_v61  ;;  %v314_v61 = vld [vmem:[%s7638_s2 + $0x8c4] sm:$0xff] }
 0x218   :  { %v2851_v43 = vpop.f32.mrf.mxu2  ;;  %v2645_v63 = vpop.f32.mrf.mxu0 }
 0x219   :  { %v5841_v53 = vadd.f32 %v2851_v43, %v2748_v31  ;;  %v2646_v28 = vadd.f32 %v2645_v63, %v5712_v27  ;;  %v2749_v50 = vpop.f32.mrf.mxu1  ;;  %v1969_v27 = vld [vmem:[%s7637_s0 + $0x5f8] sm:$0xff]  ;;  %v1453_v31 = vmul.f32 %v4948_v0, %v851_v56  ;;  %v1515_v43 = vpack.c.bf16 %v975_v47, %v960_v1 }
 0x21a   :  { %v2101_v52 = vpack.c.bf16 %v1969_v27, %v1968_v25  ;;  %v865_v1 = vunpack.c.l.bf16 %v305_v40 }
 0x21b   :  { %v2750_v2 = vadd.f32 %v2749_v50, %v2646_v28  ;;  %v1753_v35 = vpack.c.bf16 %v1453_v31, %v1438_v62  ;;  %v1984_v28 = vld [vmem:[%s7637_s0 + $0x670] sm:$0xff]  ;;  %v306_v50 = vld [vmem:[%s7638_s2 + $0x888] sm:$0xff] }
 0x21c   :  { %3322 = vmatpush.bf16.msrb.mxu3 %v2101_v52  ;;  %v388_v52 = vunpack.c.h.bf16 %v3854_v29 }
 0x21e   :  { %v2556_v39 = vpop.f32.mrf.mxu3 }
 0x21f   :  { %v5859_v10 = vadd.f32 %v2556_v39, %v5234_v32  ;;  %v313_v32 = vld [vmem:[%s7638_s2 + $0x8bc] sm:$0xff]  ;;  %v3855_v39 = vld [vmem:[%s7638_s2 + $0x144] sm:$0xff] }
 0x220   :  { %v2853_v24 = vpop.f32.mrf.mxu2  ;;  %v2648_v60 = vpop.f32.mrf.mxu0  ;;  %v880_v47 = vunpack.c.l.bf16 %v313_v32 }
 0x221   :  { %v5861_v38 = vadd.f32 %v2853_v24, %v2750_v2  ;;  %v2649_v23 = vadd.f32 %v2648_v60, %v5749_v34  ;;  %v2752_v63 = vpop.f32.mrf.mxu1  ;;  %v2005_v34 = vld [vmem:[%s7637_s0 + $0x718] sm:$0xff]  ;;  %v403_v24 = vunpack.c.h.bf16 %v3855_v39  ;;  %v881_v60 = vunpack.c.h.bf16 %v313_v32 }
 0x222   :  { %v2119_v42 = vpack.c.bf16 %v2005_v34, %v2004_v5  ;;  %v1985_v2 = vld [vmem:[%s7637_s0 + $0x678] sm:$0xff]  ;;  %v1482_v32 = vmul.f32 %v4943_v48, %v880_v47 }
 0x223   :  { %v2753_v56 = vadd.f32 %v2752_v63, %v2649_v23  ;;  %2687 = vmatmul.bf16.gmra.mxu0 %v1752_v22  ;;  %2919 = vmatmul.bf16.gmra.mxu3 %v1515_v43  ;;  %v2109_v25 = vpack.c.bf16 %v1985_v2, %v1984_v28  ;;  %v2001_v23 = vld [vmem:[%s7637_s0 + $0x6f8] sm:$0xff]  ;;  %v990_v28 = vmul.f32 %v5723_v3, %v388_v52 }
 0x224   :  { %2791 = vmatmul.bf16.gmra.mxu1 %v1753_v35  ;;  %3640 = vmatpush.bf16.msrb.mxu2 %v2119_v42  ;;  %v867_v35 = vunpack.c.l.bf16 %v306_v50  ;;  %v1005_v50 = vmul.f32 %v5723_v3, %v403_v24  ;;  %v1483_v42 = vmul.f32 %v4948_v0, %v881_v60 }
 0x225   :  { %2895 = vmatmul.bf16.gmra.mxu2 %v1754_v54  ;;  %3426 = vmatpush.bf16.msrb.mxu0 %v2109_v25  ;;  %v2000_v54 = vld [vmem:[%s7637_s0 + $0x6f0] sm:$0xff] }
 0x226   :  { %v2559_v62 = vpop.f32.mrf.mxu3  ;;  %v2117_v5 = vpack.c.bf16 %v2001_v23, %v2000_v54  ;;  %v1469_v2 = vmul.f32 %v4952_v30, %v867_v35  ;;  %v20_v35 = vld [vmem:[%s7638_s2 + $0x28] sm:$0xff]  ;;  %v3857_v23 = vld [vmem:[%s7638_s2 + $0x1bc] sm:$0xff] }
 0x227   :  { %v5889_v27 = vadd.f32 %v2559_v62, %v5274_v49  ;;  %v882_v49 = vunpack.c.l.bf16 %v314_v61  ;;  %v1468_v61 = vmul.f32 %v4948_v0, %v866_v9  ;;  %v320_v0 = vld [vmem:[%s7639_s1 + $0x8] sm:$0x7f] }
 0x228   :  { %v2856_v31 = vpop.f32.mrf.mxu2  ;;  %v2650_v43 = vpop.f32.mrf.mxu0  ;;  %3530 = vmatpush.bf16.msrb.mxu1 %v2117_v5 }
 0x229   :  { %v5897_v22 = vadd.f32 %v2856_v31, %v2753_v56  ;;  %v2651_v63 = vadd.f32 %v2650_v43, %v5767_v11  ;;  %v2754_v40 = vpop.f32.mrf.mxu1  ;;  %v1467_v56 = vmul.f32 %v4943_v48, %v865_v1  ;;  %v1484_v11 = vmul.f32 %v4952_v30, %v882_v49  ;;  %v27_v43 = vld [vmem:[%s7638_s2 + $0x5c] sm:$0xff]  ;;  %v28_v49 = vld [vmem:[%s7638_s2 + $0x64] sm:$0xff] }
 0x22a   :  { %v1530_v48 = vpack.c.bf16 %v1005_v50, %v990_v28  ;;  %v1768_v52 = vpack.c.bf16 %v1483_v42, %v1468_v61  ;;  %v344_v5 = vunpack.c.l.bf16 %v27_v43  ;;  %v345_v50 = vunpack.c.h.bf16 %v27_v43 }
 0x22b   :  { %v2755_v34 = vadd.f32 %v2754_v40, %v2651_v63  ;;  %v1767_v31 = vpack.c.bf16 %v1482_v32, %v1467_v56  ;;  %v1769_v39 = vpack.c.bf16 %v1484_v11, %v1469_v2  ;;  %v433_v63 = vunpack.c.h.bf16 %v3857_v23 }
 0x22c   :  { %v5941_v56 = vperm.slane %v320_v0, 0  ;;  %v5946_v61 = vperm.slane %v320_v0, 1  ;;  %v331_v11 = vunpack.c.l.bf16 %v20_v35 }
 0x22e   :  { %v2561_v62 = vpop.f32.mrf.mxu3 }
 0x22f   :  { %v5915_v25 = vadd.f32 %v2561_v62, %v5303_v51  ;;  %v19_v51 = vld [vmem:[%s7638_s2 + $0x20] sm:$0xff]  ;;  %v346_v62 = vunpack.c.l.bf16 %v28_v49 }
 0x230   :  { %v2858_v1 = vpop.f32.mrf.mxu2  ;;  %v2653_v29 = vpop.f32.mrf.mxu0  ;;  %v329_v40 = vunpack.c.l.bf16 %v19_v51  ;;  %v330_v28 = vunpack.c.h.bf16 %v19_v51 }
 0x231   :  { %v5917_v47 = vadd.f32 %v2858_v1, %v2755_v34  ;;  %v2654_v9 = vadd.f32 %v2653_v29, %v5800_v13  ;;  %v2757_v24 = vpop.f32.mrf.mxu1  ;;  %v3856_v13 = vld [vmem:[%s7638_s2 + $0x180] sm:$0xff]  ;;  %v5950_v1 = vperm.slane %v320_v0, 2 }
 0x232   :  { %v418_v60 = vunpack.c.h.bf16 %v3856_v13 }
 0x233   :  { %v2758_v30 = vadd.f32 %v2757_v24, %v2654_v9  ;;  %2692 = vmatmul.bf16.gmra.mxu0 %v1767_v31  ;;  %2924 = vmatmul.bf16.gmra.mxu3 %v1530_v48  ;;  %v946_v9 = vmul.f32 %v5941_v56, %v344_v5  ;;  %v932_v24 = vmul.f32 %v5946_v61, %v330_v28  ;;  %v35_v28 = vld [vmem:[%s7638_s2 + $0x98] sm:$0xff] }
 0x234   :  { %2796 = vmatmul.bf16.gmra.mxu1 %v1768_v52  ;;  %v1020_v29 = vmul.f32 %v5723_v3, %v418_v60  ;;  %v933_v51 = vmul.f32 %v5950_v1, %v331_v11  ;;  %v948_v0 = vmul.f32 %v5950_v1, %v346_v62  ;;  %v44_v11 = vld [vmem:[%s7638_s2 + $0xdc] sm:$0xff] }
 0x235   :  { %2900 = vmatmul.bf16.gmra.mxu2 %v1769_v39  ;;  %v931_v39 = vmul.f32 %v5941_v56, %v329_v40 }
 0x236   :  { %v2564_v54 = vpop.f32.mrf.mxu3 }
 0x237   :  { %v5944_v34 = vadd.f32 %v2564_v54, %v5331_v45  ;;  %v1035_v45 = vmul.f32 %v5723_v3, %v433_v63  ;;  %v1501_v35 = vpack.c.bf16 %v946_v9, %v931_v39  ;;  %v1503_v63 = vpack.c.bf16 %v948_v0, %v933_v51 }
 0x238   :  { %v2861_v32 = vpop.f32.mrf.mxu2  ;;  %v2655_v2 = vpop.f32.mrf.mxu0  ;;  %v360_v51 = vunpack.c.h.bf16 %v35_v28 }
 0x239   :  { %v5948_v42 = vadd.f32 %v2861_v32, %v2758_v30  ;;  %v2656_v31 = vadd.f32 %v2655_v2, %v5812_v20  ;;  %v2759_v48 = vpop.f32.mrf.mxu1  ;;  %v947_v30 = vmul.f32 %v5946_v61, %v345_v50  ;;  %v1545_v60 = vpack.c.bf16 %v1035_v45, %v1020_v29  ;;  %v1966_v50 = vld [vmem:[%s7637_s0 + $0x5e0] sm:$0xff] }
 0x23a   :  { %v36_v2 = vld [vmem:[%s7638_s2 + $0xa0] sm:$0xff] }
 0x23b   :  { %v2760_v52 = vadd.f32 %v2759_v48, %v2656_v31  ;;  %v1502_v23 = vpack.c.bf16 %v947_v30, %v932_v24  ;;  %v3858_v48 = vld [vmem:[%s7638_s2 + $0x1f8] sm:$0xff]  ;;  %v359_v24 = vunpack.c.l.bf16 %v35_v28  ;;  %v962_v28 = vmul.f32 %v5946_v61, %v360_v51 }
 0x23c   :  { %v448_v29 = vunpack.c.h.bf16 %v3858_v48 }
 0x23e   :  { %v2566_v43 = vpop.f32.mrf.mxu3 }
 0x23f   :  { %v5962_v20 = vadd.f32 %v2566_v43, %v5342_v41  ;;  %v43_v41 = vld [vmem:[%s7638_s2 + $0xd4] sm:$0xff] }
 0x240   :  { %v2863_v13 = vpop.f32.mrf.mxu2  ;;  %v2658_v54 = vpop.f32.mrf.mxu0  ;;  %v374_v30 = vunpack.c.l.bf16 %v43_v41 }
 0x241   :  { %v5964_v49 = vadd.f32 %v2863_v13, %v2760_v52  ;;  %v2659_v40 = vadd.f32 %v2658_v54, %v5833_v19  ;;  %v2762_v5 = vpop.f32.mrf.mxu1  ;;  %v1967_v19 = vld [vmem:[%s7637_s0 + $0x5e8] sm:$0xff]  ;;  %v3859_v52 = vld [vmem:[%s7638_s2 + $0x234] sm:$0xff]  ;;  %v375_v13 = vunpack.c.h.bf16 %v43_v41  ;;  %v1998_v41 = vld [vmem:[%s7637_s0 + $0x6e0] sm:$0xff] }
 0x242   :  { %v2100_v62 = vpack.c.bf16 %v1967_v19, %v1966_v50  ;;  %v463_v45 = vunpack.c.h.bf16 %v3859_v52  ;;  %v976_v50 = vmul.f32 %v5941_v56, %v374_v30 }
 0x243   :  { %v2763_v32 = vadd.f32 %v2762_v5, %v2659_v40  ;;  %2929 = vmatmul.bf16.gmra.mxu3 %v1545_v60  ;;  %3018 = vmatmul.bf16.vlgmr.msra.gmra.mxu0 %v1501_v35  ;;  %v361_v60 = vunpack.c.l.bf16 %v36_v2  ;;  %v376_v35 = vunpack.c.l.bf16 %v44_v11  ;;  %v961_v5 = vmul.f32 %v5941_v56, %v359_v24 }
 0x244   :  { %3122 = vmatmul.bf16.vlgmr.msra.gmra.mxu1 %v1502_v23  ;;  %3323 = vmatpush.bf16.msrb.mxu3 %v2100_v62  ;;  %v1065_v40 = vmul.f32 %v5723_v3, %v463_v45  ;;  %v977_v19 = vmul.f32 %v5946_v61, %v375_v13 }
 0x245   :  { %3226 = vmatmul.bf16.vlgmr.msra.gmra.mxu2 %v1503_v63  ;;  %v1050_v63 = vmul.f32 %v5723_v3, %v448_v29  ;;  %v963_v2 = vmul.f32 %v5950_v1, %v361_v60  ;;  %v978_v11 = vmul.f32 %v5950_v1, %v376_v35  ;;  %v1516_v24 = vpack.c.bf16 %v976_v50, %v961_v5  ;;  %v3861_v50 = vld [vmem:[%s7638_s2 + $0x2ac] sm:$0xff] }
 0x246   :  { %v2569_v31 = vpop.f32.mrf.mxu3 }
 0x247   :  { %v5992_v39 = vadd.f32 %v2569_v31, %v5368_v58  ;;  %v1999_v31 = vld [vmem:[%s7637_s0 + $0x6e8] sm:$0xff]  ;;  %v1518_v13 = vpack.c.bf16 %v978_v11, %v963_v2 }
 0x248   :  { %v2866_v9 = vpop.f32.mrf.mxu2  ;;  %v2660_v43 = vpop.f32.mrf.mxu0  ;;  %v2116_v48 = vpack.c.bf16 %v1999_v31, %v1998_v41 }
 0x249   :  { %v5994_v0 = vadd.f32 %v2866_v9, %v2763_v32  ;;  %v2661_v54 = vadd.f32 %v2660_v43, %v5859_v10  ;;  %v2764_v23 = vpop.f32.mrf.mxu1  ;;  %v1982_v32 = vld [vmem:[%s7637_s0 + $0x660] sm:$0xff]  ;;  %v1983_v10 = vld [vmem:[%s7637_s0 + $0x668] sm:$0xff]  ;;  %v1560_v9 = vpack.c.bf16 %v1065_v40, %v1050_v63  ;;  %v1517_v43 = vpack.c.bf16 %v977_v19, %v962_v28  ;;  %v52_v63 = vld [vmem:[%s7638_s2 + $0x118] sm:$0xff] }
 0x24a   :  { %v2108_v62 = vpack.c.bf16 %v1983_v10, %v1982_v32  ;;  %3531 = vmatpush.bf16.msrb.mxu1 %v2116_v48  ;;  %v493_v28 = vunpack.c.h.bf16 %v3861_v50  ;;  %v391_v48 = vunpack.c.l.bf16 %v52_v63 }
 0x24b   :  { %v2765_v58 = vadd.f32 %v2764_v23, %v2661_v54  ;;  %v59_v23 = vld [vmem:[%s7638_s2 + $0x14c] sm:$0xff] }
 0x24c   :  { %3427 = vmatpush.bf16.msrb.mxu0 %v2108_v62  ;;  %v404_v19 = vunpack.c.l.bf16 %v59_v23  ;;  %v405_v31 = vunpack.c.h.bf16 %v59_v23 }
 0x24e   :  { %v2571_v29 = vpop.f32.mrf.mxu3 }
 0x24f   :  { %v6018_v52 = vadd.f32 %v2571_v29, %v5391_v18  ;;  %v51_v18 = vld [vmem:[%s7638_s2 + $0x110] sm:$0xff] }
 0x250   :  { %v2868_v45 = vpop.f32.mrf.mxu2  ;;  %v2663_v51 = vpop.f32.mrf.mxu0  ;;  %v389_v41 = vunpack.c.l.bf16 %v51_v18  ;;  %v390_v2 = vunpack.c.h.bf16 %v51_v18 }
 0x251   :  { %v6020_v30 = vadd.f32 %v2868_v45, %v2765_v58  ;;  %v2664_v60 = vadd.f32 %v2663_v51, %v5889_v27  ;;  %v2767_v35 = vpop.f32.mrf.mxu1  ;;  %v60_v27 = vld [vmem:[%s7638_s2 + $0x154] sm:$0xff] }
 0x252   :  { %v3860_v58 = vld [vmem:[%s7638_s2 + $0x270] sm:$0xff]  ;;  %v406_v29 = vunpack.c.l.bf16 %v60_v27 }
 0x253   :  { %v2768_v54 = vadd.f32 %v2767_v35, %v2664_v60  ;;  %2934 = vmatmul.bf16.gmra.mxu3 %v1560_v9  ;;  %3023 = vmatmul.bf16.gmra.mxu0 %v1516_v24  ;;  %v478_v5 = vunpack.c.h.bf16 %v3860_v58  ;;  %v992_v60 = vmul.f32 %v5946_v61, %v390_v2  ;;  %v1007_v35 = vmul.f32 %v5946_v61, %v405_v31  ;;  %v75_v2 = vld [vmem:[%s7638_s2 + $0x1c4] sm:$0xff] }
 0x254   :  { %3127 = vmatmul.bf16.gmra.mxu1 %v1517_v43  ;;  %v1095_v43 = vmul.f32 %v5723_v3, %v493_v28  ;;  %v1008_v18 = vmul.f32 %v5950_v1, %v406_v29 }
 0x255   :  { %3231 = vmatmul.bf16.gmra.mxu2 %v1518_v13  ;;  %v1080_v24 = vmul.f32 %v5723_v3, %v478_v5  ;;  %v1006_v13 = vmul.f32 %v5941_v56, %v404_v19  ;;  %v1532_v50 = vpack.c.bf16 %v1007_v35, %v992_v60 }
 0x256   :  { %v2574_v40 = vpop.f32.mrf.mxu3 }
 0x257   :  { %v6042_v32 = vadd.f32 %v2574_v40, %v5056_v6  ;;  %v991_v6 = vmul.f32 %v5941_v56, %v389_v41  ;;  %v1575_v27 = vpack.c.bf16 %v1095_v43, %v1080_v24 }
 0x258   :  { %v2871_v10 = vpop.f32.mrf.mxu2  ;;  %v2665_v62 = vpop.f32.mrf.mxu0 }
 0x259   :  { %v6044_v11 = vadd.f32 %v2871_v10, %v2768_v54  ;;  %v2666_v45 = vadd.f32 %v2665_v62, %v5915_v25  ;;  %v2769_v9 = vpop.f32.mrf.mxu1  ;;  %v993_v54 = vmul.f32 %v5950_v1, %v391_v48  ;;  %v1531_v40 = vpack.c.bf16 %v1006_v13, %v991_v6  ;;  %v68_v62 = vld [vmem:[%s7638_s2 + $0x190] sm:$0xff]  ;;  %v3862_v48 = vld [vmem:[%s7638_s2 + $0x2e8] sm:$0xff] }
 0x25a   :  { %v508_v29 = vunpack.c.h.bf16 %v3862_v48  ;;  %v434_v6 = vunpack.c.l.bf16 %v75_v2 }
 0x25b   :  { %v2770_v51 = vadd.f32 %v2769_v9, %v2666_v45  ;;  %v1533_v28 = vpack.c.bf16 %v1008_v18, %v993_v54  ;;  %v3863_v45 = vld [vmem:[%s7638_s2 + $0x324] sm:$0xff]  ;;  %v435_v54 = vunpack.c.h.bf16 %v75_v2  ;;  %v421_v18 = vunpack.c.l.bf16 %v68_v62 }
 0x25c   :  { %v523_v9 = vunpack.c.h.bf16 %v3863_v45 }
 0x25e   :  { %v2576_v23 = vpop.f32.mrf.mxu3 }
 0x25f   :  { %v6056_v25 = vadd.f32 %v2576_v23, %v5073_v26  ;;  %v67_v26 = vld [vmem:[%s7638_s2 + $0x188] sm:$0xff] }
 0x260   :  { %v2873_v63 = vpop.f32.mrf.mxu2  ;;  %v2668_v5 = vpop.f32.mrf.mxu0  ;;  %v419_v43 = vunpack.c.l.bf16 %v67_v26  ;;  %v420_v13 = vunpack.c.h.bf16 %v67_v26  ;;  %v1023_v26 = vmul.f32 %v5950_v1, %v421_v18  ;;  %v83_v18 = vld [vmem:[%s7638_s2 + $0x200] sm:$0xff] }
 0x261   :  { %v6058_v58 = vadd.f32 %v2873_v63, %v2770_v51  ;;  %v2669_v10 = vadd.f32 %v2668_v5, %v5944_v34  ;;  %v2772_v41 = vpop.f32.mrf.mxu1  ;;  %v76_v34 = vld [vmem:[%s7638_s2 + $0x1cc] sm:$0xff]  ;;  %v1125_v5 = vmul.f32 %v5723_v3, %v523_v9 }
 0x262   :  { %v436_v23 = vunpack.c.l.bf16 %v76_v34 }
 0x263   :  { %v2773_v19 = vadd.f32 %v2772_v41, %v2669_v10  ;;  %2939 = vmatmul.bf16.gmra.mxu3 %v1575_v27  ;;  %3028 = vmatmul.bf16.gmra.mxu0 %v1531_v40  ;;  %v1110_v40 = vmul.f32 %v5723_v3, %v508_v29  ;;  %v1022_v10 = vmul.f32 %v5946_v61, %v420_v13  ;;  %v1964_v41 = vld [vmem:[%s7637_s0 + $0x5d0] sm:$0xff] }
 0x264   :  { %3132 = vmatmul.bf16.gmra.mxu1 %v1532_v50  ;;  %v1038_v2 = vmul.f32 %v5950_v1, %v436_v23  ;;  %v1981_v23 = vld [vmem:[%s7637_s0 + $0x658] sm:$0xff] }
 0x265   :  { %3236 = vmatmul.bf16.gmra.mxu2 %v1533_v28  ;;  %v1036_v28 = vmul.f32 %v5941_v56, %v434_v6  ;;  %v1590_v29 = vpack.c.bf16 %v1125_v5, %v1110_v40  ;;  %v1997_v40 = vld [vmem:[%s7637_s0 + $0x6d8] sm:$0xff]  ;;  %v84_v5 = vld [vmem:[%s7638_s2 + $0x208] sm:$0xff] }
 0x266   :  { %v2579_v31 = vpop.f32.mrf.mxu3  ;;  %v1548_v6 = vpack.c.bf16 %v1038_v2, %v1023_v26 }
 0x267   :  { %v6080_v24 = vadd.f32 %v2579_v31, %v5101_v17  ;;  %v1021_v17 = vmul.f32 %v5941_v56, %v419_v43 }
 0x268   :  { %v2876_v51 = vpop.f32.mrf.mxu2  ;;  %v2670_v35 = vpop.f32.mrf.mxu0 }
 0x269   :  { %v6082_v60 = vadd.f32 %v2876_v51, %v2773_v19  ;;  %v2671_v63 = vadd.f32 %v2670_v35, %v5962_v20  ;;  %v2774_v27 = vpop.f32.mrf.mxu1  ;;  %v1965_v20 = vld [vmem:[%s7637_s0 + $0x5d8] sm:$0xff]  ;;  %v1037_v19 = vmul.f32 %v5946_v61, %v435_v54  ;;  %v1546_v45 = vpack.c.bf16 %v1036_v28, %v1021_v17 }
 0x26a   :  { %v2099_v62 = vpack.c.bf16 %v1965_v20, %v1964_v41  ;;  %v3865_v20 = vld [vmem:[%s7638_s2 + $0x39c] sm:$0xff] }
 0x26b   :  { %v2775_v50 = vadd.f32 %v2774_v27, %v2671_v63  ;;  %v1547_v43 = vpack.c.bf16 %v1037_v19, %v1022_v10  ;;  %v1996_v27 = vld [vmem:[%s7637_s0 + $0x6d0] sm:$0xff]  ;;  %v3864_v10 = vld [vmem:[%s7638_s2 + $0x360] sm:$0xff]  ;;  %v553_v19 = vunpack.c.h.bf16 %v3865_v20 }
 0x26c   :  { %3324 = vmatpush.bf16.msrb.mxu3 %v2099_v62  ;;  %v2115_v17 = vpack.c.bf16 %v1997_v40, %v1996_v27  ;;  %v538_v41 = vunpack.c.h.bf16 %v3864_v10  ;;  %v449_v62 = vunpack.c.l.bf16 %v83_v18 }
 0x26e   :  { %v2581_v34 = vpop.f32.mrf.mxu3  ;;  %3532 = vmatpush.bf16.msrb.mxu1 %v2115_v17 }
 0x26f   :  { %v6100_v31 = vadd.f32 %v2581_v34, %v5124_v14  ;;  %v1980_v14 = vld [vmem:[%s7637_s0 + $0x650] sm:$0xff] }
 0x270   :  { %v2878_v48 = vpop.f32.mrf.mxu2  ;;  %v2673_v51 = vpop.f32.mrf.mxu0  ;;  %v2107_v63 = vpack.c.bf16 %v1981_v23, %v1980_v14  ;;  %v1140_v14 = vmul.f32 %v5723_v3, %v538_v41 }
 0x271   :  { %v6102_v9 = vadd.f32 %v2878_v48, %v2775_v50  ;;  %v2674_v13 = vadd.f32 %v2673_v51, %v5992_v39  ;;  %v2777_v35 = vpop.f32.mrf.mxu1  ;;  %v91_v39 = vld [vmem:[%s7638_s2 + $0x23c] sm:$0xff]  ;;  %v92_v50 = vld [vmem:[%s7638_s2 + $0x244] sm:$0xff]  ;;  %v450_v48 = vunpack.c.h.bf16 %v83_v18 }
 0x272   :  { %3428 = vmatpush.bf16.msrb.mxu0 %v2107_v63  ;;  %v464_v34 = vunpack.c.l.bf16 %v91_v39  ;;  %v465_v51 = vunpack.c.h.bf16 %v91_v39  ;;  %v1051_v63 = vmul.f32 %v5941_v56, %v449_v62 }
 0x273   :  { %v2778_v54 = vadd.f32 %v2777_v35, %v2674_v13  ;;  %2944 = vmatmul.bf16.gmra.mxu3 %v1590_v29  ;;  %3033 = vmatmul.bf16.gmra.mxu0 %v1546_v45  ;;  %v1052_v18 = vmul.f32 %v5946_v61, %v450_v48  ;;  %v107_v48 = vld [vmem:[%s7638_s2 + $0x2b4] sm:$0xff] }
 0x274   :  { %3137 = vmatmul.bf16.gmra.mxu1 %v1547_v43  ;;  %v451_v43 = vunpack.c.l.bf16 %v84_v5  ;;  %v1066_v27 = vmul.f32 %v5941_v56, %v464_v34 }
 0x275   :  { %3241 = vmatmul.bf16.gmra.mxu2 %v1548_v6  ;;  %v466_v6 = vunpack.c.l.bf16 %v92_v50 }
 0x276   :  { %v2584_v28 = vpop.f32.mrf.mxu3  ;;  %v1053_v39 = vmul.f32 %v5950_v1, %v451_v43  ;;  %v3866_v43 = vld [vmem:[%s7638_s2 + $0x3d8] sm:$0xff] }
 0x277   :  { %v6136_v26 = vadd.f32 %v2584_v28, %v5170_v36  ;;  %v1155_v36 = vmul.f32 %v5723_v3, %v553_v19  ;;  %v1068_v40 = vmul.f32 %v5950_v1, %v466_v6  ;;  %v1561_v28 = vpack.c.bf16 %v1066_v27, %v1051_v63 }
 0x278   :  { %v2881_v2 = vpop.f32.mrf.mxu2  ;;  %v2675_v45 = vpop.f32.mrf.mxu0  ;;  %v568_v6 = vunpack.c.h.bf16 %v3866_v43  ;;  %v494_v63 = vunpack.c.l.bf16 %v107_v48 }
 0x279   :  { %v6138_v29 = vadd.f32 %v2881_v2, %v2778_v54  ;;  %v2676_v13 = vadd.f32 %v2675_v45, %v6018_v52  ;;  %v2779_v35 = vpop.f32.mrf.mxu1  ;;  %v1067_v54 = vmul.f32 %v5946_v61, %v465_v51  ;;  %v1605_v17 = vpack.c.bf16 %v1155_v36, %v1140_v14  ;;  %v100_v45 = vld [vmem:[%s7638_s2 + $0x280] sm:$0xff] }
 0x27a   :  { %v1563_v19 = vpack.c.bf16 %v1068_v40, %v1053_v39  ;;  %v495_v39 = vunpack.c.h.bf16 %v107_v48  ;;  %v481_v40 = vunpack.c.l.bf16 %v100_v45 }
 0x27b   :  { %v2780_v23 = vadd.f32 %v2779_v35, %v2676_v13  ;;  %v1562_v20 = vpack.c.bf16 %v1067_v54, %v1052_v18  ;;  %v3867_v13 = vld [vmem:[%s7638_s2 + $0x414] sm:$0xff] }
 0x27c   :  { %v583_v35 = vunpack.c.h.bf16 %v3867_v13 }
 0x27e   :  { %v2586_v5 = vpop.f32.mrf.mxu3 }
 0x27f   :  { %v6150_v52 = vadd.f32 %v2586_v5, %v5187_v59  ;;  %v99_v59 = vld [vmem:[%s7638_s2 + $0x278] sm:$0xff] }
 0x280   :  { %v2883_v50 = vpop.f32.mrf.mxu2  ;;  %v2678_v41 = vpop.f32.mrf.mxu0  ;;  %v479_v36 = vunpack.c.l.bf16 %v99_v59  ;;  %v480_v27 = vunpack.c.h.bf16 %v99_v59 }
 0x281   :  { %v6152_v10 = vadd.f32 %v2883_v50, %v2780_v23  ;;  %v2679_v2 = vadd.f32 %v2678_v41, %v6042_v32  ;;  %v2782_v62 = vpop.f32.mrf.mxu1  ;;  %v108_v32 = vld [vmem:[%s7638_s2 + $0x2bc] sm:$0xff] }
 0x282   :  { %v496_v5 = vunpack.c.l.bf16 %v108_v32 }
 0x283   :  { %v2783_v34 = vadd.f32 %v2782_v62, %v2679_v2  ;;  %2949 = vmatmul.bf16.gmra.mxu3 %v1605_v17  ;;  %3038 = vmatmul.bf16.gmra.mxu0 %v1561_v28  ;;  %v1170_v28 = vmul.f32 %v5723_v3, %v568_v6  ;;  %v1082_v2 = vmul.f32 %v5946_v61, %v480_v27 }
 0x284   :  { %3142 = vmatmul.bf16.gmra.mxu1 %v1562_v20  ;;  %v1185_v20 = vmul.f32 %v5723_v3, %v583_v35  ;;  %v1097_v62 = vmul.f32 %v5946_v61, %v495_v39  ;;  %v1098_v59 = vmul.f32 %v5950_v1, %v496_v5  ;;  %v115_v5 = vld [vmem:[%s7638_s2 + $0x2f0] sm:$0xff] }
 0x285   :  { %3246 = vmatmul.bf16.gmra.mxu2 %v1563_v19  ;;  %v1096_v19 = vmul.f32 %v5941_v56, %v494_v63  ;;  %v1963_v63 = vld [vmem:[%s7637_s0 + $0x5c8] sm:$0xff] }
 0x286   :  { %v2589_v51 = vpop.f32.mrf.mxu3  ;;  %v1577_v35 = vpack.c.bf16 %v1097_v62, %v1082_v2 }
 0x287   :  { %v6174_v14 = vadd.f32 %v2589_v51, %v5215_v16  ;;  %v1081_v16 = vmul.f32 %v5941_v56, %v479_v36  ;;  %v1620_v51 = vpack.c.bf16 %v1185_v20, %v1170_v28  ;;  %v1962_v36 = vld [vmem:[%s7637_s0 + $0x5c0] sm:$0xff] }
 0x288   :  { %v2886_v23 = vpop.f32.mrf.mxu2  ;;  %v2680_v54 = vpop.f32.mrf.mxu0  ;;  %v2098_v39 = vpack.c.bf16 %v1963_v63, %v1962_v36 }
 0x289   :  { %v6176_v18 = vadd.f32 %v2886_v23, %v2783_v34  ;;  %v2681_v50 = vadd.f32 %v2680_v54, %v6056_v25  ;;  %v2784_v17 = vpop.f32.mrf.mxu1  ;;  %v1083_v34 = vmul.f32 %v5950_v1, %v481_v40  ;;  %v7650_v25 = vld [vmem:[#allocation2_spill] sm:$0xff]  ;;  %v1576_v43 = vpack.c.bf16 %v1096_v19, %v1081_v16  ;;  %v3869_v16 = vld [vmem:[%s7638_s2 + $0x48c] sm:$0xff] }
 0x28a   :  { %3325 = vmatpush.bf16.msrb.mxu3 %v2098_v39  ;;  %v613_v19 = vunpack.c.h.bf16 %v3869_v16 }
 0x28b   :  { %v2785_v41 = vadd.f32 %v2784_v17, %v2681_v50  ;;  %v1578_v23 = vpack.c.bf16 %v1098_v59, %v1083_v34  ;;  %v123_v50 = vld [vmem:[%s7638_s2 + $0x32c] sm:$0xff]  ;;  %v116_v17 = vld [vmem:[%s7638_s2 + $0x2f8] sm:$0xff]  ;;  %v509_v34 = vunpack.c.l.bf16 %v115_v5 }
 0x28c   :  { %v524_v59 = vunpack.c.l.bf16 %v123_v50 }
 0x28e   :  { %v2591_v48 = vpop.f32.mrf.mxu3 }
 0x28f   :  { %v6188_v45 = vadd.f32 %v2591_v48, %v7650_v25  ;;  %v510_v48 = vunpack.c.h.bf16 %v115_v5  ;;  %v1126_v5 = vmul.f32 %v5941_v56, %v524_v59 }
 0x290   :  { %v2888_v32 = vpop.f32.mrf.mxu2  ;;  %v2683_v13 = vpop.f32.mrf.mxu0 }
 0x291   :  { %v6190_v6 = vadd.f32 %v2888_v32, %v2785_v41  ;;  %v2684_v27 = vadd.f32 %v2683_v13, %v6080_v24  ;;  %v2787_v54 = vpop.f32.mrf.mxu1  ;;  %v124_v24 = vld [vmem:[%s7638_s2 + $0x334] sm:$0xff] }
 0x292   :  { %v3868_v41 = vld [vmem:[%s7638_s2 + $0x450] sm:$0xff]  ;;  %v526_v13 = vunpack.c.l.bf16 %v124_v24 }
 0x293   :  { %v2788_v40 = vadd.f32 %v2787_v54, %v2684_v27  ;;  %2954 = vmatmul.bf16.gmra.mxu3 %v1620_v51  ;;  %3043 = vmatmul.bf16.gmra.mxu0 %v1576_v43  ;;  %v598_v20 = vunpack.c.h.bf16 %v3868_v41  ;;  %v525_v51 = vunpack.c.h.bf16 %v123_v50  ;;  %v511_v43 = vunpack.c.l.bf16 %v116_v17  ;;  %v1994_v17 = vld [vmem:[%s7637_s0 + $0x6c0] sm:$0xff] }
 0x294   :  { %3147 = vmatmul.bf16.gmra.mxu1 %v1577_v35  ;;  %v1978_v35 = vld [vmem:[%s7637_s0 + $0x640] sm:$0xff]  ;;  %v1215_v54 = vmul.f32 %v5723_v3, %v613_v19  ;;  %v1112_v50 = vmul.f32 %v5946_v61, %v510_v48  ;;  %v1128_v41 = vmul.f32 %v5950_v1, %v526_v13 }
 0x295   :  { %3251 = vmatmul.bf16.gmra.mxu2 %v1578_v23  ;;  %v1979_v23 = vld [vmem:[%s7637_s0 + $0x648] sm:$0xff]  ;;  %v1200_v27 = vmul.f32 %v5723_v3, %v598_v20  ;;  %v1127_v24 = vmul.f32 %v5946_v61, %v525_v51 }
 0x296   :  { %v2915_v28 = vpop.f32.mrf.mxu3  ;;  %v2106_v63 = vpack.c.bf16 %v1979_v23, %v1978_v35  ;;  %v139_v13 = vld [vmem:[%s7638_s2 + $0x3a4] sm:$0xff] }
 0x297   :  { %v6218_v62 = vadd.f32 %v2915_v28, %v5424_v44  ;;  %v1113_v28 = vmul.f32 %v5950_v1, %v511_v43  ;;  %v1592_v35 = vpack.c.bf16 %v1127_v24, %v1112_v50  ;;  %v7651_v50 = vld [vmem:[#allocation3_spill] sm:$0xff]  ;;  %v554_v24 = vunpack.c.l.bf16 %v139_v13 }
 0x298   :  { %v2891_v2 = vpop.f32.mrf.mxu2  ;;  %v2685_v32 = vpop.f32.mrf.mxu0  ;;  %3429 = vmatpush.bf16.msrb.mxu0 %v2106_v63 }
 0x299   :  { %v6220_v25 = vadd.f32 %v2891_v2, %v2788_v40  ;;  %v2686_v44 = vadd.f32 %v2685_v32, %v6100_v31  ;;  %v2789_v36 = vpop.f32.mrf.mxu1  ;;  %v1111_v40 = vmul.f32 %v5941_v56, %v509_v34  ;;  %v1995_v31 = vld [vmem:[%s7637_s0 + $0x6c8] sm:$0xff]  ;;  %v1635_v34 = vpack.c.bf16 %v1215_v54, %v1200_v27 }
 0x29a   :  { %v2114_v20 = vpack.c.bf16 %v1995_v31, %v1994_v17  ;;  %v1593_v23 = vpack.c.bf16 %v1128_v41, %v1113_v28  ;;  %v3870_v27 = vld [vmem:[%s7638_s2 + $0x4c8] sm:$0xff] }
 0x29b   :  { %v2790_v39 = vadd.f32 %v2789_v36, %v2686_v44  ;;  %v1591_v59 = vpack.c.bf16 %v1126_v5, %v1111_v40  ;;  %v132_v36 = vld [vmem:[%s7638_s2 + $0x370] sm:$0xff]  ;;  %v628_v54 = vunpack.c.h.bf16 %v3870_v27 }
 0x29c   :  { %3533 = vmatpush.bf16.msrb.mxu1 %v2114_v20 }
 0x29e   :  { %v2917_v16 = vpop.f32.mrf.mxu3 }
 0x29f   :  { %v6244_v2 = vadd.f32 %v2917_v16, %v5438_v37  ;;  %v131_v37 = vld [vmem:[%s7638_s2 + $0x368] sm:$0xff]  ;;  %v555_v16 = vunpack.c.h.bf16 %v139_v13 }
 0x2a0   :  { %v2893_v19 = vpop.f32.mrf.mxu2  ;;  %v2688_v32 = vpop.f32.mrf.mxu0  ;;  %v539_v31 = vunpack.c.l.bf16 %v131_v37  ;;  %v540_v28 = vunpack.c.h.bf16 %v131_v37 }
 0x2a1   :  { %v6246_v48 = vadd.f32 %v2893_v19, %v2790_v39  ;;  %v2689_v51 = vadd.f32 %v2688_v32, %v6136_v26  ;;  %v2792_v44 = vpop.f32.mrf.mxu1  ;;  %v140_v26 = vld [vmem:[%s7638_s2 + $0x3ac] sm:$0xff]  ;;  %v3871_v39 = vld [vmem:[%s7638_s2 + $0x504] sm:$0xff]  ;;  %v541_v19 = vunpack.c.l.bf16 %v132_v36 }
 0x2a2   :  { %v643_v40 = vunpack.c.h.bf16 %v3871_v39  ;;  %v1142_v37 = vmul.f32 %v5946_v61, %v540_v28 }
 0x2a3   :  { %v2793_v43 = vadd.f32 %v2792_v44, %v2689_v51  ;;  %2959 = vmatmul.bf16.gmra.mxu3 %v1635_v34  ;;  %3048 = vmatmul.bf16.gmra.mxu0 %v1591_v59  ;;  %v556_v34 = vunpack.c.l.bf16 %v140_v26  ;;  %v1141_v44 = vmul.f32 %v5941_v56, %v539_v31  ;;  %v1143_v13 = vmul.f32 %v5950_v1, %v541_v19  ;;  %v1960_v19 = vld [vmem:[%s7637_s0 + $0x5b0] sm:$0xff] }
 0x2a4   :  { %3152 = vmatmul.bf16.gmra.mxu1 %v1592_v35  ;;  %v1230_v35 = vmul.f32 %v5723_v3, %v628_v54  ;;  %v1245_v51 = vmul.f32 %v5723_v3, %v643_v40 }
 0x2a5   :  { %3256 = vmatmul.bf16.gmra.mxu2 %v1593_v23  ;;  %v1158_v36 = vmul.f32 %v5950_v1, %v556_v34  ;;  %v148_v34 = vld [vmem:[%s7638_s2 + $0x3e8] sm:$0xff] }
 0x2a6   :  { %v2920_v63 = vpop.f32.mrf.mxu3  ;;  %v1650_v54 = vpack.c.bf16 %v1245_v51, %v1230_v35 }
 0x2a7   :  { %v6268_v17 = vadd.f32 %v2920_v63, %v7651_v50  ;;  %v1156_v63 = vmul.f32 %v5941_v56, %v554_v24  ;;  %v1608_v31 = vpack.c.bf16 %v1158_v36, %v1143_v13 }
 0x2a8   :  { %v2896_v5 = vpop.f32.mrf.mxu2  ;;  %v2690_v20 = vpop.f32.mrf.mxu0 }
 0x2a9   :  { %v6270_v41 = vadd.f32 %v2896_v5, %v2793_v43  ;;  %v2691_v59 = vadd.f32 %v2690_v20, %v6150_v52  ;;  %v2794_v32 = vpop.f32.mrf.mxu1  ;;  %v1157_v43 = vmul.f32 %v5946_v61, %v555_v16  ;;  %v1606_v39 = vpack.c.bf16 %v1156_v63, %v1141_v44  ;;  %v147_v16 = vld [vmem:[%s7638_s2 + $0x3e0] sm:$0xff] }
 0x2aa   :  { %v3873_v44 = vld [vmem:[%s7638_s2 + $0x57c] sm:$0xff]  ;;  %v569_v13 = vunpack.c.l.bf16 %v147_v16 }
 0x2ab   :  { %v2795_v23 = vadd.f32 %v2794_v32, %v2691_v59  ;;  %v1607_v50 = vpack.c.bf16 %v1157_v43, %v1142_v37  ;;  %v156_v59 = vld [vmem:[%s7638_s2 + $0x424] sm:$0xff]  ;;  %v673_v63 = vunpack.c.h.bf16 %v3873_v44 }
 0x2ae   :  { %v2922_v26 = vpop.f32.mrf.mxu3 }
 0x2af   :  { %v6282_v27 = vadd.f32 %v2922_v26, %v5482_v57  ;;  %v155_v57 = vld [vmem:[%s7638_s2 + $0x41c] sm:$0xff]  ;;  %v570_v26 = vunpack.c.h.bf16 %v147_v16 }
 0x2b0   :  { %v2898_v52 = vpop.f32.mrf.mxu2  ;;  %v2693_v5 = vpop.f32.mrf.mxu0  ;;  %v584_v36 = vunpack.c.l.bf16 %v155_v57 }
 0x2b1   :  { %v6284_v40 = vadd.f32 %v2898_v52, %v2795_v23  ;;  %v2694_v24 = vadd.f32 %v2693_v5, %v6174_v14  ;;  %v2797_v28 = vpop.f32.mrf.mxu1  ;;  %v1961_v14 = vld [vmem:[%s7637_s0 + $0x5b8] sm:$0xff]  ;;  %v3872_v23 = vld [vmem:[%s7638_s2 + $0x540] sm:$0xff]  ;;  %v571_v5 = vunpack.c.l.bf16 %v148_v34  ;;  %v1172_v16 = vmul.f32 %v5946_v61, %v570_v26 }
 0x2b2   :  { %v2097_v32 = vpack.c.bf16 %v1961_v14, %v1960_v19  ;;  %v658_v51 = vunpack.c.h.bf16 %v3872_v23  ;;  %v1275_v19 = vmul.f32 %v5723_v3, %v673_v63 }
 0x2b3   :  { %v2798_v20 = vadd.f32 %v2797_v28, %v2694_v24  ;;  %2964 = vmatmul.bf16.gmra.mxu3 %v1650_v54  ;;  %3053 = vmatmul.bf16.gmra.mxu0 %v1606_v39  ;;  %v585_v39 = vunpack.c.h.bf16 %v155_v57  ;;  %v1976_v57 = vld [vmem:[%s7637_s0 + $0x630] sm:$0xff] }
 0x2b4   :  { %3157 = vmatmul.bf16.gmra.mxu1 %v1607_v50  ;;  %3326 = vmatpush.bf16.msrb.mxu3 %v2097_v32  ;;  %v586_v50 = vunpack.c.l.bf16 %v156_v59  ;;  %v1260_v28 = vmul.f32 %v5723_v3, %v658_v51  ;;  %v1173_v59 = vmul.f32 %v5950_v1, %v571_v5  ;;  %v1977_v51 = vld [vmem:[%s7637_s0 + $0x638] sm:$0xff] }
 0x2b5   :  { %3261 = vmatmul.bf16.gmra.mxu2 %v1608_v31  ;;  %v1187_v34 = vmul.f32 %v5946_v61, %v585_v39  ;;  %v2105_v44 = vpack.c.bf16 %v1977_v51, %v1976_v57 }
 0x2b6   :  { %v2925_v35 = vpop.f32.mrf.mxu3  ;;  %v1188_v32 = vmul.f32 %v5950_v1, %v586_v50 }
 0x2b7   :  { %v6312_v43 = vadd.f32 %v2925_v35, %v5524_v8  ;;  %v1171_v8 = vmul.f32 %v5941_v56, %v569_v13  ;;  %v1186_v35 = vmul.f32 %v5941_v56, %v584_v36  ;;  %v1665_v36 = vpack.c.bf16 %v1275_v19, %v1260_v28  ;;  %3430 = vmatpush.bf16.msrb.mxu0 %v2105_v44  ;;  %v163_v19 = vld [vmem:[%s7638_s2 + $0x458] sm:$0xff] }
 0x2b8   :  { %v2901_v37 = vpop.f32.mrf.mxu2  ;;  %v2695_v54 = vpop.f32.mrf.mxu0  ;;  %v1622_v5 = vpack.c.bf16 %v1187_v34, %v1172_v16  ;;  %v1623_v50 = vpack.c.bf16 %v1188_v32, %v1173_v59  ;;  %v3874_v16 = vld [vmem:[%s7638_s2 + $0x5b8] sm:$0xff]  ;;  %v7652_v32 = vld [vmem:[#allocation4_spill] sm:$0xff]  ;;  %v599_v44 = vunpack.c.l.bf16 %v163_v19 }
 0x2b9   :  { %v6314_v52 = vadd.f32 %v2901_v37, %v2798_v20  ;;  %v2696_v31 = vadd.f32 %v2695_v54, %v6188_v45  ;;  %v2799_v24 = vpop.f32.mrf.mxu1  ;;  %v2002_v20 = vld [vmem:[%s7637_s0 + $0x700] sm:$0xff]  ;;  %v2003_v45 = vld [vmem:[%s7637_s0 + $0x708] sm:$0xff]  ;;  %v1621_v26 = vpack.c.bf16 %v1186_v35, %v1171_v8  ;;  %v688_v57 = vunpack.c.h.bf16 %v3874_v16  ;;  %v3875_v34 = vld [vmem:[%s7638_s2 + $0x5f4] sm:$0xff] }
 0x2ba   :  { %v2118_v23 = vpack.c.bf16 %v2003_v45, %v2002_v20  ;;  %v164_v8 = vld [vmem:[%s7638_s2 + $0x460] sm:$0xff]  ;;  %v703_v59 = vunpack.c.h.bf16 %v3875_v34 }
 0x2bb   :  { %v2800_v14 = vadd.f32 %v2799_v24, %v2696_v31  ;;  %v1992_v31 = vld [vmem:[%s7637_s0 + $0x6b0] sm:$0xff]  ;;  %v1993_v24 = vld [vmem:[%s7637_s0 + $0x6b8] sm:$0xff] }
 0x2bc   :  { %3641 = vmatpush.bf16.msrb.mxu2 %v2118_v23  ;;  %v2113_v45 = vpack.c.bf16 %v1993_v24, %v1992_v31 }
 0x2be   :  { %v2927_v63 = vpop.f32.mrf.mxu3  ;;  %3534 = vmatpush.bf16.msrb.mxu1 %v2113_v45  ;;  %v1305_v45 = vmul.f32 %v5723_v3, %v703_v59 }
 0x2bf   :  { %v6338_v13 = vadd.f32 %v2927_v63, %v5544_v4 }
 0x2c0   :  { %v2903_v37 = vpop.f32.mrf.mxu2  ;;  %v3019_v39 = vpop.f32.mrf.mxu0 }
 0x2c1   :  { %v6340_v54 = vadd.f32 %v2903_v37, %v2800_v14  ;;  %v3020_v20 = vadd.f32 %v3019_v39, %v6218_v62  ;;  %v3123_v4 = vpop.f32.mrf.mxu1  ;;  %v171_v14 = vld [vmem:[%s7638_s2 + $0x494] sm:$0xff]  ;;  %v172_v62 = vld [vmem:[%s7638_s2 + $0x49c] sm:$0xff]  ;;  %v600_v37 = vunpack.c.h.bf16 %v163_v19 }
 0x2c2   :  { %v614_v63 = vunpack.c.l.bf16 %v171_v14  ;;  %v615_v39 = vunpack.c.h.bf16 %v171_v14 }
 0x2c3   :  { %v3124_v28 = vadd.f32 %v3123_v4, %v3020_v20  ;;  %2969 = vmatmul.bf16.gmra.mxu3 %v1665_v36  ;;  %3058 = vmatmul.bf16.gmra.mxu0 %v1621_v26  ;;  %v1290_v20 = vmul.f32 %v5723_v3, %v688_v57  ;;  %v1202_v19 = vmul.f32 %v5946_v61, %v600_v37 }
 0x2c4   :  { %3162 = vmatmul.bf16.gmra.mxu1 %v1622_v5  ;;  %v601_v5 = vunpack.c.l.bf16 %v164_v8  ;;  %v1216_v16 = vmul.f32 %v5941_v56, %v614_v63 }
 0x2c5   :  { %3266 = vmatmul.bf16.gmra.mxu2 %v1623_v50  ;;  %v616_v50 = vunpack.c.l.bf16 %v172_v62 }
 0x2c6   :  { %v2930_v35 = vpop.f32.mrf.mxu3  ;;  %v1203_v14 = vmul.f32 %v5950_v1, %v601_v5  ;;  %v179_v5 = vld [vmem:[%s7638_s2 + $0x4d0] sm:$0xff] }
 0x2c7   :  { %v6368_v23 = vadd.f32 %v2930_v35, %v7652_v32  ;;  %v1201_v35 = vmul.f32 %v5941_v56, %v599_v44  ;;  %v1218_v8 = vmul.f32 %v5950_v1, %v616_v50  ;;  %v1680_v32 = vpack.c.bf16 %v1305_v45, %v1290_v20  ;;  %v187_v50 = vld [vmem:[%s7638_s2 + $0x50c] sm:$0xff] }
 0x2c8   :  { %v3227_v51 = vpop.f32.mrf.mxu2  ;;  %v3021_v26 = vpop.f32.mrf.mxu0 }
 0x2c9   :  { %v6370_v36 = vadd.f32 %v3227_v51, %v3124_v28  ;;  %v3022_v31 = vadd.f32 %v3021_v26, %v6244_v2  ;;  %v3125_v24 = vpop.f32.mrf.mxu1  ;;  %v1217_v28 = vmul.f32 %v5946_v61, %v615_v39  ;;  %v7653_v2 = vld [vmem:[#allocation5_spill] sm:$0xff]  ;;  %v1636_v51 = vpack.c.bf16 %v1216_v16, %v1201_v35  ;;  %v3877_v35 = vld [vmem:[%s7638_s2 + $0x66c] sm:$0xff] }
 0x2ca   :  { %v1638_v63 = vpack.c.bf16 %v1218_v8, %v1203_v14  ;;  %v733_v16 = vunpack.c.h.bf16 %v3877_v35  ;;  %v629_v8 = vunpack.c.l.bf16 %v179_v5 }
 0x2cb   :  { %v3126_v4 = vadd.f32 %v3125_v24, %v3022_v31  ;;  %v1637_v26 = vpack.c.bf16 %v1217_v28, %v1202_v19  ;;  %v180_v24 = vld [vmem:[%s7638_s2 + $0x4d8] sm:$0xff]  ;;  %v7655_v19 = vld [vmem:[#allocation6_spill] sm:$0xff] }
 0x2ce   :  { %v2932_v62 = vpop.f32.mrf.mxu3 }
 0x2cf   :  { %v6382_v34 = vadd.f32 %v2932_v62, %v7653_v2  ;;  %v644_v62 = vunpack.c.l.bf16 %v187_v50  ;;  %v630_v2 = vunpack.c.h.bf16 %v179_v5 }
 0x2d0   :  { %v3229_v57 = vpop.f32.mrf.mxu2  ;;  %v3024_v44 = vpop.f32.mrf.mxu0 }
 0x2d1   :  { %v6384_v59 = vadd.f32 %v3229_v57, %v3126_v4  ;;  %v3025_v37 = vadd.f32 %v3024_v44, %v6268_v17  ;;  %v3128_v31 = vpop.f32.mrf.mxu1  ;;  %v188_v17 = vld [vmem:[%s7638_s2 + $0x514] sm:$0xff]  ;;  %v631_v44 = vunpack.c.l.bf16 %v180_v24  ;;  %v1232_v5 = vmul.f32 %v5946_v61, %v630_v2 }
 0x2d2   :  { %v3876_v4 = vld [vmem:[%s7638_s2 + $0x630] sm:$0xff] }
 0x2d3   :  { %7654 = vst [vmem:[#allocation2_spill] sm:$0xff] %v6384_v59  ;;  %v3129_v39 = vadd.f32 %v3128_v31, %v3025_v37  ;;  %2974 = vmatmul.bf16.gmra.mxu3 %v1680_v32  ;;  %3063 = vmatmul.bf16.gmra.mxu0 %v1636_v51  ;;  %v718_v45 = vunpack.c.h.bf16 %v3876_v4  ;;  %v645_v51 = vunpack.c.h.bf16 %v187_v50  ;;  %v1335_v4 = vmul.f32 %v5723_v3, %v733_v16 }
 0x2d4   :  { %3167 = vmatmul.bf16.gmra.mxu1 %v1637_v26  ;;  %v646_v26 = vunpack.c.l.bf16 %v188_v17  ;;  %v1233_v24 = vmul.f32 %v5950_v1, %v631_v44 }
 0x2d5   :  { %3271 = vmatmul.bf16.gmra.mxu2 %v1638_v63  ;;  %v1320_v31 = vmul.f32 %v5723_v3, %v718_v45  ;;  %v1247_v50 = vmul.f32 %v5946_v61, %v645_v51 }
 0x2d6   :  { %v2935_v20 = vpop.f32.mrf.mxu3  ;;  %v1248_v17 = vmul.f32 %v5950_v1, %v646_v26  ;;  %v195_v26 = vld [vmem:[%s7638_s2 + $0x548] sm:$0xff] }
 0x2d7   :  { %v6406_v28 = vadd.f32 %v2935_v20, %v7655_v19  ;;  %v1231_v20 = vmul.f32 %v5941_v56, %v629_v8  ;;  %v1246_v19 = vmul.f32 %v5941_v56, %v644_v62  ;;  %v1695_v62 = vpack.c.bf16 %v1335_v4, %v1320_v31  ;;  %v1974_v31 = vld [vmem:[%s7637_s0 + $0x620] sm:$0xff]  ;;  %v196_v4 = vld [vmem:[%s7638_s2 + $0x550] sm:$0xff] }
 0x2d8   :  { %v3232_v14 = vpop.f32.mrf.mxu2  ;;  %v3026_v32 = vpop.f32.mrf.mxu0 }
 0x2d9   :  { %v6408_v57 = vadd.f32 %v3232_v14, %v3129_v39  ;;  %v3027_v63 = vadd.f32 %v3026_v32, %v6282_v27  ;;  %v3130_v37 = vpop.f32.mrf.mxu1  ;;  %v1958_v39 = vld [vmem:[%s7637_s0 + $0x5a0] sm:$0xff]  ;;  %v1959_v27 = vld [vmem:[%s7637_s0 + $0x5a8] sm:$0xff]  ;;  %v1651_v2 = vpack.c.bf16 %v1246_v19, %v1231_v20 }
 0x2da   :  { %v2096_v45 = vpack.c.bf16 %v1959_v27, %v1958_v39  ;;  %v1991_v20 = vld [vmem:[%s7637_s0 + $0x6a8] sm:$0xff] }
 0x2db   :  { %7656 = vst [vmem:[#allocation3_spill] sm:$0xff] %v6408_v57  ;;  %v3131_v35 = vadd.f32 %v3130_v37, %v3027_v63  ;;  %v1652_v37 = vpack.c.bf16 %v1247_v50, %v1232_v5  ;;  %v1653_v57 = vpack.c.bf16 %v1248_v17, %v1233_v24  ;;  %v3878_v5 = vld [vmem:[%s7638_s2 + $0x6a8] sm:$0xff] }
 0x2dc   :  { %3327 = vmatpush.bf16.msrb.mxu3 %v2096_v45  ;;  %v748_v39 = vunpack.c.h.bf16 %v3878_v5  ;;  %v3879_v27 = vld [vmem:[%s7638_s2 + $0x6e4] sm:$0xff] }
 0x2dd   :  { %v763_v50 = vunpack.c.h.bf16 %v3879_v27 }
 0x2de   :  { %v2937_v16 = vpop.f32.mrf.mxu3 }
 0x2df   :  { %v6426_v14 = vadd.f32 %v2937_v16, %v5664_v33  ;;  %v203_v33 = vld [vmem:[%s7638_s2 + $0x584] sm:$0xff]  ;;  %v659_v16 = vunpack.c.l.bf16 %v195_v26 }
 0x2e0   :  { %v3234_v8 = vpop.f32.mrf.mxu2  ;;  %v3029_v63 = vpop.f32.mrf.mxu0 }
 0x2e1   :  { %v6428_v32 = vadd.f32 %v3234_v8, %v3131_v35  ;;  %v3030_v51 = vadd.f32 %v3029_v63, %v6312_v43  ;;  %v3133_v59 = vpop.f32.mrf.mxu1  ;;  %v1975_v43 = vld [vmem:[%s7637_s0 + $0x628] sm:$0xff]  ;;  %v674_v8 = vunpack.c.l.bf16 %v203_v33 }
 0x2e2   :  { %v2104_v35 = vpack.c.bf16 %v1975_v43, %v1974_v31 }
 0x2e3   :  { %v3134_v44 = vadd.f32 %v3133_v59, %v3030_v51  ;;  %2979 = vmatmul.bf16.gmra.mxu3 %v1695_v62  ;;  %3068 = vmatmul.bf16.gmra.mxu0 %v1651_v2  ;;  %v1990_v59 = vld [vmem:[%s7637_s0 + $0x6a0] sm:$0xff]  ;;  %v660_v62 = vunpack.c.h.bf16 %v195_v26  ;;  %v661_v51 = vunpack.c.l.bf16 %v196_v4  ;;  %v1276_v26 = vmul.f32 %v5941_v56, %v674_v8 }
 0x2e4   :  { %3172 = vmatmul.bf16.gmra.mxu1 %v1652_v37  ;;  %v2112_v24 = vpack.c.bf16 %v1991_v20, %v1990_v59  ;;  %3431 = vmatpush.bf16.msrb.mxu0 %v2104_v35  ;;  %v675_v37 = vunpack.c.h.bf16 %v203_v33  ;;  %v1350_v59 = vmul.f32 %v5723_v3, %v748_v39 }
 0x2e5   :  { %3276 = vmatmul.bf16.gmra.mxu2 %v1653_v57  ;;  %v204_v57 = vld [vmem:[%s7638_s2 + $0x58c] sm:$0xff]  ;;  %v1263_v33 = vmul.f32 %v5950_v1, %v661_v51  ;;  %v219_v51 = vld [vmem:[%s7638_s2 + $0x5fc] sm:$0xff] }
 0x2e6   :  { %v2940_v19 = vpop.f32.mrf.mxu3  ;;  %v676_v31 = vunpack.c.l.bf16 %v204_v57  ;;  %3535 = vmatpush.bf16.msrb.mxu1 %v2112_v24  ;;  %v1277_v35 = vmul.f32 %v5946_v61, %v675_v37 }
 0x2e7   :  { %v6462_v17 = vadd.f32 %v2940_v19, %v5693_v46  ;;  %v1365_v46 = vmul.f32 %v5723_v3, %v763_v50  ;;  %v1261_v19 = vmul.f32 %v5941_v56, %v659_v16 }
 0x2e8   :  { %v3237_v45 = vpop.f32.mrf.mxu2  ;;  %v3031_v63 = vpop.f32.mrf.mxu0  ;;  %v1278_v4 = vmul.f32 %v5950_v1, %v676_v31  ;;  %v212_v31 = vld [vmem:[%s7638_s2 + $0x5c8] sm:$0xff] }
 0x2e9   :  { %v6464_v2 = vadd.f32 %v3237_v45, %v3134_v44  ;;  %v3032_v43 = vadd.f32 %v3031_v63, %v6338_v13  ;;  %v3135_v5 = vpop.f32.mrf.mxu1  ;;  %v1262_v44 = vmul.f32 %v5946_v61, %v660_v62  ;;  %v1710_v27 = vpack.c.bf16 %v1365_v46, %v1350_v59 }
 0x2ea   :  { %v1666_v24 = vpack.c.bf16 %v1276_v26, %v1261_v19  ;;  %v1668_v8 = vpack.c.bf16 %v1278_v4, %v1263_v33 }
 0x2eb   :  { %v3136_v20 = vadd.f32 %v3135_v5, %v3032_v43  ;;  %v1667_v16 = vpack.c.bf16 %v1277_v35, %v1262_v44  ;;  %v3880_v5 = vld [vmem:[%s7638_s2 + $0x720] sm:$0xff]  ;;  %v704_v35 = vunpack.c.l.bf16 %v219_v51 }
 0x2ec   :  { %v778_v59 = vunpack.c.h.bf16 %v3880_v5 }
 0x2ee   :  { %v2942_v57 = vpop.f32.mrf.mxu3 }
 0x2ef   :  { %v6476_v13 = vadd.f32 %v2942_v57, %v5717_v7  ;;  %v211_v7 = vld [vmem:[%s7638_s2 + $0x5c0] sm:$0xff] }
 0x2f0   :  { %v3239_v39 = vpop.f32.mrf.mxu2  ;;  %v3034_v45 = vpop.f32.mrf.mxu0  ;;  %v689_v44 = vunpack.c.l.bf16 %v211_v7  ;;  %v690_v33 = vunpack.c.h.bf16 %v211_v7 }
 0x2f1   :  { %v6478_v50 = vadd.f32 %v3239_v39, %v3136_v20  ;;  %v3035_v62 = vadd.f32 %v3034_v45, %v6368_v23  ;;  %v3138_v63 = vpop.f32.mrf.mxu1  ;;  %v220_v23 = vld [vmem:[%s7638_s2 + $0x604] sm:$0xff]  ;;  %v3881_v20 = vld [vmem:[%s7638_s2 + $0x75c] sm:$0xff]  ;;  %v705_v39 = vunpack.c.h.bf16 %v219_v51 }
 0x2f2   :  { %v793_v46 = vunpack.c.h.bf16 %v3881_v20  ;;  %v1292_v7 = vmul.f32 %v5946_v61, %v690_v33 }
 0x2f3   :  { %v3139_v37 = vadd.f32 %v3138_v63, %v3035_v62  ;;  %2984 = vmatmul.bf16.gmra.mxu3 %v1710_v27  ;;  %3073 = vmatmul.bf16.gmra.mxu0 %v1666_v24  ;;  %v691_v27 = vunpack.c.l.bf16 %v212_v31  ;;  %v706_v24 = vunpack.c.l.bf16 %v220_v23 }
 0x2f4   :  { %3177 = vmatmul.bf16.gmra.mxu1 %v1667_v16  ;;  %v1395_v63 = vmul.f32 %v5723_v3, %v793_v46 }
 0x2f5   :  { %3281 = vmatmul.bf16.gmra.mxu2 %v1668_v8  ;;  %v1380_v8 = vmul.f32 %v5723_v3, %v778_v59  ;;  %v1293_v51 = vmul.f32 %v5950_v1, %v691_v27  ;;  %v1308_v31 = vmul.f32 %v5950_v1, %v706_v24  ;;  %v1956_v27 = vld [vmem:[%s7637_s0 + $0x590] sm:$0xff]  ;;  %v227_v24 = vld [vmem:[%s7638_s2 + $0x638] sm:$0xff] }
 0x2f6   :  { %v2945_v43 = vpop.f32.mrf.mxu3 }
 0x2f7   :  { %v6500_v19 = vadd.f32 %v2945_v43, %v5751_v21  ;;  %v1291_v21 = vmul.f32 %v5941_v56, %v689_v44  ;;  %v1306_v43 = vmul.f32 %v5941_v56, %v704_v35  ;;  %v1725_v59 = vpack.c.bf16 %v1395_v63, %v1380_v8  ;;  %v236_v8 = vld [vmem:[%s7638_s2 + $0x67c] sm:$0xff] }
 0x2f8   :  { %v3242_v26 = vpop.f32.mrf.mxu2  ;;  %v3036_v57 = vpop.f32.mrf.mxu0  ;;  %v1683_v35 = vpack.c.bf16 %v1308_v31, %v1293_v51  ;;  %v3882_v63 = vld [vmem:[%s7638_s2 + $0x798] sm:$0xff]  ;;  %v719_v31 = vunpack.c.l.bf16 %v227_v24 }
 0x2f9   :  { %v6502_v4 = vadd.f32 %v3242_v26, %v3139_v37  ;;  %v3037_v45 = vadd.f32 %v3036_v57, %v6382_v34  ;;  %v3140_v16 = vpop.f32.mrf.mxu1  ;;  %v1307_v37 = vmul.f32 %v5946_v61, %v705_v39  ;;  %v1681_v20 = vpack.c.bf16 %v1306_v43, %v1291_v21  ;;  %v3883_v43 = vld [vmem:[%s7638_s2 + $0x7d4] sm:$0xff] }
 0x2fa   :  { %v808_v21 = vunpack.c.h.bf16 %v3882_v63 }
 0x2fb   :  { %v3141_v62 = vadd.f32 %v3140_v16, %v3037_v45  ;;  %v1682_v44 = vpack.c.bf16 %v1307_v37, %v1292_v7  ;;  %v228_v16 = vld [vmem:[%s7638_s2 + $0x640] sm:$0xff]  ;;  %v823_v7 = vunpack.c.h.bf16 %v3883_v43  ;;  %v1989_v43 = vld [vmem:[%s7637_s0 + $0x698] sm:$0xff] }
 0x2fe   :  { %v2947_v23 = vpop.f32.mrf.mxu3 }
 0x2ff   :  { %v6514_v34 = vadd.f32 %v2947_v23, %v5769_v12  ;;  %v1957_v12 = vld [vmem:[%s7637_s0 + $0x598] sm:$0xff] }
 0x300   :  { %v3244_v5 = vpop.f32.mrf.mxu2  ;;  %v3039_v26 = vpop.f32.mrf.mxu0  ;;  %v2095_v45 = vpack.c.bf16 %v1957_v12, %v1956_v27  ;;  %v1410_v27 = vmul.f32 %v5723_v3, %v808_v21  ;;  %v1425_v12 = vmul.f32 %v5723_v3, %v823_v7 }
 0x301   :  { %v6516_v46 = vadd.f32 %v3244_v5, %v3141_v62  ;;  %v3040_v33 = vadd.f32 %v3039_v26, %v6406_v28  ;;  %v3143_v57 = vpop.f32.mrf.mxu1  ;;  %v235_v28 = vld [vmem:[%s7638_s2 + $0x674] sm:$0xff]  ;;  %v720_v5 = vunpack.c.h.bf16 %v227_v24 }
 0x302   :  { %3328 = vmatpush.bf16.msrb.mxu3 %v2095_v45  ;;  %v734_v23 = vunpack.c.l.bf16 %v235_v28  ;;  %v735_v26 = vunpack.c.h.bf16 %v235_v28  ;;  %v1988_v28 = vld [vmem:[%s7637_s0 + $0x690] sm:$0xff] }
 0x303   :  { %v3144_v39 = vadd.f32 %v3143_v57, %v3040_v33  ;;  %2989 = vmatmul.bf16.gmra.mxu3 %v1725_v59  ;;  %3078 = vmatmul.bf16.gmra.mxu0 %v1681_v20  ;;  %v1322_v24 = vmul.f32 %v5946_v61, %v720_v5  ;;  %v2111_v7 = vpack.c.bf16 %v1989_v43, %v1988_v28 }
 0x304   :  { %3182 = vmatmul.bf16.gmra.mxu1 %v1682_v44  ;;  %v721_v44 = vunpack.c.l.bf16 %v228_v16  ;;  %v1337_v16 = vmul.f32 %v5946_v61, %v735_v26  ;;  %v1740_v5 = vpack.c.bf16 %v1425_v12, %v1410_v27  ;;  %v251_v27 = vld [vmem:[%s7638_s2 + $0x6ec] sm:$0xff]  ;;  %v244_v12 = vld [vmem:[%s7638_s2 + $0x6b8] sm:$0xff] }
 0x305   :  { %3286 = vmatmul.bf16.gmra.mxu2 %v1683_v35  ;;  %v736_v35 = vunpack.c.l.bf16 %v236_v8  ;;  %3536 = vmatpush.bf16.msrb.mxu1 %v2111_v7 }
 0x306   :  { %v2950_v62 = vpop.f32.mrf.mxu3  ;;  %v1323_v8 = vmul.f32 %v5950_v1, %v721_v44 }
 0x307   :  { %v6544_v37 = vadd.f32 %v2950_v62, %v5802_v15  ;;  %v1321_v15 = vmul.f32 %v5941_v56, %v719_v31  ;;  %v1336_v62 = vmul.f32 %v5941_v56, %v734_v23  ;;  %v1338_v63 = vmul.f32 %v5950_v1, %v736_v35 }
 0x308   :  { %v3247_v51 = vpop.f32.mrf.mxu2  ;;  %v3041_v20 = vpop.f32.mrf.mxu0 }
 0x309   :  { %v6546_v59 = vadd.f32 %v3247_v51, %v3144_v39  ;;  %v3042_v33 = vadd.f32 %v3041_v20, %v6426_v14  ;;  %v3145_v57 = vpop.f32.mrf.mxu1  ;;  %v1972_v39 = vld [vmem:[%s7637_s0 + $0x610] sm:$0xff]  ;;  %v1973_v14 = vld [vmem:[%s7637_s0 + $0x618] sm:$0xff]  ;;  %v1696_v20 = vpack.c.bf16 %v1336_v62, %v1321_v15  ;;  %v1698_v35 = vpack.c.bf16 %v1338_v63, %v1323_v8 }
 0x30a   :  { %v2103_v21 = vpack.c.bf16 %v1973_v14, %v1972_v39  ;;  %v3884_v15 = vld [vmem:[%s7638_s2 + $0x810] sm:$0xff] }
 0x30b   :  { %v3146_v45 = vadd.f32 %v3145_v57, %v3042_v33  ;;  %v1697_v33 = vpack.c.bf16 %v1337_v16, %v1322_v24  ;;  %v838_v62 = vunpack.c.h.bf16 %v3884_v15  ;;  %v3885_v24 = vld [vmem:[%s7638_s2 + $0x84c] sm:$0xff] }
 0x30c   :  { %3432 = vmatpush.bf16.msrb.mxu0 %v2103_v21  ;;  %v853_v28 = vunpack.c.h.bf16 %v3885_v24  ;;  %v764_v21 = vunpack.c.l.bf16 %v251_v27  ;;  %v1955_v15 = vld [vmem:[%s7637_s0 + $0x588] sm:$0xff] }
 0x30e   :  { %v2952_v51 = vpop.f32.mrf.mxu3 }
 0x30f   :  { %v6570_v31 = vadd.f32 %v2952_v51, %v5814_v55  ;;  %v243_v55 = vld [vmem:[%s7638_s2 + $0x6b0] sm:$0xff] }
 0x310   :  { %v3249_v23 = vpop.f32.mrf.mxu2  ;;  %v3044_v44 = vpop.f32.mrf.mxu0  ;;  %v749_v63 = vunpack.c.l.bf16 %v243_v55  ;;  %v750_v43 = vunpack.c.h.bf16 %v243_v55 }
 0x311   :  { %v6572_v26 = vadd.f32 %v3249_v23, %v3146_v45  ;;  %v3045_v57 = vadd.f32 %v3044_v44, %v6462_v17  ;;  %v3148_v39 = vpop.f32.mrf.mxu1  ;;  %v252_v17 = vld [vmem:[%s7638_s2 + $0x6f4] sm:$0xff]  ;;  %v765_v23 = vunpack.c.h.bf16 %v251_v27 }
 0x312   :  { %v1352_v55 = vmul.f32 %v5946_v61, %v750_v43 }
 0x313   :  { %v3149_v14 = vadd.f32 %v3148_v39, %v3045_v57  ;;  %2994 = vmatmul.bf16.gmra.mxu3 %v1740_v5  ;;  %3083 = vmatmul.bf16.gmra.mxu0 %v1696_v20  ;;  %v751_v5 = vunpack.c.l.bf16 %v244_v12  ;;  %v766_v20 = vunpack.c.l.bf16 %v252_v17  ;;  %v1455_v39 = vmul.f32 %v5723_v3, %v853_v28 }
 0x314   :  { %3187 = vmatmul.bf16.gmra.mxu1 %v1697_v33 }
 0x315   :  { %3291 = vmatmul.bf16.gmra.mxu2 %v1698_v35  ;;  %v1440_v35 = vmul.f32 %v5723_v3, %v838_v62  ;;  %v1353_v27 = vmul.f32 %v5950_v1, %v751_v5  ;;  %v1368_v12 = vmul.f32 %v5950_v1, %v766_v20 }
 0x316   :  { %v2955_v45 = vpop.f32.mrf.mxu3 }
 0x317   :  { %v6594_v16 = vadd.f32 %v2955_v45, %v5841_v53  ;;  %v1351_v53 = vmul.f32 %v5941_v56, %v749_v63  ;;  %v1366_v45 = vmul.f32 %v5941_v56, %v764_v21  ;;  %v1755_v28 = vpack.c.bf16 %v1455_v39, %v1440_v35  ;;  %v260_v35 = vld [vmem:[%s7638_s2 + $0x730] sm:$0xff]  ;;  %v3886_v39 = vld [vmem:[%s7638_s2 + $0x888] sm:$0xff] }
 0x318   :  { %v3252_v8 = vpop.f32.mrf.mxu2  ;;  %v3046_v51 = vpop.f32.mrf.mxu0 }
 0x319   :  { %v6596_v7 = vadd.f32 %v3252_v8, %v3149_v14  ;;  %v3047_v44 = vadd.f32 %v3046_v51, %v6476_v13  ;;  %v3150_v33 = vpop.f32.mrf.mxu1  ;;  %v1367_v14 = vmul.f32 %v5946_v61, %v765_v23  ;;  %v1954_v13 = vld [vmem:[%s7637_s0 + $0x580] sm:$0xff]  ;;  %v1711_v8 = vpack.c.bf16 %v1366_v45, %v1351_v53 }
 0x31a   :  { %v2094_v63 = vpack.c.bf16 %v1955_v15, %v1954_v13  ;;  %v1713_v23 = vpack.c.bf16 %v1368_v12, %v1353_v27  ;;  %v868_v53 = vunpack.c.h.bf16 %v3886_v39  ;;  %v3887_v45 = vld [vmem:[%s7638_s2 + $0x8c4] sm:$0xff] }
 0x31b   :  { %v3151_v57 = vadd.f32 %v3150_v33, %v3047_v44  ;;  %v1712_v51 = vpack.c.bf16 %v1367_v14, %v1352_v55  ;;  %v267_v33 = vld [vmem:[%s7638_s2 + $0x764] sm:$0xff]  ;;  %v883_v55 = vunpack.c.h.bf16 %v3887_v45 }
 0x31c   :  { %3329 = vmatpush.bf16.msrb.mxu3 %v2094_v63 }
 0x31e   :  { %v2957_v17 = vpop.f32.mrf.mxu3 }
 0x31f   :  { %v6614_v62 = vadd.f32 %v2957_v17, %v5861_v38  ;;  %v259_v38 = vld [vmem:[%s7638_s2 + $0x728] sm:$0xff]  ;;  %v794_v17 = vunpack.c.l.bf16 %v267_v33 }
 0x320   :  { %v3254_v24 = vpop.f32.mrf.mxu2  ;;  %v3049_v43 = vpop.f32.mrf.mxu0  ;;  %v779_v12 = vunpack.c.l.bf16 %v259_v38  ;;  %v780_v13 = vunpack.c.h.bf16 %v259_v38 }
 0x321   :  { %v6616_v21 = vadd.f32 %v3254_v24, %v3151_v57  ;;  %v3050_v5 = vadd.f32 %v3049_v43, %v6500_v19  ;;  %v3153_v20 = vpop.f32.mrf.mxu1  ;;  %v268_v19 = vld [vmem:[%s7638_s2 + $0x76c] sm:$0xff] }
 0x322   :  { %v796_v63 = vunpack.c.l.bf16 %v268_v19  ;;  %v1382_v38 = vmul.f32 %v5946_v61, %v780_v13  ;;  %v1971_v13 = vld [vmem:[%s7637_s0 + $0x608] sm:$0xff] }
 0x323   :  { %v3154_v44 = vadd.f32 %v3153_v20, %v3050_v5  ;;  %2999 = vmatmul.bf16.gmra.mxu3 %v1755_v28  ;;  %3088 = vmatmul.bf16.gmra.mxu0 %v1711_v8  ;;  %v795_v28 = vunpack.c.h.bf16 %v267_v33  ;;  %v781_v8 = vunpack.c.l.bf16 %v260_v35  ;;  %v1485_v20 = vmul.f32 %v5723_v3, %v883_v55 }
 0x324   :  { %3192 = vmatmul.bf16.gmra.mxu1 %v1712_v51  ;;  %v1398_v35 = vmul.f32 %v5950_v1, %v796_v63 }
 0x325   :  { %3296 = vmatmul.bf16.gmra.mxu2 %v1713_v23  ;;  %v1470_v23 = vmul.f32 %v5723_v3, %v868_v53  ;;  %v1383_v33 = vmul.f32 %v5950_v1, %v781_v8  ;;  %v275_v8 = vld [vmem:[%s7638_s2 + $0x7a0] sm:$0xff] }
 0x326   :  { %v2960_v57 = vpop.f32.mrf.mxu3 }
 0x327   :  { %v6638_v14 = vadd.f32 %v2960_v57, %v5897_v22  ;;  %v1381_v22 = vmul.f32 %v5941_v56, %v779_v12  ;;  %v1396_v57 = vmul.f32 %v5941_v56, %v794_v17  ;;  %v1770_v53 = vpack.c.bf16 %v1485_v20, %v1470_v23  ;;  %v1970_v17 = vld [vmem:[%s7637_s0 + $0x600] sm:$0xff] }
 0x328   :  { %v3257_v27 = vpop.f32.mrf.mxu2  ;;  %v3051_v24 = vpop.f32.mrf.mxu0  ;;  %v1728_v12 = vpack.c.bf16 %v1398_v35, %v1383_v33  ;;  %v284_v20 = vld [vmem:[%s7638_s2 + $0x7e4] sm:$0xff] }
 0x329   :  { %v6640_v15 = vadd.f32 %v3257_v27, %v3154_v44  ;;  %v3052_v43 = vadd.f32 %v3051_v24, %v6514_v34  ;;  %v3155_v51 = vpop.f32.mrf.mxu1  ;;  %v1397_v44 = vmul.f32 %v5946_v61, %v795_v28  ;;  %v1726_v45 = vpack.c.bf16 %v1396_v57, %v1381_v22 }
 0x32a   :  { %v2102_v28 = vpack.c.bf16 %v1971_v13, %v1970_v17  ;;  %v809_v57 = vunpack.c.l.bf16 %v275_v8 }
 0x32b   :  { %v3156_v5 = vadd.f32 %v3155_v51, %v3052_v43  ;;  %v1727_v27 = vpack.c.bf16 %v1397_v44, %v1382_v38  ;;  %v283_v43 = vld [vmem:[%s7638_s2 + $0x7dc] sm:$0xff]  ;;  %v810_v44 = vunpack.c.h.bf16 %v275_v8 }
 0x32c   :  { %v1986_v51 = vld [vmem:[%s7637_s0 + $0x680] sm:$0xff]  ;;  %3433 = vmatpush.bf16.msrb.mxu0 %v2102_v28  ;;  %v824_v38 = vunpack.c.l.bf16 %v283_v43  ;;  %v825_v17 = vunpack.c.h.bf16 %v283_v43  ;;  %v1411_v8 = vmul.f32 %v5941_v56, %v809_v57 }
 0x32e   :  { %v2962_v19 = vpop.f32.mrf.mxu3 }
 0x32f   :  { %v6652_v34 = vadd.f32 %v2962_v19, %v5917_v47  ;;  %v3888_v19 = vld [vmem:[%s7638_s2 + $0x28] sm:$0xff] }
 0x330   :  { %v3259_v39 = vpop.f32.mrf.mxu2  ;;  %v3054_v55 = vpop.f32.mrf.mxu0 }
 0x331   :  { %v6654_v3 = vadd.f32 %v3259_v39, %v3156_v5  ;;  %v3055_v24 = vadd.f32 %v3054_v55, %v6544_v37  ;;  %v3158_v47 = vpop.f32.mrf.mxu1  ;;  %v1987_v37 = vld [vmem:[%s7637_s0 + $0x688] sm:$0xff]  ;;  %v332_v39 = vunpack.c.h.bf16 %v3888_v19  ;;  %v1412_v19 = vmul.f32 %v5946_v61, %v810_v44 }
 0x332   :  { %v2110_v23 = vpack.c.bf16 %v1987_v37, %v1986_v51  ;;  %v276_v5 = vld [vmem:[%s7638_s2 + $0x7a8] sm:$0xff]  ;;  %v1426_v37 = vmul.f32 %v5941_v56, %v824_v38 }
 0x333   :  { %v3159_v63 = vadd.f32 %v3158_v47, %v3055_v24  ;;  %3004 = vmatmul.bf16.gmra.mxu3 %v1770_v53  ;;  %3093 = vmatmul.bf16.gmra.mxu0 %v1726_v45  ;;  %v3889_v53 = vld [vmem:[%s7638_s2 + $0x64] sm:$0xff]  ;;  %v811_v13 = vunpack.c.l.bf16 %v276_v5  ;;  %v826_v24 = vunpack.c.l.bf16 %v284_v20 }
 0x334   :  { %3197 = vmatmul.bf16.gmra.mxu1 %v1727_v27  ;;  %v347_v45 = vunpack.c.h.bf16 %v3889_v53  ;;  %v6693_v55 = vld [vmem:[%s7639_s1 + $0x8] sm:$0x7f] }
 0x335   :  { %3301 = vmatmul.bf16.gmra.mxu2 %v1728_v12  ;;  %3537 = vmatpush.bf16.msrb.mxu1 %v2110_v23  ;;  %v6696_v27 = vperm.slane %v6693_v55, 3  ;;  %v1413_v43 = vmul.f32 %v5950_v1, %v811_v13  ;;  %v1428_v5 = vmul.f32 %v5950_v1, %v826_v24  ;;  %v291_v13 = vld [vmem:[%s7638_s2 + $0x818] sm:$0xff]  ;;  %v292_v24 = vld [vmem:[%s7638_s2 + $0x820] sm:$0xff] }
 0x336   :  { %v2965_v22 = vpop.f32.mrf.mxu3 }
 0x337   :  { %v6682_v33 = vadd.f32 %v2965_v22, %v5948_v42  ;;  %v934_v23 = vmul.f32 %v6696_v27, %v332_v39  ;;  %v949_v22 = vmul.f32 %v6696_v27, %v347_v45  ;;  %v1743_v45 = vpack.c.bf16 %v1428_v5, %v1413_v43  ;;  %v3892_v43 = vld [vmem:[%s7638_s2 + $0xdc] sm:$0xff] }
 0x338   :  { %v3262_v35 = vpop.f32.mrf.mxu2  ;;  %v3056_v12 = vpop.f32.mrf.mxu0  ;;  %v377_v5 = vunpack.c.h.bf16 %v3892_v43 }
 0x339   :  { %v6698_v42 = vadd.f32 %v3262_v35, %v3159_v63  ;;  %v3057_v47 = vadd.f32 %v3056_v12, %v6570_v31  ;;  %v3160_v28 = vpop.f32.mrf.mxu1  ;;  %v1427_v63 = vmul.f32 %v5946_v61, %v825_v17  ;;  %v1741_v35 = vpack.c.bf16 %v1426_v37, %v1411_v8 }
 0x33a   :  { %v1504_v53 = vpack.c.bf16 %v949_v22, %v934_v23  ;;  %v839_v8 = vunpack.c.l.bf16 %v291_v13  ;;  %v840_v22 = vunpack.c.h.bf16 %v291_v13 }
 0x33b   :  { %v3161_v51 = vadd.f32 %v3160_v28, %v3057_v47  ;;  %v1742_v12 = vpack.c.bf16 %v1427_v63, %v1412_v19  ;;  %v3891_v19 = vld [vmem:[%s7638_s2 + $0xa0] sm:$0xff] }
 0x33c   :  { %v362_v63 = vunpack.c.h.bf16 %v3891_v19  ;;  %v1442_v19 = vmul.f32 %v5946_v61, %v840_v22 }
 0x33e   :  { %v2967_v20 = vpop.f32.mrf.mxu3  ;;  %v964_v13 = vmul.f32 %v6696_v27, %v362_v63 }
 0x33f   :  { %v6710_v31 = vadd.f32 %v2967_v20, %v5964_v49  ;;  %v299_v49 = vld [vmem:[%s7638_s2 + $0x854] sm:$0xff] }
 0x340   :  { %v3264_v57 = vpop.f32.mrf.mxu2  ;;  %v3059_v39 = vpop.f32.mrf.mxu0 }
 0x341   :  { %v6712_v38 = vadd.f32 %v3264_v57, %v3161_v51  ;;  %v3060_v44 = vadd.f32 %v3059_v39, %v6594_v16  ;;  %v3163_v47 = vpop.f32.mrf.mxu1  ;;  %v300_v16 = vld [vmem:[%s7638_s2 + $0x85c] sm:$0xff]  ;;  %v854_v51 = vunpack.c.l.bf16 %v299_v49 }
 0x342   :  { %v856_v39 = vunpack.c.l.bf16 %v300_v16 }
 0x343   :  { %v3164_v17 = vadd.f32 %v3163_v47, %v3060_v44  ;;  %3098 = vmatmul.bf16.gmra.mxu0 %v1741_v35  ;;  %3330 = vmatmul.bf16.vlgmr.msrb.gmra.mxu3 %v1504_v53  ;;  %v855_v35 = vunpack.c.h.bf16 %v299_v49  ;;  %v841_v53 = vunpack.c.l.bf16 %v292_v24  ;;  %v1456_v47 = vmul.f32 %v5941_v56, %v854_v51 }
 0x344   :  { %3202 = vmatmul.bf16.gmra.mxu1 %v1742_v12  ;;  %v1458_v24 = vmul.f32 %v5950_v1, %v856_v39  ;;  %v308_v39 = vld [vmem:[%s7638_s2 + $0x898] sm:$0xff] }
 0x345   :  { %3306 = vmatmul.bf16.gmra.mxu2 %v1743_v45  ;;  %v1441_v45 = vmul.f32 %v5941_v56, %v839_v8  ;;  %v1443_v49 = vmul.f32 %v5950_v1, %v841_v53  ;;  %v307_v53 = vld [vmem:[%s7638_s2 + $0x890] sm:$0xff] }
 0x346   :  { %v2970_v28 = vpop.f32.mrf.mxu3 }
 0x347   :  { %v6728_v37 = vadd.f32 %v2970_v28, %v5994_v0  ;;  %v979_v28 = vmul.f32 %v6696_v27, %v377_v5  ;;  %v1758_v5 = vpack.c.bf16 %v1458_v24, %v1443_v49  ;;  %v3894_v49 = vld [vmem:[%s7638_s2 + $0x154] sm:$0xff] }
 0x348   :  { %v3267_v23 = vpop.f32.mrf.mxu2  ;;  %v3061_v57 = vpop.f32.mrf.mxu0  ;;  %v407_v24 = vunpack.c.h.bf16 %v3894_v49 }
 0x349   :  { %v6736_v20 = vadd.f32 %v3267_v23, %v3164_v17  ;;  %v3062_v0 = vadd.f32 %v3061_v57, %v6614_v62  ;;  %v3165_v12 = vpop.f32.mrf.mxu1  ;;  %v1457_v17 = vmul.f32 %v5946_v61, %v855_v35  ;;  %v1756_v23 = vpack.c.bf16 %v1456_v47, %v1441_v45 }
 0x34a   :  { %v1519_v43 = vpack.c.bf16 %v979_v28, %v964_v13  ;;  %v869_v45 = vunpack.c.l.bf16 %v307_v53  ;;  %v870_v28 = vunpack.c.h.bf16 %v307_v53 }
 0x34b   :  { %v3166_v44 = vadd.f32 %v3165_v12, %v3062_v0  ;;  %v1757_v57 = vpack.c.bf16 %v1457_v17, %v1442_v19  ;;  %v3893_v19 = vld [vmem:[%s7638_s2 + $0x118] sm:$0xff] }
 0x34c   :  { %v392_v17 = vunpack.c.h.bf16 %v3893_v19  ;;  %v1472_v19 = vmul.f32 %v5946_v61, %v870_v28 }
 0x34e   :  { %v2972_v16 = vpop.f32.mrf.mxu3  ;;  %v994_v53 = vmul.f32 %v6696_v27, %v392_v17 }
 0x34f   :  { %v6748_v62 = vadd.f32 %v2972_v16, %v6020_v30  ;;  %v315_v30 = vld [vmem:[%s7638_s2 + $0x8cc] sm:$0xff] }
 0x350   :  { %v3269_v8 = vpop.f32.mrf.mxu2  ;;  %v3064_v63 = vpop.f32.mrf.mxu0 }
 0x351   :  { %v6750_v51 = vadd.f32 %v3269_v8, %v3166_v44  ;;  %v3065_v22 = vadd.f32 %v3064_v63, %v6638_v14  ;;  %v3168_v0 = vpop.f32.mrf.mxu1  ;;  %v316_v14 = vld [vmem:[%s7638_s2 + $0x8d4] sm:$0xff]  ;;  %v884_v44 = vunpack.c.l.bf16 %v315_v30 }
 0x352   :  { %v886_v63 = vunpack.c.l.bf16 %v316_v14 }
 0x353   :  { %v3169_v35 = vadd.f32 %v3168_v0, %v3065_v22  ;;  %3103 = vmatmul.bf16.gmra.mxu0 %v1756_v23  ;;  %3335 = vmatmul.bf16.gmra.mxu3 %v1519_v43  ;;  %v885_v23 = vunpack.c.h.bf16 %v315_v30  ;;  %v871_v43 = vunpack.c.l.bf16 %v308_v39  ;;  %v1486_v0 = vmul.f32 %v5941_v56, %v884_v44 }
 0x354   :  { %3207 = vmatmul.bf16.gmra.mxu1 %v1757_v57  ;;  %v1488_v39 = vmul.f32 %v5950_v1, %v886_v63  ;;  %v30_v63 = vld [vmem:[%s7638_s2 + $0x74] sm:$0xf] }
 0x355   :  { %3311 = vmatmul.bf16.gmra.mxu2 %v1758_v5  ;;  %v1471_v5 = vmul.f32 %v5941_v56, %v869_v45  ;;  %v1473_v30 = vmul.f32 %v5950_v1, %v871_v43  ;;  %v21_v1 = vld [vmem:[%s7638_s2 + $0x30] sm:$0xff] }
 0x356   :  { %v2975_v12 = vpop.f32.mrf.mxu3 }
 0x357   :  { %v6766_v47 = vadd.f32 %v2975_v12, %v6044_v11  ;;  %v1009_v12 = vmul.f32 %v6696_v27, %v407_v24  ;;  %v1773_v24 = vpack.c.bf16 %v1488_v39, %v1473_v30  ;;  %v6816_v39 = vperm.slane %v6693_v55, 5 }
 0x358   :  { %v3272_v13 = vpop.f32.mrf.mxu2  ;;  %v3066_v8 = vpop.f32.mrf.mxu0 }
 0x359   :  { %v6774_v16 = vadd.f32 %v3272_v13, %v3169_v35  ;;  %v3067_v11 = vadd.f32 %v3066_v8, %v6652_v34  ;;  %v3170_v57 = vpop.f32.mrf.mxu1  ;;  %v1487_v35 = vmul.f32 %v5946_v61, %v885_v23  ;;  %v1771_v13 = vpack.c.bf16 %v1486_v0, %v1471_v5  ;;  %v3895_v23 = vld [vmem:[%s7638_s2 + $0x190] sm:$0xff] }
 0x35a   :  { %v1534_v49 = vpack.c.bf16 %v1009_v12, %v994_v53  ;;  %v422_v43 = vunpack.c.h.bf16 %v3895_v23  ;;  %v6810_v53 = vperm.slane %v6693_v55, 4 }
 0x35b   :  { %v3171_v22 = vadd.f32 %v3170_v57, %v3067_v11  ;;  %v1772_v17 = vpack.c.bf16 %v1487_v35, %v1472_v19  ;;  %v3896_v57 = vld [vmem:[%s7638_s2 + $0x1cc] sm:$0xff]  ;;  %v334_v35 = vunpack.c.h.bf16 %v21_v1 }
 0x35c   :  { %v437_v5 = vunpack.c.h.bf16 %v3896_v57 }
 0x35e   :  { %v2977_v14 = vpop.f32.mrf.mxu3 }
 0x35f   :  { %v6786_v34 = vadd.f32 %v2977_v14, %v6058_v58  ;;  %v29_v58 = vld [vmem:[%s7638_s2 + $0x6c] sm:$0xff] }
 0x360   :  { %v3274_v45 = vpop.f32.mrf.mxu2  ;;  %v3069_v44 = vpop.f32.mrf.mxu0  ;;  %v348_v0 = vunpack.c.l.bf16 %v29_v58  ;;  %v349_v30 = vunpack.c.h.bf16 %v29_v58 }
 0x361   :  { %v6788_v56 = vadd.f32 %v3274_v45, %v3171_v22  ;;  %v3070_v28 = vadd.f32 %v3069_v44, %v6682_v33  ;;  %v3173_v8 = vpop.f32.mrf.mxu1  ;;  %v22_v33 = vld [vmem:[%s7638_s2 + $0x38] sm:$0xf]  ;;  %v333_v22 = vunpack.c.l.bf16 %v21_v1  ;;  %v6821_v44 = vperm.slane %v6693_v55, 6 }
 0x362   :  { %v950_v58 = vmul.f32 %v6810_v53, %v348_v0  ;;  %v951_v23 = vmul.f32 %v6816_v39, %v349_v30 }
 0x363   :  { %v3174_v61 = vadd.f32 %v3173_v8, %v3070_v28  ;;  %3108 = vmatmul.bf16.gmra.mxu0 %v1771_v13  ;;  %3340 = vmatmul.bf16.gmra.mxu3 %v1534_v49  ;;  %v335_v13 = vunpack.c.l.bf16 %v22_v33  ;;  %v350_v49 = vunpack.c.l.bf16 %v30_v63  ;;  %v1039_v8 = vmul.f32 %v6696_v27, %v437_v5 }
 0x364   :  { %3212 = vmatmul.bf16.gmra.mxu1 %v1772_v17  ;;  %v935_v1 = vmul.f32 %v6810_v53, %v333_v22 }
 0x365   :  { %3316 = vmatmul.bf16.gmra.mxu2 %v1773_v24  ;;  %v937_v33 = vmul.f32 %v6821_v44, %v335_v13  ;;  %v952_v55 = vmul.f32 %v6821_v44, %v350_v49  ;;  %v45_v13 = vld [vmem:[%s7638_s2 + $0xe4] sm:$0xff]  ;;  %v46_v49 = vld [vmem:[%s7638_s2 + $0xec] sm:$0xf] }
 0x366   :  { %v2980_v11 = vpop.f32.mrf.mxu3  ;;  %v1505_v57 = vpack.c.bf16 %v950_v58, %v935_v1 }
 0x367   :  { %v6813_v12 = vadd.f32 %v2980_v11, %v6082_v60  ;;  %v1024_v60 = vmul.f32 %v6696_v27, %v422_v43  ;;  %v1507_v0 = vpack.c.bf16 %v952_v55, %v937_v33 }
 0x368   :  { %v3277_v19 = vpop.f32.mrf.mxu2  ;;  %v3071_v45 = vpop.f32.mrf.mxu0 }
 0x369   :  { %v6818_v14 = vadd.f32 %v3277_v19, %v3174_v61  ;;  %v3072_v17 = vadd.f32 %v3071_v45, %v6710_v31  ;;  %v3175_v24 = vpop.f32.mrf.mxu1  ;;  %v936_v61 = vmul.f32 %v6816_v39, %v334_v35  ;;  %v1549_v11 = vpack.c.bf16 %v1039_v8, %v1024_v60 }
 0x36b   :  { %v3176_v28 = vadd.f32 %v3175_v24, %v3072_v17  ;;  %v1506_v19 = vpack.c.bf16 %v951_v23, %v936_v61  ;;  %v3897_v24 = vld [vmem:[%s7638_s2 + $0x208] sm:$0xff]  ;;  %v378_v23 = vunpack.c.l.bf16 %v45_v13 }
 0x36c   :  { %v452_v60 = vunpack.c.h.bf16 %v3897_v24 }
 0x36e   :  { %v2982_v63 = vpop.f32.mrf.mxu3 }
 0x36f   :  { %v6833_v31 = vadd.f32 %v2982_v63, %v6102_v9  ;;  %v37_v9 = vld [vmem:[%s7638_s2 + $0xa8] sm:$0xff] }
 0x370   :  { %v3279_v43 = vpop.f32.mrf.mxu2  ;;  %v3074_v22 = vpop.f32.mrf.mxu0  ;;  %v363_v61 = vunpack.c.l.bf16 %v37_v9  ;;  %v364_v33 = vunpack.c.h.bf16 %v37_v9 }
 0x371   :  { %v6835_v5 = vadd.f32 %v3279_v43, %v3176_v28  ;;  %v3075_v35 = vadd.f32 %v3074_v22, %v6728_v37  ;;  %v3178_v45 = vpop.f32.mrf.mxu1  ;;  %v38_v37 = vld [vmem:[%s7638_s2 + $0xb0] sm:$0xf]  ;;  %v3898_v28 = vld [vmem:[%s7638_s2 + $0x244] sm:$0xff]  ;;  %v379_v43 = vunpack.c.h.bf16 %v45_v13 }
 0x372   :  { %v467_v8 = vunpack.c.h.bf16 %v3898_v28  ;;  %v966_v9 = vmul.f32 %v6816_v39, %v364_v33 }
 0x373   :  { %v3179_v30 = vadd.f32 %v3178_v45, %v3075_v35  ;;  %3345 = vmatmul.bf16.gmra.mxu3 %v1549_v11  ;;  %3434 = vmatmul.bf16.vlgmr.msrb.gmra.mxu0 %v1505_v57  ;;  %v365_v11 = vunpack.c.l.bf16 %v38_v37  ;;  %v380_v57 = vunpack.c.l.bf16 %v46_v49 }
 0x374   :  { %3538 = vmatmul.bf16.vlgmr.msrb.gmra.mxu1 %v1506_v19  ;;  %v1069_v45 = vmul.f32 %v6696_v27, %v467_v8 }
 0x375   :  { %3781 = vmatmul.msk.bf16.vlgmr.msrb.gmra.mxu2 %vm2120_vm0, %v1507_v0  ;;  %v1054_v0 = vmul.f32 %v6696_v27, %v452_v60  ;;  %v967_v13 = vmul.f32 %v6821_v44, %v365_v11  ;;  %v982_v37 = vmul.f32 %v6821_v44, %v380_v57  ;;  %v61_v11 = vld [vmem:[%s7638_s2 + $0x15c] sm:$0xff]  ;;  %v54_v57 = vld [vmem:[%s7638_s2 + $0x128] sm:$0xf] }
 0x376   :  { %v2985_v17 = vpop.f32.mrf.mxu3 }
 0x377   :  { %v6858_v1 = vadd.f32 %v2985_v17, %v6138_v29  ;;  %v965_v29 = vmul.f32 %v6810_v53, %v363_v61  ;;  %v980_v17 = vmul.f32 %v6810_v53, %v378_v23  ;;  %v1564_v60 = vpack.c.bf16 %v1069_v45, %v1054_v0 }
 0x378   :  { %v3282_v58 = vpop.f32.mrf.mxu2  ;;  %v3076_v63 = vpop.f32.mrf.mxu0  ;;  %v1522_v23 = vpack.c.bf16 %v982_v37, %v967_v13 }
 0x379   :  { %v6860_v55 = vadd.f32 %v3282_v58, %v3179_v30  ;;  %v3077_v22 = vadd.f32 %v3076_v63, %v6748_v62  ;;  %v3180_v19 = vpop.f32.mrf.mxu1  ;;  %v981_v30 = vmul.f32 %v6816_v39, %v379_v43  ;;  %v1520_v28 = vpack.c.bf16 %v980_v17, %v965_v29 }
 0x37b   :  { %v3181_v35 = vadd.f32 %v3180_v19, %v3077_v22  ;;  %v1521_v61 = vpack.c.bf16 %v981_v30, %v966_v9  ;;  %v3899_v19 = vld [vmem:[%s7638_s2 + $0x280] sm:$0xff]  ;;  %v408_v30 = vunpack.c.l.bf16 %v61_v11 }
 0x37c   :  { %v482_v0 = vunpack.c.h.bf16 %v3899_v19 }
 0x37e   :  { %v2987_v49 = vpop.f32.mrf.mxu3 }
 0x37f   :  { %v6872_v62 = vadd.f32 %v2987_v49, %v6152_v10  ;;  %v53_v10 = vld [vmem:[%s7638_s2 + $0x120] sm:$0xff] }
 0x380   :  { %v3284_v24 = vpop.f32.mrf.mxu2  ;;  %v3079_v58 = vpop.f32.mrf.mxu0  ;;  %v393_v9 = vunpack.c.l.bf16 %v53_v10  ;;  %v394_v13 = vunpack.c.h.bf16 %v53_v10 }
 0x381   :  { %v6874_v8 = vadd.f32 %v3284_v24, %v3181_v35  ;;  %v3080_v33 = vadd.f32 %v3079_v58, %v6766_v47  ;;  %v3183_v63 = vpop.f32.mrf.mxu1  ;;  %v62_v47 = vld [vmem:[%s7638_s2 + $0x164] sm:$0xf]  ;;  %v3900_v35 = vld [vmem:[%s7638_s2 + $0x2bc] sm:$0xff]  ;;  %v409_v24 = vunpack.c.h.bf16 %v61_v11 }
 0x382   :  { %v497_v45 = vunpack.c.h.bf16 %v3900_v35  ;;  %v996_v10 = vmul.f32 %v6816_v39, %v394_v13 }
 0x383   :  { %v3184_v43 = vadd.f32 %v3183_v63, %v3080_v33  ;;  %3350 = vmatmul.bf16.gmra.mxu3 %v1564_v60  ;;  %3439 = vmatmul.bf16.gmra.mxu0 %v1520_v28  ;;  %v395_v60 = vunpack.c.l.bf16 %v54_v57  ;;  %v410_v28 = vunpack.c.l.bf16 %v62_v47 }
 0x384   :  { %3543 = vmatmul.bf16.gmra.mxu1 %v1521_v61  ;;  %v1099_v63 = vmul.f32 %v6696_v27, %v497_v45 }
 0x385   :  { %3782 = vmatmul.msk.bf16.gmra.mxu2 %vm2120_vm0, %v1522_v23  ;;  %v1084_v23 = vmul.f32 %v6696_v27, %v482_v0  ;;  %v997_v11 = vmul.f32 %v6821_v44, %v395_v60  ;;  %v1012_v57 = vmul.f32 %v6821_v44, %v410_v28  ;;  %v77_v60 = vld [vmem:[%s7638_s2 + $0x1d4] sm:$0xff]  ;;  %v70_v28 = vld [vmem:[%s7638_s2 + $0x1a0] sm:$0xf] }
 0x386   :  { %v2990_v22 = vpop.f32.mrf.mxu3 }
 0x387   :  { %v6897_v29 = vadd.f32 %v2990_v22, %v6176_v18  ;;  %v995_v18 = vmul.f32 %v6810_v53, %v393_v9  ;;  %v1010_v22 = vmul.f32 %v6810_v53, %v408_v30  ;;  %v1579_v0 = vpack.c.bf16 %v1099_v63, %v1084_v23 }
 0x388   :  { %v3287_v17 = vpop.f32.mrf.mxu2  ;;  %v3081_v49 = vpop.f32.mrf.mxu0  ;;  %v1537_v30 = vpack.c.bf16 %v1012_v57, %v997_v11 }
 0x389   :  { %v6899_v37 = vadd.f32 %v3287_v17, %v3184_v43  ;;  %v3082_v58 = vadd.f32 %v3081_v49, %v6786_v34  ;;  %v3185_v61 = vpop.f32.mrf.mxu1  ;;  %v1011_v43 = vmul.f32 %v6816_v39, %v409_v24  ;;  %v1535_v35 = vpack.c.bf16 %v1010_v22, %v995_v18 }
 0x38b   :  { %v3186_v33 = vadd.f32 %v3185_v61, %v3082_v58  ;;  %v1536_v9 = vpack.c.bf16 %v1011_v43, %v996_v10  ;;  %v3901_v61 = vld [vmem:[%s7638_s2 + $0x2f8] sm:$0xff]  ;;  %v438_v43 = vunpack.c.l.bf16 %v77_v60 }
 0x38c   :  { %v512_v23 = vunpack.c.h.bf16 %v3901_v61 }
 0x38e   :  { %v2992_v47 = vpop.f32.mrf.mxu3 }
 0x38f   :  { %v6911_v34 = vadd.f32 %v2992_v47, %v6190_v6  ;;  %v69_v6 = vld [vmem:[%s7638_s2 + $0x198] sm:$0xff] }
 0x390   :  { %v3289_v19 = vpop.f32.mrf.mxu2  ;;  %v3084_v17 = vpop.f32.mrf.mxu0  ;;  %v423_v10 = vunpack.c.l.bf16 %v69_v6  ;;  %v424_v11 = vunpack.c.h.bf16 %v69_v6 }
 0x391   :  { %v6913_v45 = vadd.f32 %v3289_v19, %v3186_v33  ;;  %v3085_v13 = vadd.f32 %v3084_v17, %v6813_v12  ;;  %v3188_v49 = vpop.f32.mrf.mxu1  ;;  %v78_v12 = vld [vmem:[%s7638_s2 + $0x1dc] sm:$0xf]  ;;  %v3902_v33 = vld [vmem:[%s7638_s2 + $0x334] sm:$0xff]  ;;  %v439_v19 = vunpack.c.h.bf16 %v77_v60 }
 0x392   :  { %v527_v63 = vunpack.c.h.bf16 %v3902_v33  ;;  %v1026_v6 = vmul.f32 %v6816_v39, %v424_v11 }
 0x393   :  { %v3189_v24 = vadd.f32 %v3188_v49, %v3085_v13  ;;  %3355 = vmatmul.bf16.gmra.mxu3 %v1579_v0  ;;  %3444 = vmatmul.bf16.gmra.mxu0 %v1535_v35  ;;  %v425_v0 = vunpack.c.l.bf16 %v70_v28  ;;  %v440_v35 = vunpack.c.l.bf16 %v78_v12 }
 0x394   :  { %3548 = vmatmul.bf16.gmra.mxu1 %v1536_v9  ;;  %v1129_v49 = vmul.f32 %v6696_v27, %v527_v63 }
 0x395   :  { %3783 = vmatmul.msk.bf16.gmra.mxu2 %vm2120_vm0, %v1537_v30  ;;  %v1114_v30 = vmul.f32 %v6696_v27, %v512_v23  ;;  %v1027_v60 = vmul.f32 %v6821_v44, %v425_v0  ;;  %v1042_v28 = vmul.f32 %v6821_v44, %v440_v35  ;;  %v93_v0 = vld [vmem:[%s7638_s2 + $0x24c] sm:$0xff]  ;;  %v86_v35 = vld [vmem:[%s7638_s2 + $0x218] sm:$0xf] }
 0x396   :  { %v2995_v58 = vpop.f32.mrf.mxu3 }
 0x397   :  { %v6936_v18 = vadd.f32 %v2995_v58, %v6220_v25  ;;  %v1025_v25 = vmul.f32 %v6810_v53, %v423_v10  ;;  %v1040_v58 = vmul.f32 %v6810_v53, %v438_v43  ;;  %v1594_v23 = vpack.c.bf16 %v1129_v49, %v1114_v30 }
 0x398   :  { %v3292_v22 = vpop.f32.mrf.mxu2  ;;  %v3086_v47 = vpop.f32.mrf.mxu0  ;;  %v1552_v43 = vpack.c.bf16 %v1042_v28, %v1027_v60 }
 0x399   :  { %v6938_v57 = vadd.f32 %v3292_v22, %v3189_v24  ;;  %v3087_v17 = vadd.f32 %v3086_v47, %v6833_v31  ;;  %v3190_v9 = vpop.f32.mrf.mxu1  ;;  %v1041_v24 = vmul.f32 %v6816_v39, %v439_v19  ;;  %v1550_v33 = vpack.c.bf16 %v1040_v58, %v1025_v25 }
 0x39b   :  { %v3191_v13 = vadd.f32 %v3190_v9, %v3087_v17  ;;  %v1551_v10 = vpack.c.bf16 %v1041_v24, %v1026_v6  ;;  %v3903_v9 = vld [vmem:[%s7638_s2 + $0x370] sm:$0xff]  ;;  %v468_v24 = vunpack.c.l.bf16 %v93_v0 }
 0x39c   :  { %v542_v30 = vunpack.c.h.bf16 %v3903_v9 }
 0x39e   :  { %v2997_v12 = vpop.f32.mrf.mxu3 }
 0x39f   :  { %v6950_v31 = vadd.f32 %v2997_v12, %v6246_v48  ;;  %v85_v48 = vld [vmem:[%s7638_s2 + $0x210] sm:$0xff] }
 0x3a0   :  { %v3294_v61 = vpop.f32.mrf.mxu2  ;;  %v3089_v22 = vpop.f32.mrf.mxu0  ;;  %v453_v6 = vunpack.c.l.bf16 %v85_v48  ;;  %v454_v60 = vunpack.c.h.bf16 %v85_v48 }
 0x3a1   :  { %v6952_v63 = vadd.f32 %v3294_v61, %v3191_v13  ;;  %v3090_v11 = vadd.f32 %v3089_v22, %v6858_v1  ;;  %v3193_v47 = vpop.f32.mrf.mxu1  ;;  %v94_v1 = vld [vmem:[%s7638_s2 + $0x254] sm:$0xf]  ;;  %v3904_v13 = vld [vmem:[%s7638_s2 + $0x3ac] sm:$0xff]  ;;  %v469_v61 = vunpack.c.h.bf16 %v93_v0 }
 0x3a2   :  { %v557_v49 = vunpack.c.h.bf16 %v3904_v13  ;;  %v1056_v48 = vmul.f32 %v6816_v39, %v454_v60 }
 0x3a3   :  { %v3194_v19 = vadd.f32 %v3193_v47, %v3090_v11  ;;  %3360 = vmatmul.bf16.gmra.mxu3 %v1594_v23  ;;  %3449 = vmatmul.bf16.gmra.mxu0 %v1550_v33  ;;  %v455_v23 = vunpack.c.l.bf16 %v86_v35  ;;  %v470_v33 = vunpack.c.l.bf16 %v94_v1 }
 0x3a4   :  { %3553 = vmatmul.bf16.gmra.mxu1 %v1551_v10  ;;  %v1159_v47 = vmul.f32 %v6696_v27, %v557_v49 }
 0x3a5   :  { %3784 = vmatmul.msk.bf16.gmra.mxu2 %vm2120_vm0, %v1552_v43  ;;  %v1144_v43 = vmul.f32 %v6696_v27, %v542_v30  ;;  %v1057_v0 = vmul.f32 %v6821_v44, %v455_v23  ;;  %v1072_v35 = vmul.f32 %v6821_v44, %v470_v33  ;;  %v109_v23 = vld [vmem:[%s7638_s2 + $0x2c4] sm:$0xff]  ;;  %v102_v33 = vld [vmem:[%s7638_s2 + $0x290] sm:$0xf] }
 0x3a6   :  { %v3000_v17 = vpop.f32.mrf.mxu3 }
 0x3a7   :  { %v6975_v25 = vadd.f32 %v3000_v17, %v6270_v41  ;;  %v1055_v41 = vmul.f32 %v6810_v53, %v453_v6  ;;  %v1070_v17 = vmul.f32 %v6810_v53, %v468_v24  ;;  %v1609_v30 = vpack.c.bf16 %v1159_v47, %v1144_v43 }
 0x3a8   :  { %v3297_v58 = vpop.f32.mrf.mxu2  ;;  %v3091_v12 = vpop.f32.mrf.mxu0  ;;  %v1567_v24 = vpack.c.bf16 %v1072_v35, %v1057_v0 }
 0x3a9   :  { %v6977_v28 = vadd.f32 %v3297_v58, %v3194_v19  ;;  %v3092_v22 = vadd.f32 %v3091_v12, %v6872_v62  ;;  %v3195_v10 = vpop.f32.mrf.mxu1  ;;  %v1071_v19 = vmul.f32 %v6816_v39, %v469_v61  ;;  %v1565_v13 = vpack.c.bf16 %v1070_v17, %v1055_v41 }
 0x3ab   :  { %v3196_v11 = vadd.f32 %v3195_v10, %v3092_v22  ;;  %v1566_v6 = vpack.c.bf16 %v1071_v19, %v1056_v48  ;;  %v3905_v10 = vld [vmem:[%s7638_s2 + $0x3e8] sm:$0xff]  ;;  %v498_v19 = vunpack.c.l.bf16 %v109_v23 }
 0x3ac   :  { %v572_v43 = vunpack.c.h.bf16 %v3905_v10 }
 0x3ae   :  { %v3002_v1 = vpop.f32.mrf.mxu3 }
 0x3af   :  { %v6989_v62 = vadd.f32 %v3002_v1, %v6284_v40  ;;  %v101_v40 = vld [vmem:[%s7638_s2 + $0x288] sm:$0xff] }
 0x3b0   :  { %v3299_v9 = vpop.f32.mrf.mxu2  ;;  %v3094_v58 = vpop.f32.mrf.mxu0  ;;  %v483_v48 = vunpack.c.l.bf16 %v101_v40  ;;  %v484_v0 = vunpack.c.h.bf16 %v101_v40 }
 0x3b1   :  { %v6991_v49 = vadd.f32 %v3299_v9, %v3196_v11  ;;  %v3095_v60 = vadd.f32 %v3094_v58, %v6897_v29  ;;  %v3198_v12 = vpop.f32.mrf.mxu1  ;;  %v110_v29 = vld [vmem:[%s7638_s2 + $0x2cc] sm:$0xf]  ;;  %v3906_v11 = vld [vmem:[%s7638_s2 + $0x424] sm:$0xff]  ;;  %v499_v9 = vunpack.c.h.bf16 %v109_v23 }
 0x3b2   :  { %v587_v47 = vunpack.c.h.bf16 %v3906_v11  ;;  %v1086_v40 = vmul.f32 %v6816_v39, %v484_v0 }
 0x3b3   :  { %v3199_v61 = vadd.f32 %v3198_v12, %v3095_v60  ;;  %3365 = vmatmul.bf16.gmra.mxu3 %v1609_v30  ;;  %3454 = vmatmul.bf16.gmra.mxu0 %v1565_v13  ;;  %v485_v30 = vunpack.c.l.bf16 %v102_v33  ;;  %v500_v13 = vunpack.c.l.bf16 %v110_v29 }
 0x3b4   :  { %3558 = vmatmul.bf16.gmra.mxu1 %v1566_v6  ;;  %v1189_v12 = vmul.f32 %v6696_v27, %v587_v47 }
 0x3b5   :  { %3785 = vmatmul.msk.bf16.gmra.mxu2 %vm2120_vm0, %v1567_v24  ;;  %v1174_v24 = vmul.f32 %v6696_v27, %v572_v43  ;;  %v1087_v23 = vmul.f32 %v6821_v44, %v485_v30  ;;  %v1102_v33 = vmul.f32 %v6821_v44, %v500_v13  ;;  %v125_v30 = vld [vmem:[%s7638_s2 + $0x33c] sm:$0xff]  ;;  %v118_v13 = vld [vmem:[%s7638_s2 + $0x308] sm:$0xf] }
 0x3b6   :  { %v3005_v22 = vpop.f32.mrf.mxu3 }
 0x3b7   :  { %v7014_v41 = vadd.f32 %v3005_v22, %v6314_v52  ;;  %v1085_v52 = vmul.f32 %v6810_v53, %v483_v48  ;;  %v1100_v22 = vmul.f32 %v6810_v53, %v498_v19  ;;  %v1624_v43 = vpack.c.bf16 %v1189_v12, %v1174_v24  ;;  %v3908_v12 = vld [vmem:[%s7638_s2 + $0x49c] sm:$0xff] }
 0x3b8   :  { %v3302_v17 = vpop.f32.mrf.mxu2  ;;  %v3096_v1 = vpop.f32.mrf.mxu0  ;;  %v1582_v19 = vpack.c.bf16 %v1102_v33, %v1087_v23 }
 0x3b9   :  { %v7016_v35 = vadd.f32 %v3302_v17, %v3199_v61  ;;  %v3097_v58 = vadd.f32 %v3096_v1, %v6911_v34  ;;  %v3200_v6 = vpop.f32.mrf.mxu1  ;;  %v1101_v61 = vmul.f32 %v6816_v39, %v499_v9  ;;  %v1580_v11 = vpack.c.bf16 %v1100_v22, %v1085_v52 }
 0x3ba   :  { %v617_v52 = vunpack.c.h.bf16 %v3908_v12 }
 0x3bb   :  { %v3201_v60 = vadd.f32 %v3200_v6, %v3097_v58  ;;  %v1581_v48 = vpack.c.bf16 %v1101_v61, %v1086_v40  ;;  %v3907_v6 = vld [vmem:[%s7638_s2 + $0x460] sm:$0xff]  ;;  %v528_v40 = vunpack.c.l.bf16 %v125_v30 }
 0x3bc   :  { %v602_v24 = vunpack.c.h.bf16 %v3907_v6 }
 0x3bd   :  { %v1130_v6 = vmul.f32 %v6810_v53, %v528_v40 }
 0x3be   :  { %v3007_v29 = vpop.f32.mrf.mxu3 }
 0x3bf   :  { %v7028_v34 = vadd.f32 %v3007_v29, %v6340_v54  ;;  %v117_v54 = vld [vmem:[%s7638_s2 + $0x300] sm:$0xff]  ;;  %v529_v29 = vunpack.c.h.bf16 %v125_v30 }
 0x3c0   :  { %v3304_v10 = vpop.f32.mrf.mxu2  ;;  %v3099_v17 = vpop.f32.mrf.mxu0  ;;  %v513_v22 = vunpack.c.l.bf16 %v117_v54  ;;  %v514_v61 = vunpack.c.h.bf16 %v117_v54 }
 0x3c1   :  { %v7030_v47 = vadd.f32 %v3304_v10, %v3201_v60  ;;  %v3100_v0 = vadd.f32 %v3099_v17, %v6936_v18  ;;  %v3203_v1 = vpop.f32.mrf.mxu1  ;;  %v126_v18 = vld [vmem:[%s7638_s2 + $0x344] sm:$0xf]  ;;  %v515_v10 = vunpack.c.l.bf16 %v118_v13 }
 0x3c2   :  { %v1116_v54 = vmul.f32 %v6816_v39, %v514_v61 }
 0x3c3   :  { %v3204_v9 = vadd.f32 %v3203_v1, %v3100_v0  ;;  %3370 = vmatmul.bf16.gmra.mxu3 %v1624_v43  ;;  %3459 = vmatmul.bf16.gmra.mxu0 %v1580_v11  ;;  %v530_v43 = vunpack.c.l.bf16 %v126_v18  ;;  %v1219_v0 = vmul.f32 %v6696_v27, %v617_v52  ;;  %v1115_v1 = vmul.f32 %v6810_v53, %v513_v22 }
 0x3c4   :  { %3563 = vmatmul.bf16.gmra.mxu1 %v1581_v48  ;;  %v1204_v48 = vmul.f32 %v6696_v27, %v602_v24  ;;  %v1117_v30 = vmul.f32 %v6821_v44, %v515_v10  ;;  %v141_v10 = vld [vmem:[%s7638_s2 + $0x3b4] sm:$0xff] }
 0x3c5   :  { %3786 = vmatmul.msk.bf16.gmra.mxu2 %vm2120_vm0, %v1582_v19  ;;  %v1132_v13 = vmul.f32 %v6821_v44, %v530_v43  ;;  %v1595_v24 = vpack.c.bf16 %v1130_v6, %v1115_v1  ;;  %v134_v43 = vld [vmem:[%s7638_s2 + $0x380] sm:$0xf]  ;;  %v3910_v1 = vld [vmem:[%s7638_s2 + $0x514] sm:$0xff] }
 0x3c6   :  { %v7046_v58 = vpop.f32.mrf.mxu3  ;;  %v647_v6 = vunpack.c.h.bf16 %v3910_v1 }
 0x3c7   :  { %v1597_v22 = vpack.c.bf16 %v1132_v13, %v1117_v30 }
 0x3c8   :  { %v3307_v60 = vpop.f32.mrf.mxu2  ;;  %v3101_v33 = vpop.f32.mrf.mxu0 }
 0x3c9   :  { %v7054_v23 = vadd.f32 %v3307_v60, %v3204_v9  ;;  %v3102_v11 = vadd.f32 %v3101_v33, %v6950_v31  ;;  %v3205_v17 = vpop.f32.mrf.mxu1  ;;  %v1131_v9 = vmul.f32 %v6816_v39, %v529_v29  ;;  %v1639_v60 = vpack.c.bf16 %v1219_v0, %v1204_v48  ;;  %v133_v29 = vld [vmem:[%s7638_s2 + $0x378] sm:$0xff] }
 0x3ca   :  { %v3909_v48 = vld [vmem:[%s7638_s2 + $0x4d8] sm:$0xff]  ;;  %v544_v30 = vunpack.c.h.bf16 %v133_v29 }
 0x3cb   :  { %v3206_v19 = vadd.f32 %v3205_v17, %v3102_v11  ;;  %v1596_v33 = vpack.c.bf16 %v1131_v9, %v1116_v54  ;;  %v543_v54 = vunpack.c.l.bf16 %v133_v29  ;;  %v558_v9 = vunpack.c.l.bf16 %v141_v10 }
 0x3cc   :  { %v1146_v29 = vmul.f32 %v6816_v39, %v544_v30 }
 0x3cd   :  { %v1160_v1 = vmul.f32 %v6810_v53, %v558_v9 }
 0x3ce   :  { %v7065_v18 = vpop.f32.mrf.mxu3 }
 0x3d0   :  { %v3309_v31 = vpop.f32.mrf.mxu2  ;;  %v3104_v52 = vpop.f32.mrf.mxu0 }
 0x3d1   :  { %v7067_v12 = vadd.f32 %v3309_v31, %v3206_v19  ;;  %v3105_v40 = vadd.f32 %v3104_v52, %v6975_v25  ;;  %v3208_v11 = vpop.f32.mrf.mxu1  ;;  %v142_v25 = vld [vmem:[%s7638_s2 + $0x3bc] sm:$0xf]  ;;  %v632_v19 = vunpack.c.h.bf16 %v3909_v48  ;;  %v1249_v48 = vmul.f32 %v6696_v27, %v647_v6 }
 0x3d2   :  { %v560_v52 = vunpack.c.l.bf16 %v142_v25 }
 0x3d3   :  { %7657 = vst [vmem:[#allocation4_spill] sm:$0xff] %v7067_v12  ;;  %v3209_v61 = vadd.f32 %v3208_v11, %v3105_v40  ;;  %3375 = vmatmul.bf16.gmra.mxu3 %v1639_v60  ;;  %3464 = vmatmul.bf16.gmra.mxu0 %v1595_v24  ;;  %v559_v60 = vunpack.c.h.bf16 %v141_v10  ;;  %v545_v24 = vunpack.c.l.bf16 %v134_v43  ;;  %v1234_v40 = vmul.f32 %v6696_v27, %v632_v19 }
 0x3d4   :  { %3568 = vmatmul.bf16.gmra.mxu1 %v1596_v33  ;;  %v1145_v12 = vmul.f32 %v6810_v53, %v543_v54  ;;  %v1162_v43 = vmul.f32 %v6821_v44, %v560_v52 }
 0x3d5   :  { %3787 = vmatmul.msk.bf16.gmra.mxu2 %vm2120_vm0, %v1597_v22  ;;  %v1147_v10 = vmul.f32 %v6821_v44, %v545_v24  ;;  %v150_v24 = vld [vmem:[%s7638_s2 + $0x3f8] sm:$0xf] }
 0x3d6   :  { %v7083_v17 = vpop.f32.mrf.mxu3  ;;  %v1610_v19 = vpack.c.bf16 %v1160_v1, %v1145_v12  ;;  %v157_v12 = vld [vmem:[%s7638_s2 + $0x42c] sm:$0xff] }
 0x3d7   :  { %v1612_v54 = vpack.c.bf16 %v1162_v43, %v1147_v10  ;;  %v3912_v1 = vld [vmem:[%s7638_s2 + $0x58c] sm:$0xff]  ;;  %v588_v10 = vunpack.c.l.bf16 %v157_v12 }
 0x3d8   :  { %v3312_v0 = vpop.f32.mrf.mxu2  ;;  %v3106_v31 = vpop.f32.mrf.mxu0 }
 0x3d9   :  { %v7091_v13 = vadd.f32 %v3312_v0, %v3209_v61  ;;  %v3107_v33 = vadd.f32 %v3106_v31, %v6989_v62  ;;  %v3210_v22 = vpop.f32.mrf.mxu1  ;;  %v1161_v61 = vmul.f32 %v6816_v39, %v559_v60  ;;  %v1654_v0 = vpack.c.bf16 %v1249_v48, %v1234_v40  ;;  %v149_v60 = vld [vmem:[%s7638_s2 + $0x3f0] sm:$0xff] }
 0x3da   :  { %v3911_v40 = vld [vmem:[%s7638_s2 + $0x550] sm:$0xff]  ;;  %v574_v43 = vunpack.c.h.bf16 %v149_v60 }
 0x3db   :  { %7658 = vst [vmem:[#allocation5_spill] sm:$0xff] %v7091_v13  ;;  %v3211_v11 = vadd.f32 %v3210_v22, %v3107_v33  ;;  %v1611_v33 = vpack.c.bf16 %v1161_v61, %v1146_v29  ;;  %v677_v29 = vunpack.c.h.bf16 %v3912_v1  ;;  %v573_v61 = vunpack.c.l.bf16 %v149_v60 }
 0x3dc   :  { %v1190_v1 = vmul.f32 %v6810_v53, %v588_v10  ;;  %v1176_v60 = vmul.f32 %v6816_v39, %v574_v43 }
 0x3dd   :  { %v1175_v13 = vmul.f32 %v6810_v53, %v573_v61 }
 0x3de   :  { %v7102_v25 = vpop.f32.mrf.mxu3 }
 0x3e0   :  { %v3314_v62 = vpop.f32.mrf.mxu2  ;;  %v3109_v6 = vpop.f32.mrf.mxu0 }
 0x3e1   :  { %v7104_v31 = vadd.f32 %v3314_v62, %v3211_v11  ;;  %v3110_v9 = vadd.f32 %v3109_v6, %v7014_v41  ;;  %v3213_v22 = vpop.f32.mrf.mxu1  ;;  %v158_v41 = vld [vmem:[%s7638_s2 + $0x434] sm:$0xf]  ;;  %v662_v11 = vunpack.c.h.bf16 %v3911_v40  ;;  %v575_v6 = vunpack.c.l.bf16 %v150_v24 }
 0x3e3   :  { %7659 = vst [vmem:[#allocation6_spill] sm:$0xff] %v7104_v31  ;;  %v3214_v30 = vadd.f32 %v3213_v22, %v3110_v9  ;;  %3380 = vmatmul.bf16.gmra.mxu3 %v1654_v0  ;;  %3469 = vmatmul.bf16.gmra.mxu0 %v1610_v19  ;;  %v589_v19 = vunpack.c.h.bf16 %v157_v12  ;;  %v1264_v22 = vmul.f32 %v6696_v27, %v662_v11 }
 0x3e4   :  { %3573 = vmatmul.bf16.gmra.mxu1 %v1611_v33  ;;  %v590_v33 = vunpack.c.l.bf16 %v158_v41  ;;  %v1279_v31 = vmul.f32 %v6696_v27, %v677_v29  ;;  %v1177_v12 = vmul.f32 %v6821_v44, %v575_v6  ;;  %v1625_v11 = vpack.c.bf16 %v1190_v1, %v1175_v13  ;;  %v174_v13 = vld [vmem:[%s7638_s2 + $0x4ac] sm:$0xf] }
 0x3e5   :  { %3788 = vmatmul.msk.bf16.gmra.mxu2 %vm2120_vm0, %v1612_v54  ;;  %v3332_v29 = vadd.f32 %v7046_v58, %v6370_v36  ;;  %v173_v36 = vld [vmem:[%s7638_s2 + $0x4a4] sm:$0xff]  ;;  %v166_v58 = vld [vmem:[%s7638_s2 + $0x470] sm:$0xf] }
 0x3e6   :  { %v7120_v52 = vpop.f32.mrf.mxu3  ;;  %v1192_v24 = vmul.f32 %v6821_v44, %v590_v33 }
 0x3e8   :  { %v3317_v48 = vpop.f32.mrf.mxu2  ;;  %v3111_v0 = vpop.f32.mrf.mxu0 }
 0x3e9   :  { %v7128_v62 = vadd.f32 %v3317_v48, %v3214_v30  ;;  %v3112_v54 = vadd.f32 %v3111_v0, %v7028_v34  ;;  %v3215_v9 = vpop.f32.mrf.mxu1  ;;  %v1191_v30 = vmul.f32 %v6816_v39, %v589_v19  ;;  %v1669_v48 = vpack.c.bf16 %v1279_v31, %v1264_v22  ;;  %v165_v31 = vld [vmem:[%s7638_s2 + $0x468] sm:$0xff]  ;;  %v7662_v19 = vld [vmem:[#allocation2_spill] sm:$0xff] }
 0x3ea   :  { %v3334_v6 = vadd.f32 %v7065_v18, %v7662_v19 }
 0x3eb   :  { %7660 = vst [vmem:[#allocation7_spill] sm:$0xff] %v7128_v62  ;;  %v3216_v40 = vadd.f32 %v3215_v9, %v3112_v54  ;;  %v1626_v10 = vpack.c.bf16 %v1191_v30, %v1176_v60  ;;  %v1627_v54 = vpack.c.bf16 %v1192_v24, %v1177_v12  ;;  %v3914_v30 = vld [vmem:[%s7638_s2 + $0x604] sm:$0xff]  ;;  %v603_v24 = vunpack.c.l.bf16 %v165_v31 }
 0x3ec   :  { %v707_v12 = vunpack.c.h.bf16 %v3914_v30 }
 0x3ee   :  { %v7139_v41 = vpop.f32.mrf.mxu3  ;;  %v1309_v19 = vmul.f32 %v6696_v27, %v707_v12 }
 0x3f0   :  { %v3319_v34 = vpop.f32.mrf.mxu2  ;;  %v3435_v61 = vpop.f32.mrf.mxu0 }
 0x3f1   :  { %v7143_v0 = vadd.f32 %v3319_v34, %v3216_v40  ;;  %v3539_v43 = vpop.f32.mrf.mxu1  ;;  %v3436_v9 = vadd.f32 %v3435_v61, %v3332_v29  ;;  %v3913_v40 = vld [vmem:[%s7638_s2 + $0x5c8] sm:$0xff]  ;;  %v618_v34 = vunpack.c.l.bf16 %v173_v36  ;;  %v619_v29 = vunpack.c.h.bf16 %v173_v36 }
 0x3f2   :  { %v692_v1 = vunpack.c.h.bf16 %v3913_v40  ;;  %v605_v61 = vunpack.c.l.bf16 %v166_v58  ;;  %v1205_v40 = vmul.f32 %v6810_v53, %v603_v24 }
 0x3f3   :  { %7661 = vst [vmem:[#allocation8_spill] sm:$0xff] %v7143_v0  ;;  %3385 = vmatmul.bf16.gmra.mxu3 %v1669_v48  ;;  %3474 = vmatmul.bf16.gmra.mxu0 %v1625_v11  ;;  %v3540_v33 = vadd.f32 %v3539_v43, %v3436_v9  ;;  %v604_v48 = vunpack.c.h.bf16 %v165_v31  ;;  %v1220_v31 = vmul.f32 %v6810_v53, %v618_v34 }
 0x3f4   :  { %3578 = vmatmul.bf16.gmra.mxu1 %v1626_v10  ;;  %v620_v10 = vunpack.c.l.bf16 %v174_v13  ;;  %v1294_v9 = vmul.f32 %v6696_v27, %v692_v1  ;;  %v1221_v36 = vmul.f32 %v6816_v39, %v619_v29  ;;  %v1207_v58 = vmul.f32 %v6821_v44, %v605_v61  ;;  %v189_v61 = vld [vmem:[%s7638_s2 + $0x51c] sm:$0xff] }
 0x3f5   :  { %3789 = vmatmul.msk.bf16.gmra.mxu2 %vm2120_vm0, %v1627_v54  ;;  %v1640_v1 = vpack.c.bf16 %v1220_v31, %v1205_v40  ;;  %v3916_v31 = vld [vmem:[%s7638_s2 + $0x67c] sm:$0xff] }
 0x3f6   :  { %v7160_v22 = vpop.f32.mrf.mxu3  ;;  %v1222_v13 = vmul.f32 %v6821_v44, %v620_v10  ;;  %v182_v10 = vld [vmem:[%s7638_s2 + $0x4e8] sm:$0xf] }
 0x3f8   :  { %v3643_v60 = vpop.f32.mrf.mxu2  ;;  %v3437_v18 = vpop.f32.mrf.mxu0  ;;  %v1642_v62 = vpack.c.bf16 %v1222_v13, %v1207_v58  ;;  %v648_v58 = vunpack.c.l.bf16 %v189_v61 }
 0x3f9   :  { %v3644_v11 = vadd.f32 %v3643_v60, %v3540_v33  ;;  %v3541_v54 = vpop.f32.mrf.mxu1  ;;  %v3438_v43 = vadd.f32 %v3437_v18, %v3334_v6  ;;  %v1206_v33 = vmul.f32 %v6816_v39, %v604_v48  ;;  %v7663_v18 = vld [vmem:[#allocation3_spill] sm:$0xff] }
 0x3fa   :  { %v3337_v12 = vadd.f32 %v7083_v17, %v7663_v18  ;;  %v181_v17 = vld [vmem:[%s7638_s2 + $0x4e0] sm:$0xff] }
 0x3fb   :  { %3739 = vst.msk [vmem:[%s7640_s3] sm:$0xff] %vm3738_vm1, %v3644_v11  ;;  %v3542_v60 = vadd.f32 %v3541_v54, %v3438_v43  ;;  %v1684_v11 = vpack.c.bf16 %v1309_v19, %v1294_v9  ;;  %v1641_v34 = vpack.c.bf16 %v1221_v36, %v1206_v33  ;;  %v3339_v54 = vadd.f32 %v7102_v25, %v6428_v32  ;;  %v3915_v9 = vld [vmem:[%s7638_s2 + $0x640] sm:$0xff] }
 0x3fc   :  { %v722_v19 = vunpack.c.h.bf16 %v3915_v9  ;;  %v737_v33 = vunpack.c.h.bf16 %v3916_v31  ;;  %v633_v36 = vunpack.c.l.bf16 %v181_v17  ;;  %v634_v13 = vunpack.c.h.bf16 %v181_v17 }
 0x3fd   :  { %v649_v32 = vunpack.c.h.bf16 %v189_v61  ;;  %v635_v25 = vunpack.c.l.bf16 %v182_v10 }
 0x3fe   :  { %v7180_v30 = vpop.f32.mrf.mxu3 }
 0x3ff   :  { %v1251_v17 = vmul.f32 %v6816_v39, %v649_v32  ;;  %v1237_v61 = vmul.f32 %v6821_v44, %v635_v25  ;;  %v206_v32 = vld [vmem:[%s7638_s2 + $0x59c] sm:$0xf]  ;;  %v3344_v25 = vadd.f32 %v7139_v41, %v6478_v50 }
 0x400   :  { %v3645_v6 = vpop.f32.mrf.mxu2  ;;  %v3440_v0 = vpop.f32.mrf.mxu0 }
 0x401   :  { %v3646_v24 = vadd.f32 %v3645_v6, %v3542_v60  ;;  %v3544_v48 = vpop.f32.mrf.mxu1  ;;  %v3441_v29 = vadd.f32 %v3440_v0, %v3337_v12  ;;  %v190_v0 = vld [vmem:[%s7638_s2 + $0x524] sm:$0xf]  ;;  %v1324_v12 = vmul.f32 %v6696_v27, %v722_v19 }
 0x403   :  { %3740 = vst.msk [vmem:[%s7640_s3 + $0x8] sm:$0xff] %vm3738_vm1, %v3646_v24  ;;  %3390 = vmatmul.bf16.gmra.mxu3 %v1684_v11  ;;  %3479 = vmatmul.bf16.gmra.mxu0 %v1640_v1  ;;  %v650_v11 = vunpack.c.l.bf16 %v190_v0  ;;  %v1339_v24 = vmul.f32 %v6696_v27, %v737_v33 }
 0x404   :  { %3583 = vmatmul.bf16.gmra.mxu1 %v1641_v34  ;;  %v1235_v34 = vmul.f32 %v6810_v53, %v633_v36 }
 0x405   :  { %3790 = vmatmul.msk.bf16.gmra.mxu2 %vm2120_vm0, %v1642_v62  ;;  %v3545_v62 = vadd.f32 %v3544_v48, %v3441_v29  ;;  %v1250_v48 = vmul.f32 %v6810_v53, %v648_v58  ;;  %v1236_v29 = vmul.f32 %v6816_v39, %v634_v13  ;;  %v1252_v10 = vmul.f32 %v6821_v44, %v650_v11 }
 0x406   :  { %v7203_v43 = vpop.f32.mrf.mxu3  ;;  %v1699_v9 = vpack.c.bf16 %v1339_v24, %v1324_v12 }
 0x407   :  { %v1655_v19 = vpack.c.bf16 %v1250_v48, %v1235_v34  ;;  %v1656_v36 = vpack.c.bf16 %v1251_v17, %v1236_v29  ;;  %v1657_v58 = vpack.c.bf16 %v1252_v10, %v1237_v61  ;;  %v3918_v34 = vld [vmem:[%s7638_s2 + $0x6f4] sm:$0xff] }
 0x408   :  { %v3648_v40 = vpop.f32.mrf.mxu2  ;;  %v3442_v6 = vpop.f32.mrf.mxu0  ;;  %v767_v48 = vunpack.c.h.bf16 %v3918_v34 }
 0x409   :  { %v3649_v60 = vadd.f32 %v3648_v40, %v3545_v62  ;;  %v3546_v1 = vpop.f32.mrf.mxu1  ;;  %v3443_v18 = vadd.f32 %v3442_v6, %v3339_v54  ;;  %v3342_v40 = vadd.f32 %v7120_v52, %v6464_v2  ;;  %v197_v2 = vld [vmem:[%s7638_s2 + $0x558] sm:$0xff]  ;;  %v198_v6 = vld [vmem:[%s7638_s2 + $0x560] sm:$0xf] }
 0x40a   :  { %v205_v52 = vld [vmem:[%s7638_s2 + $0x594] sm:$0xff]  ;;  %v663_v29 = vunpack.c.l.bf16 %v197_v2  ;;  %v664_v61 = vunpack.c.h.bf16 %v197_v2  ;;  %v665_v41 = vunpack.c.l.bf16 %v198_v6 }
 0x40b   :  { %3741 = vst.msk [vmem:[%s7640_s3 + $0x10] sm:$0xff] %vm3738_vm1, %v3649_v60  ;;  %v3547_v0 = vadd.f32 %v3546_v1, %v3443_v18  ;;  %v3917_v18 = vld [vmem:[%s7638_s2 + $0x6b8] sm:$0xff]  ;;  %v678_v17 = vunpack.c.l.bf16 %v205_v52  ;;  %v679_v50 = vunpack.c.h.bf16 %v205_v52 }
 0x40c   :  { %v752_v12 = vunpack.c.h.bf16 %v3917_v18  ;;  %v3347_v18 = vadd.f32 %v7160_v22, %v6502_v4  ;;  %v213_v4 = vld [vmem:[%s7638_s2 + $0x5d0] sm:$0xff] }
 0x40d   :  { %v221_v22 = vld [vmem:[%s7638_s2 + $0x60c] sm:$0xff] }
 0x40e   :  { %v7223_v62 = vpop.f32.mrf.mxu3 }
 0x410   :  { %v3650_v54 = vpop.f32.mrf.mxu2  ;;  %v3445_v33 = vpop.f32.mrf.mxu0 }
 0x411   :  { %v3651_v31 = vadd.f32 %v3650_v54, %v3547_v0  ;;  %v3549_v13 = vpop.f32.mrf.mxu1  ;;  %v3446_v60 = vadd.f32 %v3445_v33, %v3342_v40  ;;  %v680_v54 = vunpack.c.l.bf16 %v206_v32  ;;  %v1354_v40 = vmul.f32 %v6696_v27, %v752_v12 }
 0x412   :  { %v1265_v33 = vmul.f32 %v6810_v53, %v663_v29 }
 0x413   :  { %3742 = vst.msk [vmem:[%s7640_s3 + $0x18] sm:$0xff] %vm3738_vm1, %v3651_v31  ;;  %3395 = vmatmul.bf16.gmra.mxu3 %v1699_v9  ;;  %3484 = vmatmul.bf16.gmra.mxu0 %v1655_v19  ;;  %v3550_v11 = vadd.f32 %v3549_v13, %v3446_v60  ;;  %v1369_v31 = vmul.f32 %v6696_v27, %v767_v48 }
 0x414   :  { %3588 = vmatmul.bf16.gmra.mxu1 %v1656_v36  ;;  %v1280_v36 = vmul.f32 %v6810_v53, %v678_v17  ;;  %v1281_v13 = vmul.f32 %v6816_v39, %v679_v50  ;;  %v1267_v60 = vmul.f32 %v6821_v44, %v665_v41  ;;  %v1282_v2 = vmul.f32 %v6821_v44, %v680_v54  ;;  %v3919_v54 = vld [vmem:[%s7638_s2 + $0x730] sm:$0xff] }
 0x415   :  { %3791 = vmatmul.msk.bf16.gmra.mxu2 %vm2120_vm0, %v1657_v58  ;;  %v1266_v58 = vmul.f32 %v6816_v39, %v664_v61  ;;  %v214_v61 = vld [vmem:[%s7638_s2 + $0x5d8] sm:$0xf] }
 0x416   :  { %v7246_v1 = vpop.f32.mrf.mxu3  ;;  %v1672_v48 = vpack.c.bf16 %v1282_v2, %v1267_v60 }
 0x417   :  { %v1671_v34 = vpack.c.bf16 %v1281_v13, %v1266_v58  ;;  %v694_v58 = vunpack.c.h.bf16 %v213_v4 }
 0x418   :  { %v3653_v24 = vpop.f32.mrf.mxu2  ;;  %v3447_v0 = vpop.f32.mrf.mxu0 }
 0x419   :  { %v3654_v10 = vadd.f32 %v3653_v24, %v3550_v11  ;;  %v3551_v9 = vpop.f32.mrf.mxu1  ;;  %v3448_v19 = vadd.f32 %v3447_v0, %v3344_v25  ;;  %v1714_v25 = vpack.c.bf16 %v1369_v31, %v1354_v40  ;;  %v1670_v11 = vpack.c.bf16 %v1280_v36, %v1265_v33  ;;  %v3920_v40 = vld [vmem:[%s7638_s2 + $0x76c] sm:$0xff] }
 0x41a   :  { %v3349_v0 = vadd.f32 %v7180_v30, %v6516_v46  ;;  %v797_v31 = vunpack.c.h.bf16 %v3920_v40  ;;  %v693_v33 = vunpack.c.l.bf16 %v213_v4  ;;  %v708_v36 = vunpack.c.l.bf16 %v221_v22 }
 0x41b   :  { %3743 = vst.msk [vmem:[%s7640_s3 + $0x20] sm:$0xff] %vm3738_vm1, %v3654_v10  ;;  %v3552_v52 = vadd.f32 %v3551_v9, %v3448_v19  ;;  %v222_v10 = vld [vmem:[%s7638_s2 + $0x614] sm:$0xf]  ;;  %v782_v9 = vunpack.c.h.bf16 %v3919_v54  ;;  %v709_v46 = vunpack.c.h.bf16 %v221_v22  ;;  %v695_v30 = vunpack.c.l.bf16 %v214_v61 }
 0x41c   :  { %v710_v2 = vunpack.c.l.bf16 %v222_v10 }
 0x41e   :  { %v7266_v6 = vpop.f32.mrf.mxu3 }
 0x420   :  { %v3655_v32 = vpop.f32.mrf.mxu2  ;;  %v3450_v24 = vpop.f32.mrf.mxu0 }
 0x421   :  { %v3656_v12 = vadd.f32 %v3655_v32, %v3552_v52  ;;  %v3554_v29 = vpop.f32.mrf.mxu1  ;;  %v3451_v17 = vadd.f32 %v3450_v24, %v3347_v18  ;;  %v1295_v18 = vmul.f32 %v6810_v53, %v693_v33  ;;  %v1296_v24 = vmul.f32 %v6816_v39, %v694_v58  ;;  %v230_v33 = vld [vmem:[%s7638_s2 + $0x650] sm:$0xf] }
 0x422   :  { %v3354_v58 = vadd.f32 %v7223_v62, %v6572_v26  ;;  %v725_v62 = vunpack.c.l.bf16 %v230_v33  ;;  %v3357_v33 = vadd.f32 %v7246_v1, %v6596_v7  ;;  %v245_v7 = vld [vmem:[%s7638_s2 + $0x6c0] sm:$0xff] }
 0x423   :  { %3744 = vst.msk [vmem:[%s7640_s3 + $0x28] sm:$0xff] %vm3738_vm1, %v3656_v12  ;;  %3400 = vmatmul.bf16.gmra.mxu3 %v1714_v25  ;;  %3489 = vmatmul.bf16.gmra.mxu0 %v1670_v11  ;;  %v3555_v50 = vadd.f32 %v3554_v29, %v3451_v17  ;;  %v1384_v25 = vmul.f32 %v6696_v27, %v782_v9  ;;  %v253_v1 = vld [vmem:[%s7638_s2 + $0x6fc] sm:$0xff] }
 0x424   :  { %3593 = vmatmul.bf16.gmra.mxu1 %v1671_v34  ;;  %v1399_v11 = vmul.f32 %v6696_v27, %v797_v31  ;;  %v1310_v12 = vmul.f32 %v6810_v53, %v708_v36  ;;  %v1311_v34 = vmul.f32 %v6816_v39, %v709_v46  ;;  %v1312_v29 = vmul.f32 %v6821_v44, %v710_v2  ;;  %v238_v36 = vld [vmem:[%s7638_s2 + $0x68c] sm:$0xf] }
 0x425   :  { %3792 = vmatmul.msk.bf16.gmra.mxu2 %vm2120_vm0, %v1672_v48  ;;  %v1297_v48 = vmul.f32 %v6821_v44, %v695_v30  ;;  %v3921_v46 = vld [vmem:[%s7638_s2 + $0x7a8] sm:$0xff] }
 0x426   :  { %v7289_v41 = vpop.f32.mrf.mxu3  ;;  %v1729_v61 = vpack.c.bf16 %v1399_v11, %v1384_v25  ;;  %v1685_v10 = vpack.c.bf16 %v1310_v12, %v1295_v18  ;;  %v1686_v9 = vpack.c.bf16 %v1311_v34, %v1296_v24  ;;  %v812_v30 = vunpack.c.h.bf16 %v3921_v46 }
 0x427   :  { %v740_v34 = vunpack.c.l.bf16 %v238_v36 }
 0x428   :  { %v3658_v19 = vpop.f32.mrf.mxu2  ;;  %v3452_v60 = vpop.f32.mrf.mxu0 }
 0x429   :  { %v3659_v13 = vadd.f32 %v3658_v19, %v3555_v50  ;;  %v3556_v52 = vpop.f32.mrf.mxu1  ;;  %v3453_v32 = vadd.f32 %v3452_v60, %v3349_v0  ;;  %v3352_v0 = vadd.f32 %v7203_v43, %v6546_v59  ;;  %v1687_v19 = vpack.c.bf16 %v1312_v29, %v1297_v48  ;;  %v229_v59 = vld [vmem:[%s7638_s2 + $0x648] sm:$0xff] }
 0x42a   :  { %v237_v43 = vld [vmem:[%s7638_s2 + $0x684] sm:$0xff]  ;;  %v723_v25 = vunpack.c.l.bf16 %v229_v59  ;;  %v724_v18 = vunpack.c.h.bf16 %v229_v59 }
 0x42b   :  { %3745 = vst.msk [vmem:[%s7640_s3 + $0x30] sm:$0xff] %vm3738_vm1, %v3659_v13  ;;  %v3557_v17 = vadd.f32 %v3556_v52, %v3453_v32  ;;  %v3922_v52 = vld [vmem:[%s7638_s2 + $0x7e4] sm:$0xff]  ;;  %v738_v11 = vunpack.c.l.bf16 %v237_v43  ;;  %v739_v26 = vunpack.c.h.bf16 %v237_v43 }
 0x42c   :  { %v827_v32 = vunpack.c.h.bf16 %v3922_v52  ;;  %v246_v52 = vld [vmem:[%s7638_s2 + $0x6c8] sm:$0xf] }
 0x42e   :  { %v7309_v4 = vpop.f32.mrf.mxu3 }
 0x430   :  { %v3660_v22 = vpop.f32.mrf.mxu2  ;;  %v3455_v54 = vpop.f32.mrf.mxu0 }
 0x431   :  { %v3661_v50 = vadd.f32 %v3660_v22, %v3557_v17  ;;  %v3559_v40 = vpop.f32.mrf.mxu1  ;;  %v3456_v31 = vadd.f32 %v3455_v54, %v3352_v0  ;;  %v1414_v17 = vmul.f32 %v6696_v27, %v812_v30  ;;  %v1429_v22 = vmul.f32 %v6696_v27, %v827_v32  ;;  %v254_v32 = vld [vmem:[%s7638_s2 + $0x704] sm:$0xf] }
 0x432   :  { %v1326_v0 = vmul.f32 %v6816_v39, %v724_v18  ;;  %v1327_v54 = vmul.f32 %v6821_v44, %v725_v62  ;;  %v3924_v62 = vld [vmem:[%s7638_s2 + $0x85c] sm:$0xff] }
 0x433   :  { %3746 = vst.msk [vmem:[%s7640_s3 + $0x38] sm:$0xff] %vm3738_vm1, %v3661_v50  ;;  %3405 = vmatmul.bf16.gmra.mxu3 %v1729_v61  ;;  %3494 = vmatmul.bf16.gmra.mxu0 %v1685_v10  ;;  %v3560_v13 = vadd.f32 %v3559_v40, %v3456_v31  ;;  %v1325_v61 = vmul.f32 %v6810_v53, %v723_v25 }
 0x434   :  { %3598 = vmatmul.bf16.gmra.mxu1 %v1686_v9  ;;  %v1340_v10 = vmul.f32 %v6810_v53, %v738_v11  ;;  %v1341_v50 = vmul.f32 %v6816_v39, %v739_v26  ;;  %v1342_v9 = vmul.f32 %v6821_v44, %v740_v34  ;;  %v1744_v59 = vpack.c.bf16 %v1429_v22, %v1414_v17 }
 0x435   :  { %3793 = vmatmul.msk.bf16.gmra.mxu2 %vm2120_vm0, %v1687_v19  ;;  %v3359_v25 = vadd.f32 %v7266_v6, %v6616_v21  ;;  %v857_v34 = vunpack.c.h.bf16 %v3924_v62  ;;  %v754_v17 = vunpack.c.h.bf16 %v245_v7  ;;  %v769_v21 = vunpack.c.h.bf16 %v253_v1 }
 0x436   :  { %v7332_v60 = vpop.f32.mrf.mxu3  ;;  %v1700_v43 = vpack.c.bf16 %v1340_v10, %v1325_v61  ;;  %v1702_v46 = vpack.c.bf16 %v1342_v9, %v1327_v54  ;;  %v755_v6 = vunpack.c.l.bf16 %v246_v52  ;;  %v770_v10 = vunpack.c.l.bf16 %v254_v32 }
 0x437   :  { %v1459_v9 = vmul.f32 %v6696_v27, %v857_v34  ;;  %v3364_v62 = vadd.f32 %v7309_v4, %v6654_v3 }
 0x438   :  { %v3663_v2 = vpop.f32.mrf.mxu2  ;;  %v3457_v24 = vpop.f32.mrf.mxu0 }
 0x439   :  { %v3664_v12 = vadd.f32 %v3663_v2, %v3560_v13  ;;  %v3561_v48 = vpop.f32.mrf.mxu1  ;;  %v3458_v29 = vadd.f32 %v3457_v24, %v3354_v58  ;;  %v1701_v13 = vpack.c.bf16 %v1341_v50, %v1326_v0 }
 0x43b   :  { %3747 = vst.msk [vmem:[%s7640_s3 + $0x40] sm:$0xff] %vm3738_vm1, %v3664_v12  ;;  %v3562_v19 = vadd.f32 %v3561_v48, %v3458_v29  ;;  %v3923_v12 = vld [vmem:[%s7638_s2 + $0x820] sm:$0xff]  ;;  %v753_v48 = vunpack.c.l.bf16 %v245_v7  ;;  %v768_v29 = vunpack.c.l.bf16 %v253_v1  ;;  %v3362_v7 = vadd.f32 %v7289_v41, %v6640_v15  ;;  %v261_v15 = vld [vmem:[%s7638_s2 + $0x738] sm:$0xff] }
 0x43c   :  { %v842_v24 = vunpack.c.h.bf16 %v3923_v12  ;;  %v269_v41 = vld [vmem:[%s7638_s2 + $0x774] sm:$0xff] }
 0x43d   :  { %v799_v3 = vunpack.c.h.bf16 %v269_v41 }
 0x43e   :  { %v7352_v40 = vpop.f32.mrf.mxu3  ;;  %v1444_v54 = vmul.f32 %v6696_v27, %v842_v24  ;;  %v262_v24 = vld [vmem:[%s7638_s2 + $0x740] sm:$0xf] }
 0x43f   :  { %v785_v4 = vunpack.c.l.bf16 %v262_v24 }
 0x440   :  { %v3665_v31 = vpop.f32.mrf.mxu2  ;;  %v3460_v58 = vpop.f32.mrf.mxu0 }
 0x441   :  { %v3666_v36 = vadd.f32 %v3665_v31, %v3562_v19  ;;  %v3564_v30 = vpop.f32.mrf.mxu1  ;;  %v3461_v2 = vadd.f32 %v3460_v58, %v3357_v33  ;;  %v1355_v19 = vmul.f32 %v6810_v53, %v753_v48  ;;  %v1370_v31 = vmul.f32 %v6810_v53, %v768_v29  ;;  %v3925_v48 = vld [vmem:[%s7638_s2 + $0x898] sm:$0xff] }
 0x442   :  { %v1357_v33 = vmul.f32 %v6821_v44, %v755_v6  ;;  %v872_v29 = vunpack.c.h.bf16 %v3925_v48  ;;  %v783_v6 = vunpack.c.l.bf16 %v261_v15 }
 0x443   :  { %3748 = vst.msk [vmem:[%s7640_s3 + $0x48] sm:$0xff] %vm3738_vm1, %v3666_v36  ;;  %3410 = vmatmul.bf16.gmra.mxu3 %v1744_v59  ;;  %3499 = vmatmul.bf16.gmra.mxu0 %v1700_v43  ;;  %v3565_v11 = vadd.f32 %v3564_v30, %v3461_v2  ;;  %v1356_v59 = vmul.f32 %v6816_v39, %v754_v17 }
 0x444   :  { %3603 = vmatmul.bf16.gmra.mxu1 %v1701_v13  ;;  %v1371_v43 = vmul.f32 %v6816_v39, %v769_v21  ;;  %v1372_v36 = vmul.f32 %v6821_v44, %v770_v10  ;;  %v1759_v30 = vpack.c.bf16 %v1459_v9, %v1444_v54  ;;  %v1715_v2 = vpack.c.bf16 %v1370_v31, %v1355_v19 }
 0x445   :  { %3794 = vmatmul.msk.bf16.gmra.mxu2 %vm2120_vm0, %v1702_v46  ;;  %v798_v10 = vunpack.c.l.bf16 %v269_v41 }
 0x446   :  { %v7375_v18 = vpop.f32.mrf.mxu3  ;;  %v1716_v32 = vpack.c.bf16 %v1371_v43, %v1356_v59  ;;  %v1474_v59 = vmul.f32 %v6696_v27, %v872_v29  ;;  %v3369_v29 = vadd.f32 %v7352_v40, %v6712_v38 }
 0x448   :  { %v3668_v26 = vpop.f32.mrf.mxu2  ;;  %v3462_v61 = vpop.f32.mrf.mxu0 }
 0x449   :  { %v3669_v22 = vadd.f32 %v3668_v26, %v3565_v11  ;;  %v3566_v0 = vpop.f32.mrf.mxu1  ;;  %v3463_v50 = vadd.f32 %v3462_v61, %v3359_v25  ;;  %v1717_v25 = vpack.c.bf16 %v1372_v36, %v1357_v33  ;;  %v270_v26 = vld [vmem:[%s7638_s2 + $0x77c] sm:$0xf]  ;;  %v3926_v61 = vld [vmem:[%s7638_s2 + $0x8d4] sm:$0xff]  ;;  %v1385_v33 = vmul.f32 %v6810_v53, %v783_v6 }
 0x44a   :  { %v887_v21 = vunpack.c.h.bf16 %v3926_v61  ;;  %v800_v9 = vunpack.c.l.bf16 %v270_v26  ;;  %v1400_v36 = vmul.f32 %v6810_v53, %v798_v10 }
 0x44b   :  { %3749 = vst.msk [vmem:[%s7640_s3 + $0x50] sm:$0xff] %vm3738_vm1, %v3669_v22  ;;  %v3567_v58 = vadd.f32 %v3566_v0, %v3463_v50  ;;  %v784_v0 = vunpack.c.h.bf16 %v261_v15 }
 0x44c   :  { %v1489_v43 = vmul.f32 %v6696_v27, %v887_v21 }
 0x44e   :  { %v7395_v13 = vpop.f32.mrf.mxu3 }
 0x450   :  { %v3670_v46 = vpop.f32.mrf.mxu2  ;;  %v3465_v52 = vpop.f32.mrf.mxu0 }
 0x451   :  { %v3671_v1 = vadd.f32 %v3670_v46, %v3567_v58  ;;  %v3569_v11 = vpop.f32.mrf.mxu1  ;;  %v3466_v12 = vadd.f32 %v3465_v52, %v3362_v7  ;;  %v1386_v58 = vmul.f32 %v6816_v39, %v784_v0  ;;  %v1401_v46 = vmul.f32 %v6816_v39, %v799_v3 }
 0x452   :  { %v1774_v52 = vpack.c.bf16 %v1489_v43, %v1474_v59 }
 0x453   :  { %3750 = vst.msk [vmem:[%s7640_s3 + $0x58] sm:$0xff] %vm3738_vm1, %v3671_v1  ;;  %3415 = vmatmul.bf16.gmra.mxu3 %v1759_v30  ;;  %3504 = vmatmul.bf16.gmra.mxu0 %v1715_v2  ;;  %v3570_v34 = vadd.f32 %v3569_v11, %v3466_v12  ;;  %v1387_v30 = vmul.f32 %v6821_v44, %v785_v4 }
 0x454   :  { %3608 = vmatmul.bf16.gmra.mxu1 %v1716_v32  ;;  %v1402_v2 = vmul.f32 %v6821_v44, %v800_v9  ;;  %v1730_v32 = vpack.c.bf16 %v1400_v36, %v1385_v33  ;;  %v1731_v12 = vpack.c.bf16 %v1401_v46, %v1386_v58 }
 0x455   :  { %3795 = vmatmul.msk.bf16.gmra.mxu2 %vm2120_vm0, %v1717_v25  ;;  %v3367_v25 = vadd.f32 %v7332_v60, %v6698_v42  ;;  %v277_v42 = vld [vmem:[%s7638_s2 + $0x7b0] sm:$0xff] }
 0x456   :  { %v7421_v17 = vpop.f32.mrf.mxu3  ;;  %v1732_v15 = vpack.c.bf16 %v1402_v2, %v1387_v30  ;;  %v285_v60 = vld [vmem:[%s7638_s2 + $0x7ec] sm:$0xff]  ;;  %v813_v61 = vunpack.c.l.bf16 %v277_v42  ;;  %v814_v6 = vunpack.c.h.bf16 %v277_v42  ;;  %v3372_v30 = vadd.f32 %v7375_v18, %v6736_v20  ;;  %v301_v20 = vld [vmem:[%s7638_s2 + $0x864] sm:$0xff] }
 0x457   :  { %v828_v21 = vunpack.c.l.bf16 %v285_v60 }
 0x458   :  { %v3673_v22 = vpop.f32.mrf.mxu2  ;;  %v3467_v54 = vpop.f32.mrf.mxu0  ;;  %v1415_v38 = vmul.f32 %v6810_v53, %v813_v61 }
 0x459   :  { %v3674_v50 = vadd.f32 %v3673_v22, %v3570_v34  ;;  %v3571_v19 = vpop.f32.mrf.mxu1  ;;  %v3468_v31 = vadd.f32 %v3467_v54, %v3364_v62  ;;  %v278_v62 = vld [vmem:[%s7638_s2 + $0x7b8] sm:$0xf]  ;;  %v286_v34 = vld [vmem:[%s7638_s2 + $0x7f4] sm:$0xf]  ;;  %v1430_v40 = vmul.f32 %v6810_v53, %v828_v21 }
 0x45a   :  { %v815_v54 = vunpack.c.l.bf16 %v278_v62  ;;  %v830_v3 = vunpack.c.l.bf16 %v286_v34 }
 0x45b   :  { %3751 = vst.msk [vmem:[%s7640_s3 + $0x60] sm:$0xff] %vm3738_vm1, %v3674_v50  ;;  %v3572_v7 = vadd.f32 %v3571_v19, %v3468_v31  ;;  %v829_v50 = vunpack.c.h.bf16 %v285_v60  ;;  %v1416_v31 = vmul.f32 %v6816_v39, %v814_v6  ;;  %v1745_v46 = vpack.c.bf16 %v1430_v40, %v1415_v38 }
 0x45c   :  { %v1417_v43 = vmul.f32 %v6821_v44, %v815_v54  ;;  %v1432_v33 = vmul.f32 %v6821_v44, %v830_v3  ;;  %v858_v60 = vunpack.c.l.bf16 %v301_v20  ;;  %v3377_v40 = vadd.f32 %v7421_v17, %v6774_v16  ;;  %v317_v16 = vld [vmem:[%s7638_s2 + $0x8dc] sm:$0xff]  ;;  %v310_v17 = vld [vmem:[%s7638_s2 + $0x8a8] sm:$0xf] }
 0x45d   :  { %v1431_v59 = vmul.f32 %v6816_v39, %v829_v50 }
 0x45e   :  { %v7440_v41 = vpop.f32.mrf.mxu3 }
 0x460   :  { %v3675_v1 = vpop.f32.mrf.mxu2  ;;  %v3470_v11 = vpop.f32.mrf.mxu0 }
 0x461   :  { %v3676_v27 = vadd.f32 %v3675_v1, %v3572_v7  ;;  %v3574_v24 = vpop.f32.mrf.mxu1  ;;  %v3471_v26 = vadd.f32 %v3470_v11, %v3367_v25  ;;  %v1746_v1 = vpack.c.bf16 %v1431_v59, %v1416_v31  ;;  %v294_v11 = vld [vmem:[%s7638_s2 + $0x830] sm:$0xf] }
 0x463   :  { %3752 = vst.msk [vmem:[%s7640_s3 + $0x68] sm:$0xff] %vm3738_vm1, %v3676_v27  ;;  %3420 = vmatmul.bf16.gmra.mxu3 %v1774_v52  ;;  %3509 = vmatmul.bf16.gmra.mxu0 %v1730_v32  ;;  %v3575_v48 = vadd.f32 %v3574_v24, %v3471_v26  ;;  %v1747_v52 = vpack.c.bf16 %v1432_v33, %v1417_v43  ;;  %v293_v27 = vld [vmem:[%s7638_s2 + $0x828] sm:$0xff] }
 0x464   :  { %3613 = vmatmul.bf16.gmra.mxu1 %v1731_v12  ;;  %v302_v12 = vld [vmem:[%s7638_s2 + $0x86c] sm:$0xf]  ;;  %v3374_v24 = vadd.f32 %v7395_v13, %v6750_v51  ;;  %v843_v42 = vunpack.c.l.bf16 %v293_v27  ;;  %v844_v62 = vunpack.c.h.bf16 %v293_v27  ;;  %v1460_v51 = vmul.f32 %v6810_v53, %v858_v60 }
 0x465   :  { %3796 = vmatmul.msk.bf16.gmra.mxu2 %vm2120_vm0, %v1732_v15  ;;  %v860_v61 = vunpack.c.l.bf16 %v302_v12  ;;  %v875_v12 = vunpack.c.l.bf16 %v310_v17 }
 0x466   :  { %v7465_v19 = vpop.f32.mrf.mxu3  ;;  %v1446_v13 = vmul.f32 %v6816_v39, %v844_v62 }
 0x467   :  { %v1462_v54 = vmul.f32 %v6821_v44, %v860_v61 }
 0x468   :  { %v3678_v22 = vpop.f32.mrf.mxu2  ;;  %v3472_v0 = vpop.f32.mrf.mxu0 }
 0x469   :  { %v3679_v10 = vadd.f32 %v3678_v22, %v3575_v48  ;;  %v3576_v4 = vpop.f32.mrf.mxu1  ;;  %v3473_v9 = vadd.f32 %v3472_v0, %v3369_v29  ;;  %v859_v29 = vunpack.c.h.bf16 %v301_v20  ;;  %v845_v22 = vunpack.c.l.bf16 %v294_v11 }
 0x46a   :  { %v889_v11 = vunpack.c.h.bf16 %v317_v16 }
 0x46b   :  { %3753 = vst.msk [vmem:[%s7640_s3 + $0x70] sm:$0xff] %vm3738_vm1, %v3679_v10  ;;  %v3577_v36 = vadd.f32 %v3576_v4, %v3473_v9  ;;  %v1445_v10 = vmul.f32 %v6810_v53, %v843_v42  ;;  %v1461_v0 = vmul.f32 %v6816_v39, %v859_v29  ;;  %v1447_v50 = vmul.f32 %v6821_v44, %v845_v22 }
 0x46c   :  { %v1491_v62 = vmul.f32 %v6816_v39, %v889_v11 }
 0x46d   :  { %v1760_v38 = vpack.c.bf16 %v1460_v51, %v1445_v10  ;;  %v1761_v43 = vpack.c.bf16 %v1461_v0, %v1446_v13  ;;  %v1762_v33 = vpack.c.bf16 %v1462_v54, %v1447_v50 }
 0x46e   :  { %v7486_v18 = vpop.f32.mrf.mxu3 }
 0x470   :  { %v3680_v58 = vpop.f32.mrf.mxu2  ;;  %v3475_v7 = vpop.f32.mrf.mxu0 }
 0x471   :  { %v3681_v2 = vadd.f32 %v3680_v58, %v3577_v36  ;;  %v3579_v32 = vpop.f32.mrf.mxu1  ;;  %v3476_v25 = vadd.f32 %v3475_v7, %v3372_v30  ;;  %v318_v30 = vld [vmem:[%s7638_s2 + $0x8e4] sm:$0xf]  ;;  %v3379_v7 = vadd.f32 %v7440_v41, %v6788_v56 }
 0x473   :  { %3754 = vst.msk [vmem:[%s7640_s3 + $0x78] sm:$0xff] %vm3738_vm1, %v3681_v2  ;;  %3514 = vmatmul.bf16.gmra.mxu0 %v1745_v46  ;;  %v3580_v15 = vadd.f32 %v3579_v32, %v3476_v25  ;;  %v309_v46 = vld [vmem:[%s7638_s2 + $0x8a0] sm:$0xff]  ;;  %v888_v32 = vunpack.c.l.bf16 %v317_v16 }
 0x474   :  { %3618 = vmatmul.bf16.gmra.mxu1 %v1746_v1  ;;  %v874_v25 = vunpack.c.h.bf16 %v309_v46 }
 0x475   :  { %3797 = vmatmul.msk.bf16.gmra.mxu2 %vm2120_vm0, %v1747_v52  ;;  %v873_v52 = vunpack.c.l.bf16 %v309_v46  ;;  %v1490_v56 = vmul.f32 %v6810_v53, %v888_v32 }
 0x476   :  { %v7506_v4 = vpop.f32.mrf.mxu3  ;;  %v1476_v41 = vmul.f32 %v6816_v39, %v874_v25 }
 0x477   :  { %v1475_v60 = vmul.f32 %v6810_v53, %v873_v52 }
 0x478   :  { %v3683_v26 = vpop.f32.mrf.mxu2  ;;  %v3477_v48 = vpop.f32.mrf.mxu0  ;;  %v1776_v51 = vpack.c.bf16 %v1491_v62, %v1476_v41 }
 0x479   :  { %v3684_v34 = vadd.f32 %v3683_v26, %v3580_v15  ;;  %v3581_v21 = vpop.f32.mrf.mxu1  ;;  %v3478_v6 = vadd.f32 %v3477_v48, %v3374_v24  ;;  %v890_v15 = vunpack.c.l.bf16 %v318_v30  ;;  %v1775_v61 = vpack.c.bf16 %v1490_v56, %v1475_v60 }
 0x47b   :  { %3755 = vst.msk [vmem:[%s7640_s3 + $0x80] sm:$0xff] %vm3738_vm1, %v3684_v34  ;;  %v3582_v3 = vadd.f32 %v3581_v21, %v3478_v6  ;;  %v1477_v34 = vmul.f32 %v6821_v44, %v875_v12  ;;  %v1492_v48 = vmul.f32 %v6821_v44, %v890_v15  ;;  %v3382_v21 = vadd.f32 %v7465_v19, %v6818_v14 }
 0x47c   :  { %v3384_v14 = vadd.f32 %v7486_v18, %v6835_v5 }
 0x47d   :  { %v1777_v13 = vpack.c.bf16 %v1492_v48, %v1477_v34 }
 0x47e   :  { %v3388_v24 = vpop.f32.mrf.mxu3 }
 0x47f   :  { %v3389_v16 = vadd.f32 %v3388_v24, %v6874_v8 }
 0x480   :  { %v3685_v9 = vpop.f32.mrf.mxu2  ;;  %v3480_v59 = vpop.f32.mrf.mxu0 }
 0x481   :  { %v3686_v31 = vadd.f32 %v3685_v9, %v3582_v3  ;;  %v3584_v36 = vpop.f32.mrf.mxu1  ;;  %v3481_v58 = vadd.f32 %v3480_v59, %v3377_v40  ;;  %v3387_v59 = vadd.f32 %v7506_v4, %v6860_v55 }
 0x483   :  { %3756 = vst.msk [vmem:[%s7640_s3 + $0x88] sm:$0xff] %vm3738_vm1, %v3686_v31  ;;  %3519 = vmatmul.bf16.gmra.mxu0 %v1760_v38  ;;  %v3585_v2 = vadd.f32 %v3584_v36, %v3481_v58 }
 0x484   :  { %3623 = vmatmul.bf16.gmra.mxu1 %v1761_v43 }
 0x485   :  { %3798 = vmatmul.msk.bf16.gmra.mxu2 %vm2120_vm0, %v1762_v33 }
 0x486   :  { %v3391_v39 = vpop.f32.mrf.mxu3 }
 0x488   :  { %v3688_v1 = vpop.f32.mrf.mxu2  ;;  %v3482_v20 = vpop.f32.mrf.mxu0 }
 0x489   :  { %v3689_v27 = vadd.f32 %v3688_v1, %v3585_v2  ;;  %v3586_v26 = vpop.f32.mrf.mxu1  ;;  %v3483_v42 = vadd.f32 %v3482_v20, %v3379_v7  ;;  %v3392_v1 = vadd.f32 %v3391_v39, %v6899_v37 }
 0x48b   :  { %3757 = vst.msk [vmem:[%s7640_s3 + $0x90] sm:$0xff] %vm3738_vm1, %v3689_v27  ;;  %v3587_v29 = vadd.f32 %v3586_v26, %v3483_v42 }
 0x48e   :  { %v3393_v38 = vpop.f32.mrf.mxu3 }
 0x48f   :  { %v3394_v12 = vadd.f32 %v3393_v38, %v6913_v45 }
 0x490   :  { %v3690_v22 = vpop.f32.mrf.mxu2  ;;  %v3485_v10 = vpop.f32.mrf.mxu0 }
 0x491   :  { %v3691_v6 = vadd.f32 %v3690_v22, %v3587_v29  ;;  %v3589_v0 = vpop.f32.mrf.mxu1  ;;  %v3486_v53 = vadd.f32 %v3485_v10, %v3382_v21 }
 0x493   :  { %3758 = vst.msk [vmem:[%s7640_s3 + $0x98] sm:$0xff] %vm3738_vm1, %v3691_v6  ;;  %3524 = vmatmul.bf16.gmra.mxu0 %v1775_v61  ;;  %v3590_v44 = vadd.f32 %v3589_v0, %v3486_v53 }
 0x494   :  { %3628 = vmatmul.bf16.gmra.mxu1 %v1776_v51 }
 0x495   :  { %3799 = vmatmul.msk.bf16.gmra.mxu2 %vm2120_vm0, %v1777_v13 }
 0x496   :  { %v3396_v58 = vpop.f32.mrf.mxu3 }
 0x497   :  { %v3397_v41 = vadd.f32 %v3396_v58, %v6938_v57 }
 0x498   :  { %v3693_v50 = vpop.f32.mrf.mxu2  ;;  %v3487_v54 = vpop.f32.mrf.mxu0 }
 0x499   :  { %v3694_v19 = vadd.f32 %v3693_v50, %v3590_v44  ;;  %v3591_v3 = vpop.f32.mrf.mxu1  ;;  %v3488_v9 = vadd.f32 %v3487_v54, %v3384_v14 }
 0x49b   :  { %3759 = vst.msk [vmem:[%s7640_s3 + $0xa0] sm:$0xff] %vm3738_vm1, %v3694_v19  ;;  %v3592_v40 = vadd.f32 %v3591_v3, %v3488_v9 }
 0x49e   :  { %v3398_v25 = vpop.f32.mrf.mxu3 }
 0x49f   :  { %v3399_v21 = vadd.f32 %v3398_v25, %v6952_v63 }
 0x4a0   :  { %v3695_v31 = vpop.f32.mrf.mxu2  ;;  %v3490_v33 = vpop.f32.mrf.mxu0 }
 0x4a1   :  { %v3696_v43 = vadd.f32 %v3695_v31, %v3592_v40  ;;  %v3594_v36 = vpop.f32.mrf.mxu1  ;;  %v3491_v5 = vadd.f32 %v3490_v33, %v3387_v59 }
 0x4a3   :  { %3760 = vst.msk [vmem:[%s7640_s3 + $0xa8] sm:$0xff] %vm3738_vm1, %v3696_v43  ;;  %v3595_v18 = vadd.f32 %v3594_v36, %v3491_v5 }
 0x4a6   :  { %v3401_v42 = vpop.f32.mrf.mxu3 }
 0x4a7   :  { %v3402_v39 = vadd.f32 %v3401_v42, %v6977_v28 }
 0x4a8   :  { %v3698_v46 = vpop.f32.mrf.mxu2  ;;  %v3492_v30 = vpop.f32.mrf.mxu0 }
 0x4a9   :  { %v3699_v17 = vadd.f32 %v3698_v46, %v3595_v18  ;;  %v3596_v2 = vpop.f32.mrf.mxu1  ;;  %v3493_v55 = vadd.f32 %v3492_v30, %v3389_v16 }
 0x4ab   :  { %3761 = vst.msk [vmem:[%s7640_s3 + $0xb0] sm:$0xff] %vm3738_vm1, %v3699_v17  ;;  %v3597_v4 = vadd.f32 %v3596_v2, %v3493_v55 }
 0x4ae   :  { %v3403_v29 = vpop.f32.mrf.mxu3 }
 0x4af   :  { %v3404_v3 = vadd.f32 %v3403_v29, %v6991_v49 }
 0x4b0   :  { %v3700_v7 = vpop.f32.mrf.mxu2  ;;  %v3495_v32 = vpop.f32.mrf.mxu0 }
 0x4b1   :  { %v3701_v52 = vadd.f32 %v3700_v7, %v3597_v4  ;;  %v3599_v27 = vpop.f32.mrf.mxu1  ;;  %v3496_v8 = vadd.f32 %v3495_v32, %v3392_v1 }
 0x4b3   :  { %3762 = vst.msk [vmem:[%s7640_s3 + $0xb8] sm:$0xff] %vm3738_vm1, %v3701_v52  ;;  %v3600_v20 = vadd.f32 %v3599_v27, %v3496_v8 }
 0x4b6   :  { %v3406_v0 = vpop.f32.mrf.mxu3 }
 0x4b7   :  { %v3407_v33 = vadd.f32 %v3406_v0, %v7016_v35 }
 0x4b8   :  { %v3703_v11 = vpop.f32.mrf.mxu2  ;;  %v3497_v24 = vpop.f32.mrf.mxu0 }
 0x4b9   :  { %v3704_v15 = vadd.f32 %v3703_v11, %v3600_v20  ;;  %v3601_v26 = vpop.f32.mrf.mxu1  ;;  %v3498_v37 = vadd.f32 %v3497_v24, %v3394_v12  ;;  %v7664_v12 = vld [vmem:[#allocation4_spill] sm:$0xff] }
 0x4bb   :  { %3763 = vst.msk [vmem:[%s7640_s3 + $0xc0] sm:$0xff] %vm3738_vm1, %v3704_v15  ;;  %v3602_v60 = vadd.f32 %v3601_v26, %v3498_v37 }
 0x4be   :  { %v3408_v40 = vpop.f32.mrf.mxu3 }
 0x4bf   :  { %v3409_v17 = vadd.f32 %v3408_v40, %v7030_v47  ;;  %v7668_v40 = vld [vmem:[#allocation8_spill] sm:$0xff] }
 0x4c0   :  { %v3705_v56 = vpop.f32.mrf.mxu2  ;;  %v3500_v34 = vpop.f32.mrf.mxu0 }
 0x4c1   :  { %v3706_v62 = vadd.f32 %v3705_v56, %v3602_v60  ;;  %v3604_v48 = vpop.f32.mrf.mxu1  ;;  %v3501_v45 = vadd.f32 %v3500_v34, %v3397_v41  ;;  %v7665_v56 = vld [vmem:[#allocation5_spill] sm:$0xff] }
 0x4c3   :  { %3764 = vst.msk [vmem:[%s7640_s3 + $0xc8] sm:$0xff] %vm3738_vm1, %v3706_v62  ;;  %v3605_v22 = vadd.f32 %v3604_v48, %v3501_v45 }
 0x4c6   :  { %v3411_v58 = vpop.f32.mrf.mxu3 }
 0x4c7   :  { %v3412_v52 = vadd.f32 %v3411_v58, %v7054_v23 }
 0x4c8   :  { %v3708_v61 = vpop.f32.mrf.mxu2  ;;  %v3502_v10 = vpop.f32.mrf.mxu0 }
 0x4c9   :  { %v3709_v6 = vadd.f32 %v3708_v61, %v3605_v22  ;;  %v3606_v51 = vpop.f32.mrf.mxu1  ;;  %v3503_v57 = vadd.f32 %v3502_v10, %v3399_v21  ;;  %v7666_v21 = vld [vmem:[#allocation6_spill] sm:$0xff] }
 0x4cb   :  { %3765 = vst.msk [vmem:[%s7640_s3 + $0xd0] sm:$0xff] %vm3738_vm1, %v3709_v6  ;;  %v3607_v13 = vadd.f32 %v3606_v51, %v3503_v57 }
 0x4ce   :  { %v3413_v4 = vpop.f32.mrf.mxu3 }
 0x4cf   :  { %v3414_v15 = vadd.f32 %v3413_v4, %v7664_v12 }
 0x4d0   :  { %v3710_v53 = vpop.f32.mrf.mxu2  ;;  %v3505_v50 = vpop.f32.mrf.mxu0 }
 0x4d1   :  { %v3711_v44 = vadd.f32 %v3710_v53, %v3607_v13  ;;  %v3609_v14 = vpop.f32.mrf.mxu1  ;;  %v3506_v63 = vadd.f32 %v3505_v50, %v3402_v39 }
 0x4d3   :  { %3766 = vst.msk [vmem:[%s7640_s3 + $0xd8] sm:$0xff] %vm3738_vm1, %v3711_v44  ;;  %v3610_v19 = vadd.f32 %v3609_v14, %v3506_v63  ;;  %v7667_v44 = vld [vmem:[#allocation7_spill] sm:$0xff] }
 0x4d6   :  { %v3416_v20 = vpop.f32.mrf.mxu3 }
 0x4d7   :  { %v3417_v41 = vadd.f32 %v3416_v20, %v7665_v56 }
 0x4d8   :  { %v3713_v54 = vpop.f32.mrf.mxu2  ;;  %v3507_v38 = vpop.f32.mrf.mxu0 }
 0x4d9   :  { %v3714_v9 = vadd.f32 %v3713_v54, %v3610_v19  ;;  %v3611_v31 = vpop.f32.mrf.mxu1  ;;  %v3508_v28 = vadd.f32 %v3507_v38, %v3404_v3 }
 0x4db   :  { %3767 = vst.msk [vmem:[%s7640_s3 + $0xe0] sm:$0xff] %vm3738_vm1, %v3714_v9  ;;  %v3612_v59 = vadd.f32 %v3611_v31, %v3508_v28 }
 0x4de   :  { %v3418_v48 = vpop.f32.mrf.mxu3 }
 0x4df   :  { %v3419_v6 = vadd.f32 %v3418_v48, %v7666_v21 }
 0x4e0   :  { %v3715_v43 = vpop.f32.mrf.mxu2  ;;  %v3510_v5 = vpop.f32.mrf.mxu0 }
 0x4e1   :  { %v3716_v36 = vadd.f32 %v3715_v43, %v3612_v59  ;;  %v3614_v18 = vpop.f32.mrf.mxu1  ;;  %v3511_v49 = vadd.f32 %v3510_v5, %v3407_v33 }
 0x4e3   :  { %3768 = vst.msk [vmem:[%s7640_s3 + $0xe8] sm:$0xff] %vm3738_vm1, %v3716_v36  ;;  %v3615_v46 = vadd.f32 %v3614_v18, %v3511_v49 }
 0x4e6   :  { %v3421_v0 = vpop.f32.mrf.mxu3 }
 0x4e7   :  { %v3422_v50 = vadd.f32 %v3421_v0, %v7667_v44 }
 0x4e8   :  { %v3718_v16 = vpop.f32.mrf.mxu2  ;;  %v3512_v2 = vpop.f32.mrf.mxu0 }
 0x4e9   :  { %v3719_v30 = vadd.f32 %v3718_v16, %v3615_v46  ;;  %v3616_v55 = vpop.f32.mrf.mxu1  ;;  %v3513_v35 = vadd.f32 %v3512_v2, %v3409_v17 }
 0x4eb   :  { %3769 = vst.msk [vmem:[%s7640_s3 + $0xf0] sm:$0xff] %vm3738_vm1, %v3719_v30  ;;  %v3617_v7 = vadd.f32 %v3616_v55, %v3513_v35 }
 0x4ee   :  { %v3423_v3 = vpop.f32.mrf.mxu3 }
 0x4ef   :  { %v3424_v31 = vadd.f32 %v3423_v3, %v7668_v40 }
 0x4f0   :  { %v3720_v1 = vpop.f32.mrf.mxu2  ;;  %v3515_v25 = vpop.f32.mrf.mxu0 }
 0x4f1   :  { %v3721_v32 = vadd.f32 %v3720_v1, %v3617_v7  ;;  %v3619_v27 = vpop.f32.mrf.mxu1  ;;  %v3516_v47 = vadd.f32 %v3515_v25, %v3412_v52 }
 0x4f3   :  { %3770 = vst.msk [vmem:[%s7640_s3 + $0xf8] sm:$0xff] %vm3738_vm1, %v3721_v32  ;;  %v3620_v8 = vadd.f32 %v3619_v27, %v3516_v47 }
 0x4f8   :  { %v3723_v11 = vpop.f32.mrf.mxu2  ;;  %v3517_v26 = vpop.f32.mrf.mxu0 }
 0x4f9   :  { %v3724_v24 = vadd.f32 %v3723_v11, %v3620_v8  ;;  %v3621_v37 = vpop.f32.mrf.mxu1  ;;  %v3518_v23 = vadd.f32 %v3517_v26, %v3414_v15 }
 0x4fb   :  { %3771 = vst.msk [vmem:[%s7640_s3 + $0x100] sm:$0xff] %vm3738_vm1, %v3724_v24  ;;  %v3622_v42 = vadd.f32 %v3621_v37, %v3518_v23 }
 0x500   :  { %v3725_v60 = vpop.f32.mrf.mxu2  ;;  %v3520_v34 = vpop.f32.mrf.mxu0 }
 0x501   :  { %v3726_v62 = vadd.f32 %v3725_v60, %v3622_v42  ;;  %v3624_v45 = vpop.f32.mrf.mxu1  ;;  %v3521_v29 = vadd.f32 %v3520_v34, %v3417_v41 }
 0x503   :  { %3772 = vst.msk [vmem:[%s7640_s3 + $0x108] sm:$0xff] %vm3738_vm1, %v3726_v62  ;;  %v3625_v22 = vadd.f32 %v3624_v45, %v3521_v29 }
 0x508   :  { %v3728_v61 = vpop.f32.mrf.mxu2  ;;  %v3522_v51 = vpop.f32.mrf.mxu0 }
 0x509   :  { %v3729_v10 = vadd.f32 %v3728_v61, %v3625_v22  ;;  %v3626_v57 = vpop.f32.mrf.mxu1  ;;  %v3523_v13 = vadd.f32 %v3522_v51, %v3419_v6 }
 0x50b   :  { %3773 = vst.msk [vmem:[%s7640_s3 + $0x110] sm:$0xff] %vm3738_vm1, %v3729_v10  ;;  %v3627_v53 = vadd.f32 %v3626_v57, %v3523_v13 }
 0x510   :  { %v3730_v39 = vpop.f32.mrf.mxu2  ;;  %v3525_v63 = vpop.f32.mrf.mxu0 }
 0x511   :  { %v3731_v14 = vadd.f32 %v3730_v39, %v3627_v53  ;;  %v3526_v19 = vadd.f32 %v3525_v63, %v3422_v50  ;;  %v3629_v54 = vpop.f32.mrf.mxu1 }
 0x513   :  { %3774 = vst.msk [vmem:[%s7640_s3 + $0x118] sm:$0xff] %vm3738_vm1, %v3731_v14  ;;  %v3630_v9 = vadd.f32 %v3629_v54, %v3526_v19 }
 0x518   :  { %v3733_v38 = vpop.f32.mrf.mxu2  ;;  %v3527_v59 = vpop.f32.mrf.mxu0 }
 0x519   :  { %v3734_v28 = vadd.f32 %v3733_v38, %v3630_v9  ;;  %v3528_v43 = vadd.f32 %v3527_v59, %v3424_v31  ;;  %v3631_v33 = vpop.f32.mrf.mxu1 }
 0x51b   :  { %3775 = vst.msk [vmem:[%s7640_s3 + $0x120] sm:$0xff] %vm3738_vm1, %v3734_v28  ;;  %v3632_v36 = vadd.f32 %v3631_v33, %v3528_v43 }
 0x520   :  { %v3735_v5 = vpop.f32.mrf.mxu2 }
 0x521   :  { %v3736_v18 = vadd.f32 %v3735_v5, %v3632_v36 }
 0x523   :  { %3776 = vst.msk [vmem:[%s7640_s3 + $0x128] sm:$0xff] %vm3738_vm1, %v3736_v18 }

</bundles_post_ra>
